<compile_context>
chip_gen: v5e
topology: v5e:2x2
jax: 0.10.0
libtpu: 0.0.40
codegen_flags: <defaults>
</compile_context>

<pallas_src>
import functools

import jax
import jax.numpy as jnp
from jax.experimental import pallas as pl
from jax.experimental.pallas import tpu as pltpu

BN_EPS = 1e-5


def _round_up(x, m):
    return (x + m - 1) // m * m


@functools.lru_cache(maxsize=1)
def _vmem_limit_bytes():
    # Generation-aware scoped-VMEM budget: ~half of physical VMEM, capped.
    # (v5e/v6e: 128 MiB physical -> 64 MiB scoped; v7x: 64 MiB -> 32 MiB.)
    try:
        cap = int(pltpu.get_tpu_info().vmem_capacity_bytes)
    except Exception:
        cap = 64 * 1024 * 1024
    return min(96 * 1024 * 1024, max(32 * 1024 * 1024, cap // 2))


def _single_buffered(block_shape, index_map):
    """BlockSpec for constant (or rarely changing) blocks: request a single
    VMEM buffer instead of the default double buffer."""
    try:
        return pl.BlockSpec(block_shape, index_map, pipeline_mode=pl.Buffered(1))
    except Exception:   # older jax without pipeline_mode / Buffered
        return pl.BlockSpec(block_shape, index_map)


# ---------------------------------------------------------------------------
# Kernel 1: matmul + bias (drives the 2x2 / stride-2 ConvTranspose)
# ---------------------------------------------------------------------------
def _matmul_bias_kernel(a_ref, b_ref, bias_ref, o_ref):
    acc = jnp.dot(a_ref[...], b_ref[...], preferred_element_type=jnp.float32)
    o_ref[...] = (acc + bias_ref[...]).astype(o_ref.dtype)


def matmul_bias(a, b, bias, *, tm=256):
    """(M, K) @ (K, N) + bias(N,) -> (M, N) bf16.  bf16 MXU inputs, f32 acc,
    K/N padded to multiples of 128 so every load/store is lane dense."""
    M, K = a.shape
    K2, N = b.shape
    assert K == K2
    tm = min(tm, _round_up(M, 16))
    Mp, Kp, Np = _round_up(M, tm), _round_up(K, 128), _round_up(N, 128)
    a_p = jnp.pad(a.astype(jnp.bfloat16), ((0, Mp - M), (0, Kp - K)))
    b_p = jnp.pad(b.astype(jnp.bfloat16), ((0, Kp - K), (0, Np - N)))
    bias_p = jnp.pad(bias.astype(jnp.float32), (0, Np - N)).reshape(1, Np)
    out = pl.pallas_call(
        _matmul_bias_kernel,
        out_shape=jax.ShapeDtypeStruct((Mp, Np), jnp.bfloat16),
        grid_spec=pltpu.PrefetchScalarGridSpec(
            num_scalar_prefetch=0,
            grid=(Mp // tm,),
            in_specs=[
                pl.BlockSpec((tm, Kp), lambda i: (i, 0)),
                _single_buffered((Kp, Np), lambda i: (0, 0)),
                _single_buffered((1, Np), lambda i: (0, 0)),
            ],
            out_specs=pl.BlockSpec((tm, Np), lambda i: (i, 0)),
        ),
        compiler_params=pltpu.CompilerParams(
            dimension_semantics=("parallel",),
            vmem_limit_bytes=_vmem_limit_bytes(),
        ),
    )(a_p, b_p, bias_p)
    return out[:M, :N]


# ---------------------------------------------------------------------------
# Kernel 2: fused 3x3 conv (double-buffered halo-window DMA, 3 deep bf16
# matmuls) + masked per-channel sum / sum-of-squares epilogue for BatchNorm.
# ---------------------------------------------------------------------------
def _conv3x3_stats_kernel(w_ref, x_hbm, y_ref, stats_ref, xbuf_ref, sem_ref,
                          *, wp, w_valid, q_valid, tq, halo):
    n = pl.program_id(0)
    qb = pl.program_id(2)
    n_qb = pl.num_programs(2)
    slot = qb % 2

    def window_copy(block_idx, slot_idx):
        start = pl.multiple_of(block_idx * tq, tq)
        return pltpu.make_async_copy(
            x_hbm.at[n, pl.ds(start, tq + halo), :],
            xbuf_ref.at[slot_idx],
            sem_ref.at[slot_idx])

    # Prime the pipeline at the first row-block of each (image, cout-tile)
    # sweep; every later block was prefetched by the previous grid step.
    @pl.when(qb == 0)
    def _():
        window_copy(0, 0).start()

    window_copy(qb, slot).wait()

    @pl.when(qb + 1 < n_qb)
    def _():
        window_copy(qb + 1, 1 - slot).start()

    # 3 deep matmuls (K = 3*Cin): the three kx taps of kernel row ky are
    # concatenated along channels; lhs rows are flat padded-image rows shifted
    # by ky*(W+2).  Accumulate in registers, store once.
    x_win = xbuf_ref.at[slot]
    acc = None
    for ky in range(3):
        base = ky * wp
        lhs = jnp.concatenate(
            [x_win[pl.ds(base + kx, tq), :] for kx in range(3)], axis=1)
        part = jnp.dot(lhs, w_ref[ky], preferred_element_type=jnp.float32)
        acc = part if acc is None else acc + part

    # In-kernel validity mask (junk columns w >= W and tail-pad rows) for the
    # BatchNorm partial statistics; invalid rows get sliced away outside.
    ridx = qb * tq + jax.lax.broadcasted_iota(jnp.int32, (tq, 1), 0)
    valid = jnp.logical_and(ridx < q_valid, (ridx % wp) < w_valid)
    masked = jnp.where(valid, acc, 0.0)
    stats_ref[0:1, :] = jnp.sum(masked, axis=0, keepdims=True)       # sum
    stats_ref[1:2, :] = jnp.sum(masked * acc, axis=0, keepdims=True)  # sum sq
    y_ref[...] = acc.astype(y_ref.dtype)


def _bn_relu_kernel(x_ref, scale_ref, shift_ref, o_ref):
    y = x_ref[...].astype(jnp.float32) * scale_ref[...] + shift_ref[...]
    o_ref[...] = jnp.maximum(y, 0.0).astype(o_ref.dtype)


def bn_relu_apply(x, scale, shift, *, tm=512):
    """relu(x * scale + shift) -> bf16.  x: (M, C); scale/shift: (1, C) f32."""
    M, C = x.shape
    tm = min(tm, _round_up(M, 16))
    Mp = _round_up(M, tm)
    if Mp != M:
        x = jnp.pad(x, ((0, Mp - M), (0, 0)))
    out = pl.pallas_call(
        _bn_relu_kernel,
        out_shape=jax.ShapeDtypeStruct((Mp, C), jnp.bfloat16),
        grid_spec=pltpu.PrefetchScalarGridSpec(
            num_scalar_prefetch=0,
            grid=(Mp // tm,),
            in_specs=[
                pl.BlockSpec((tm, C), lambda i: (i, 0)),
                _single_buffered((1, C), lambda i: (0, 0)),
                _single_buffered((1, C), lambda i: (0, 0)),
            ],
            out_specs=pl.BlockSpec((tm, C), lambda i: (i, 0)),
        ),
        compiler_params=pltpu.CompilerParams(
            dimension_semantics=("parallel",),
            vmem_limit_bytes=_vmem_limit_bytes(),
        ),
    )(x, scale, shift)
    return out[:M] if Mp != M else out


def _pick_tn(coutp):
    if coutp <= 512:
        return coutp
    for tn in (512, 256, 128):
        if coutp % tn == 0:
            return tn
    return coutp


def conv3x3_bn_relu(x_nhwc, conv_w, gamma, beta, *, tq=None):
    """Conv2d(k=3, pad=1) + BatchNorm2d (training-mode batch stats) + ReLU.

    The conv bias is intentionally omitted: train-mode BN subtracts the batch
    mean, which cancels a per-channel constant bias exactly (train-mode only;
    an eval / running-stats path would need the bias back)."""
    B, H, W, C = x_nhwc.shape
    Cout = conv_w.shape[0]
    WP = W + 2                                   # padded row width
    Q = H * WP                                   # flat output rows per image
    Cp = _round_up(C, 128)
    Coutp = _round_up(Cout, 128)
    tn = _pick_tn(Coutp)
    n_j = Coutp // tn

    if tq is None:
        tq = 512 if Q >= 4096 else 256           # big tiles amortize step cost
    tq = min(tq, _round_up(Q, 16))
    Qp = _round_up(Q, tq)
    n_qb = Qp // tq
    halo = _round_up(2 * WP + 2, 16)             # max tap row offset, rounded
    Lp = Qp + halo                               # flat rows the last window reads

    # Single fused pad+cast into the flat, zero-ring-padded, channel-padded
    # bf16 layout (one HBM pass; the reshape below is layout-free).
    Htot = -(-Lp // WP)
    xf = jnp.pad(x_nhwc.astype(jnp.bfloat16),
                 ((0, 0), (1, Htot - H - 1), (1, 1), (0, Cp - C)))
    xf = xf.reshape(B, Htot * WP, Cp)

    # Weights as (ky, kx*Cin, Cout): kernel row ky is one deep (K=3*Cin) matmul.
    wk = jnp.transpose(conv_w, (2, 3, 1, 0))                      # (3,3,Cin,Cout)
    wk = jnp.pad(wk, ((0, 0), (0, 0), (0, Cp - C), (0, Coutp - Cout)))
    wk = wk.reshape(3, 3 * Cp, Coutp).astype(jnp.bfloat16)

    kernel = functools.partial(_conv3x3_stats_kernel,
                               wp=WP, w_valid=W, q_valid=Q, tq=tq, halo=halo)

    y, stats = pl.pallas_call(
        kernel,
        out_shape=(
            jax.ShapeDtypeStruct((B, Qp, Coutp), jnp.bfloat16),
            jax.ShapeDtypeStruct((B, n_qb, 2, Coutp), jnp.float32),
        ),
        grid_spec=pltpu.PrefetchScalarGridSpec(
            num_scalar_prefetch=0,
            # qb innermost so the manual window prefetch walks the image
            # sequentially for each (image, cout-tile) pair.
            grid=(B, n_j, n_qb),
            in_specs=[
                _single_buffered((3, 3 * Cp, tn), lambda n, j, qb: (0, 0, j)),
                pl.BlockSpec(memory_space=pl.ANY),
            ],
            out_specs=(
                pl.BlockSpec((None, tq, tn), lambda n, j, qb: (n, qb, j)),
                pl.BlockSpec((None, None, 2, tn), lambda n, j, qb: (n, qb, 0, j)),
            ),
            scratch_shapes=[
                pltpu.VMEM((2, tq + halo, Cp), jnp.bfloat16),   # 2-slot window
                pltpu.SemaphoreType.DMA((2,)),
            ],
        ),
        compiler_params=pltpu.CompilerParams(
            # manual cross-step prefetch => qb/j must stay sequential per core;
            # only the batch axis is megacore-parallel.
            dimension_semantics=("parallel", "arbitrary", "arbitrary"),
            vmem_limit_bytes=_vmem_limit_bytes(),
        ),
    )(wk, xf)

    # Tiny per-channel reduction + affine (JAX; O(C)).
    count = float(B * H * W)
    s = jnp.sum(stats[:, :, 0, :Cout], axis=(0, 1))
    sq = jnp.sum(stats[:, :, 1, :Cout], axis=(0, 1))
    mean = s / count
    # TODO(synk): E[x^2]-mean^2 can cancel catastrophically for large-magnitude
    # activations; switch to a centered / Welford pass if this feeds training.
    var = jnp.maximum(sq / count - mean * mean, 0.0)
    inv_std = jax.lax.rsqrt(var + BN_EPS)
    scale = gamma * inv_std
    shift = beta - mean * scale
    scale_p = jnp.pad(scale, (0, Coutp - Cout)).reshape(1, Coutp)
    shift_p = jnp.pad(shift, (0, Coutp - Cout)).reshape(1, Coutp)

    # TODO(synk): write this pass directly into the next conv's ring-padded
    # flat layout (constant row offset WP+1, junk columns re-zeroed) to drop
    # one more pad pass between the two convs.
    out = bn_relu_apply(y.reshape(B * Qp, Coutp), scale_p, shift_p)
    out = out.reshape(B, Qp, Coutp)[:, :Q, :Cout]
    out = out.reshape(B, H, WP, Cout)[:, :, :W, :]
    return out


# ---------------------------------------------------------------------------
# Layer helpers / module forward
# ---------------------------------------------------------------------------
def conv_transpose2x2_s2(x_nhwc, weight, bias):
    """ConvTranspose2d(Cin, Cout, kernel_size=2, stride=2).
    weight: (Cin, Cout, 2, 2) [PyTorch layout]."""
    B, H, W, Cin = x_nhwc.shape
    Cout = weight.shape[1]
    w_mat = jnp.transpose(weight, (0, 2, 3, 1)).reshape(Cin, 4 * Cout)  # (di,dj,oc)
    bias_mat = jnp.tile(bias, 4)
    y = matmul_bias(x_nhwc.reshape(B * H * W, Cin), w_mat, bias_mat)    # bf16
    y = y.reshape(B, H, W, 2, 2, Cout)            # [n, i, j, di, dj, oc]
    y = jnp.transpose(y, (0, 1, 3, 2, 4, 5))      # [n, i, di, j, dj, oc]
    return y.reshape(B, 2 * H, 2 * W, Cout)


def up_forward(params, x1_nchw, x2_nchw, *, conv_tq=None):
    """Forward pass of Up, NCHW in / NCHW out (matching PyTorch)."""
    x1 = jnp.transpose(x1_nchw, (0, 2, 3, 1)).astype(jnp.bfloat16)   # NHWC
    x2 = jnp.transpose(x2_nchw, (0, 2, 3, 1)).astype(jnp.bfloat16)

    x1 = conv_transpose2x2_s2(x1, params["up_w"], params["up_b"])

    diffY = x2.shape[1] - x1.shape[1]
    diffX = x2.shape[2] - x1.shape[2]
    x1 = jnp.pad(
        x1,
        ((0, 0),
         (diffY // 2, diffY - diffY // 2),
         (diffX // 2, diffX - diffX // 2),
         (0, 0)),
    )

    # TODO(synk): feed x2 / x1 as two Cin row-slices of the conv1 weight
    # instead of materializing the channel concat in HBM.
    x = jnp.concatenate([x2, x1], axis=-1)

    # conv biases (c1_b, c2_b) are mathematically cancelled by train-mode BN.
    x = conv3x3_bn_relu(x, params["c1_w"], params["bn1_g"], params["bn1_b"],
                        tq=conv_tq)
    x = conv3x3_bn_relu(x, params["c2_w"], params["bn2_g"], params["bn2_b"],
                        tq=conv_tq)

    return jnp.transpose(x, (0, 3, 1, 2)).astype(jnp.float32)   # back to NCHW


# ---------------------------------------------------------------------------
# Pure-JAX reference (f32, includes the conv biases) for self-validation.
# ---------------------------------------------------------------------------
def up_reference(params, x1_nchw, x2_nchw):
    x1 = jnp.transpose(x1_nchw, (0, 2, 3, 1))
    x2 = jnp.transpose(x2_nchw, (0, 2, 3, 1))
    B, H, W, Cin = x1.shape
    Cmid = params["up_w"].shape[1]
    up = jnp.zeros((B, 2 * H, 2 * W, Cmid), jnp.float32)
    for di in range(2):
        for dj in range(2):
            contrib = jnp.einsum(
                "nhwc,co->nhwo", x1, params["up_w"][:, :, di, dj],
                precision=jax.lax.Precision.HIGHEST) + params["up_b"]
            up = up.at[:, di::2, dj::2, :].set(contrib)
    diffY = x2.shape[1] - up.shape[1]
    diffX = x2.shape[2] - up.shape[2]
    up = jnp.pad(up, ((0, 0), (diffY // 2, diffY - diffY // 2),
                      (diffX // 2, diffX - diffX // 2), (0, 0)))
    x = jnp.concatenate([x2, up], axis=-1)

    def conv_bn_relu_ref(x, w, b, g, be):
        w_hwio = jnp.transpose(w, (2, 3, 1, 0))
        y = jax.lax.conv_general_dilated(
            x, w_hwio, (1, 1), ((1, 1), (1, 1)),
            dimension_numbers=("NHWC", "HWIO", "NHWC"),
            precision=jax.lax.Precision.HIGHEST) + b
        mean = y.mean((0, 1, 2))
        var = y.var((0, 1, 2))
        yn = (y - mean) * jax.lax.rsqrt(var + BN_EPS) * g + be
        return jnp.maximum(yn, 0.0)

    x = conv_bn_relu_ref(x, params["c1_w"], params["c1_b"],
                         params["bn1_g"], params["bn1_b"])
    x = conv_bn_relu_ref(x, params["c2_w"], params["c2_b"],
                         params["bn2_g"], params["bn2_b"])
    return jnp.transpose(x, (0, 3, 1, 2))


def init_params(key, in_channels, out_channels):
    mid = in_channels // 2
    ks = jax.random.split(key, 6)
    return {
        "up_w": 0.1 * jax.random.normal(ks[0], (in_channels, mid, 2, 2), jnp.float32),
        "up_b": 0.05 * jax.random.normal(ks[1], (mid,), jnp.float32),
        "c1_w": 0.1 * jax.random.normal(ks[2], (out_channels, in_channels, 3, 3), jnp.float32),
        "c1_b": 0.05 * jax.random.normal(ks[3], (out_channels,), jnp.float32),
        "bn1_g": jnp.ones((out_channels,), jnp.float32),
        "bn1_b": jnp.zeros((out_channels,), jnp.float32),
        "c2_w": 0.1 * jax.random.normal(ks[4], (out_channels, out_channels, 3, 3), jnp.float32),
        "c2_b": 0.05 * jax.random.normal(ks[5], (out_channels,), jnp.float32),
        "bn2_g": jnp.ones((out_channels,), jnp.float32),
        "bn2_b": jnp.zeros((out_channels,), jnp.float32),
    }


if __name__ == "__main__":
    in_channels, out_channels = 8, 4
    N = 2
    H1 = W1 = 8       # x1 spatial (deep feature)
    H2 = W2 = 16      # x2 spatial (skip connection, 2x larger)

    key = jax.random.PRNGKey(0)
    k1, k2, kp = jax.random.split(key, 3)
    x1 = jax.random.normal(k1, (N, in_channels, H1, W1), jnp.float32)        # NCHW
    x2 = jax.random.normal(k2, (N, in_channels // 2, H2, W2), jnp.float32)   # NCHW
    params = init_params(kp, in_channels, out_channels)

    fwd = jax.jit(functools.partial(up_forward, params))
    out = jax.block_until_ready(fwd(x1, x2))

    assert out.shape == (N, out_channels, H2, W2), out.shape
    assert bool(jnp.all(jnp.isfinite(out)))

    ref = jax.block_until_ready(jax.jit(functools.partial(up_reference, params))(x1, x2))
    max_err = float(jnp.max(jnp.abs(out - ref)))
    assert max_err < 1e-1, max_err   # bf16 MXU path vs f32 reference

    # Exercise the double-buffered halo-DMA path with several row blocks.
    fwd_small = jax.jit(functools.partial(up_forward, params, conv_tq=64))
    out2 = jax.block_until_ready(fwd_small(x1, x2))
    max_err2 = float(jnp.max(jnp.abs(out2 - ref)))
    assert max_err2 < 1e-1, max_err2

    print("KERNEL_OK")
</pallas_src>

<mosaic_0001>
module attributes {stable_mosaic.version = 11 : i64} {
  func.func @_matmul_bias_kernel(%arg0: i32, %arg1: memref<128x128xbf16, #tpu.memory_space<vmem>>, %arg2: memref<128x128xbf16, #tpu.memory_space<vmem>>, %arg3: memref<1x128xf32, #tpu.memory_space<vmem>>, %arg4: memref<128x128xbf16, #tpu.memory_space<vmem>>) attributes {dimension_semantics = [#tpu.dimension_semantics<parallel>], iteration_bounds = array<i64: 1>, scalar_prefetch = 0 : i64, scratch_operands = 0 : i64, tpu.core_type = #tpu.core_type<tc>, window_params = [{transform_indices = @transform_0, window_bounds = array<i64: 128, 128>}, {pipeline_mode = #tpu.pipeline_mode<synchronous>, transform_indices = @transform_1, window_bounds = array<i64: 128, 128>}, {pipeline_mode = #tpu.pipeline_mode<synchronous>, transform_indices = @transform_2, window_bounds = array<i64: 1, 128>}, {transform_indices = @transform_3, window_bounds = array<i64: 128, 128>}]} {
    %c0 = arith.constant 0 : index
    %c0_0 = arith.constant 0 : index
    %0 = vector.load %arg1[%c0, %c0_0] : memref<128x128xbf16, #tpu.memory_space<vmem>>, vector<128x128xbf16>
    %c0_1 = arith.constant 0 : index
    %c0_2 = arith.constant 0 : index
    %1 = vector.load %arg2[%c0_1, %c0_2] : memref<128x128xbf16, #tpu.memory_space<vmem>>, vector<128x128xbf16>
    %cst = arith.constant dense<0.000000e+00> : vector<128x128xf32>
    %2 = tpu.matmul %0, %1, %cst {dimension_numbers = #tpu.dot_dimension_numbers<[1], [0], [0], [1], [0, 0, 1, 1], [], []>} : vector<128x128xbf16>, vector<128x128xbf16>, vector<128x128xf32> -> vector<128x128xf32>
    %c0_3 = arith.constant 0 : index
    %c0_4 = arith.constant 0 : index
    %3 = vector.load %arg3[%c0_3, %c0_4] : memref<1x128xf32, #tpu.memory_space<vmem>>, vector<1x128xf32>
    %4 = vector.broadcast %3 : vector<1x128xf32> to vector<128x128xf32>
    %5 = arith.addf %2, %4 : vector<128x128xf32>
    %6 = arith.truncf %5 : vector<128x128xf32> to vector<128x128xbf16>
    %c0_5 = arith.constant 0 : index
    %c0_6 = arith.constant 0 : index
    %7 = vector.load %arg4[%c0_5, %c0_6] : memref<128x128xbf16, #tpu.memory_space<vmem>>, vector<128x128xbf16>
    tpu.vector_store %arg4[%c0_5, %c0_6], %6 {strides = array<i32>} : memref<128x128xbf16, #tpu.memory_space<vmem>>, vector<128x128xbf16>,
    return
  }
  func.func @transform_0(%arg0: i32) -> (i32, i32) {
    %c0_i32 = arith.constant 0 : i32
    %c0_i32_0 = arith.constant 0 : i32
    return %arg0, %c0_i32 : i32, i32
  }
  func.func @transform_1(%arg0: i32) -> (i32, i32) {
    %c0_i32 = arith.constant 0 : i32
    %c0_i32_0 = arith.constant 0 : i32
    %c0_i32_1 = arith.constant 0 : i32
    return %c0_i32, %c0_i32_0 : i32, i32
  }
  func.func @transform_2(%arg0: i32) -> (i32, i32) {
    %c0_i32 = arith.constant 0 : i32
    %c0_i32_0 = arith.constant 0 : i32
    %c0_i32_1 = arith.constant 0 : i32
    return %c0_i32, %c0_i32_0 : i32, i32
  }
  func.func @transform_3(%arg0: i32) -> (i32, i32) {
    %c0_i32 = arith.constant 0 : i32
    %c0_i32_0 = arith.constant 0 : i32
    return %arg0, %c0_i32 : i32, i32
  }
}

module attributes {stable_mosaic.version = 11 : i64} {
  func.func @_conv3x3_stats_kernel(%arg0: i32, %arg1: i32, %arg2: i32, %arg3: memref<3x384x128xbf16, #tpu.memory_space<vmem>>, %arg4: memref<2x576x128xbf16, #tpu.memory_space<any>>, %arg5: memref<1x256x128xbf16, #tpu.memory_space<vmem>>, %arg6: memref<1x1x2x128xf32, #tpu.memory_space<vmem>>, %arg7: memref<2x304x128xbf16, #tpu.memory_space<vmem>>, %arg8: memref<2x!tpu.dma_semaphore, #tpu.memory_space<semaphore_mem>>) attributes {dimension_semantics = [#tpu.dimension_semantics<parallel>, #tpu.dimension_semantics<arbitrary>, #tpu.dimension_semantics<arbitrary>], iteration_bounds = array<i64: 2, 1, 2>, scalar_prefetch = 0 : i64, scratch_operands = 2 : i64, tpu.core_type = #tpu.core_type<tc>, window_params = [{pipeline_mode = #tpu.pipeline_mode<synchronous>, transform_indices = @transform_0, window_bounds = array<i64: 3, 384, 128>}, {}, {transform_indices = @transform_2, window_bounds = array<i64: 1, 256, 128>}, {transform_indices = @transform_3, window_bounds = array<i64: 1, 1, 2, 128>}]} {
    %c2_i32 = arith.constant 2 : i32
    %c0_i32 = arith.constant 0 : i32
    %0 = arith.cmpi eq, %c2_i32, %c0_i32 : i32
    %c1_i32 = arith.constant 1 : i32
    %1 = arith.select %0, %c1_i32, %c2_i32 : i32
    %2 = arith.remsi %arg2, %1 : i32
    %c0_i32_0 = arith.constant 0 : i32
    %3 = arith.cmpi ne, %2, %c0_i32_0 : i32
    %c0_i32_1 = arith.constant 0 : i32
    %4 = arith.cmpi slt, %2, %c0_i32_1 : i32
    %c0_i32_2 = arith.constant 0 : i32
    %5 = arith.cmpi slt, %1, %c0_i32_2 : i32
    %6 = arith.xori %4, %5 : i1
    %7 = arith.andi %6, %3 : i1
    %8 = arith.addi %2, %1 : i32
    %9 = arith.select %7, %8, %2 : i32
    %c0_i32_3 = arith.constant 0 : i32
    %10 = arith.cmpi eq, %arg2, %c0_i32_3 : i32
    %11 = arith.extui %10 : i1 to i32
    %c0_i32_4 = arith.constant 0 : i32
    %12 = arith.cmpi ne, %11, %c0_i32_4 : i32
    scf.if %12 {
      %c0_i32_69 = arith.constant 0 : i32
      %110 = tpu.assume_multiple %c0_i32_69, 256 : i32
      %c0_i32_70 = arith.constant 0 : i32
      %c0_i32_71 = arith.constant 0 : i32
      %c0_i32_72 = arith.constant 0 : i32
      %111 = tpu.memref_slice %arg4[%arg0, %110, %c0_i32_72] : memref<2x576x128xbf16, #tpu.memory_space<any>> -> memref<1x304x128xbf16, #tpu.memory_space<any>>
      %112 = tpu.memref_squeeze %111 : memref<1x304x128xbf16, #tpu.memory_space<any>> -> memref<304x128xbf16, #tpu.memory_space<any>>
      %c0_i32_73 = arith.constant 0 : i32
      %c0_i32_74 = arith.constant 0 : i32
      %113 = tpu.memref_slice %arg7[%c0_i32_70, %c0_i32_73, %c0_i32_74] : memref<2x304x128xbf16, #tpu.memory_space<vmem>> -> memref<1x304x128xbf16, #tpu.memory_space<vmem>>
      %114 = tpu.memref_squeeze %113 : memref<1x304x128xbf16, #tpu.memory_space<vmem>> -> memref<304x128xbf16, #tpu.memory_space<vmem>>
      %115 = tpu.memref_slice %arg8[%c0_i32_71] : memref<2x!tpu.dma_semaphore, #tpu.memory_space<semaphore_mem>> -> memref<1x!tpu.dma_semaphore, #tpu.memory_space<semaphore_mem>>
      %116 = tpu.memref_squeeze %115 : memref<1x!tpu.dma_semaphore, #tpu.memory_space<semaphore_mem>> -> memref<!tpu.dma_semaphore, #tpu.memory_space<semaphore_mem>>
      tpu.enqueue_dma source(%112 : memref<304x128xbf16, #tpu.memory_space<any>>) target(%114 : memref<304x128xbf16, #tpu.memory_space<vmem>>) target_semaphore(%116 : memref<!tpu.dma_semaphore, #tpu.memory_space<semaphore_mem>>)
    } else {
    }
    %c256_i32 = arith.constant 256 : i32
    %13 = arith.muli %arg2, %c256_i32 : i32
    %14 = tpu.assume_multiple %13, 256 : i32
    %c0_i32_5 = arith.constant 0 : i32
    %15 = tpu.memref_slice %arg4[%arg0, %14, %c0_i32_5] : memref<2x576x128xbf16, #tpu.memory_space<any>> -> memref<1x304x128xbf16, #tpu.memory_space<any>>
    %16 = tpu.memref_squeeze %15 : memref<1x304x128xbf16, #tpu.memory_space<any>> -> memref<304x128xbf16, #tpu.memory_space<any>>
    %c0_i32_6 = arith.constant 0 : i32
    %c0_i32_7 = arith.constant 0 : i32
    %17 = tpu.memref_slice %arg7[%9, %c0_i32_6, %c0_i32_7] : memref<2x304x128xbf16, #tpu.memory_space<vmem>> -> memref<1x304x128xbf16, #tpu.memory_space<vmem>>
    %18 = tpu.memref_squeeze %17 : memref<1x304x128xbf16, #tpu.memory_space<vmem>> -> memref<304x128xbf16, #tpu.memory_space<vmem>>
    %19 = tpu.memref_slice %arg8[%9] : memref<2x!tpu.dma_semaphore, #tpu.memory_space<semaphore_mem>> -> memref<1x!tpu.dma_semaphore, #tpu.memory_space<semaphore_mem>>
    %20 = tpu.memref_squeeze %19 : memref<1x!tpu.dma_semaphore, #tpu.memory_space<semaphore_mem>> -> memref<!tpu.dma_semaphore, #tpu.memory_space<semaphore_mem>>
    tpu.wait_dma2 semaphore(%20 : memref<!tpu.dma_semaphore, #tpu.memory_space<semaphore_mem>>) src(%16 : memref<304x128xbf16, #tpu.memory_space<any>>) dst(%18 : memref<304x128xbf16, #tpu.memory_space<vmem>>)
    %c1_i32_8 = arith.constant 1 : i32
    %21 = arith.addi %arg2, %c1_i32_8 : i32
    %c2_i32_9 = arith.constant 2 : i32
    %22 = arith.cmpi slt, %21, %c2_i32_9 : i32
    %23 = arith.extui %22 : i1 to i32
    %c0_i32_10 = arith.constant 0 : i32
    %24 = arith.cmpi ne, %23, %c0_i32_10 : i32
    scf.if %24 {
      %c1_i32_69 = arith.constant 1 : i32
      %110 = arith.addi %arg2, %c1_i32_69 : i32
      %c1_i32_70 = arith.constant 1 : i32
      %111 = arith.subi %c1_i32_70, %9 : i32
      %c256_i32_71 = arith.constant 256 : i32
      %112 = arith.muli %110, %c256_i32_71 : i32
      %113 = tpu.assume_multiple %112, 256 : i32
      %c0_i32_72 = arith.constant 0 : i32
      %114 = tpu.memref_slice %arg4[%arg0, %113, %c0_i32_72] : memref<2x576x128xbf16, #tpu.memory_space<any>> -> memref<1x304x128xbf16, #tpu.memory_space<any>>
      %115 = tpu.memref_squeeze %114 : memref<1x304x128xbf16, #tpu.memory_space<any>> -> memref<304x128xbf16, #tpu.memory_space<any>>
      %c0_i32_73 = arith.constant 0 : i32
      %c0_i32_74 = arith.constant 0 : i32
      %116 = tpu.memref_slice %arg7[%111, %c0_i32_73, %c0_i32_74] : memref<2x304x128xbf16, #tpu.memory_space<vmem>> -> memref<1x304x128xbf16, #tpu.memory_space<vmem>>
      %117 = tpu.memref_squeeze %116 : memref<1x304x128xbf16, #tpu.memory_space<vmem>> -> memref<304x128xbf16, #tpu.memory_space<vmem>>
      %118 = tpu.memref_slice %arg8[%111] : memref<2x!tpu.dma_semaphore, #tpu.memory_space<semaphore_mem>> -> memref<1x!tpu.dma_semaphore, #tpu.memory_space<semaphore_mem>>
      %119 = tpu.memref_squeeze %118 : memref<1x!tpu.dma_semaphore, #tpu.memory_space<semaphore_mem>> -> memref<!tpu.dma_semaphore, #tpu.memory_space<semaphore_mem>>
      tpu.enqueue_dma source(%115 : memref<304x128xbf16, #tpu.memory_space<any>>) target(%117 : memref<304x128xbf16, #tpu.memory_space<vmem>>) target_semaphore(%119 : memref<!tpu.dma_semaphore, #tpu.memory_space<semaphore_mem>>)
    } else {
    }
    %c0_i32_11 = arith.constant 0 : i32
    %c0_i32_12 = arith.constant 0 : i32
    %25 = tpu.memref_slice %arg7[%9, %c0_i32_11, %c0_i32_12] : memref<2x304x128xbf16, #tpu.memory_space<vmem>> -> memref<1x304x128xbf16, #tpu.memory_space<vmem>>
    %26 = tpu.memref_squeeze %25 : memref<1x304x128xbf16, #tpu.memory_space<vmem>> -> memref<304x128xbf16, #tpu.memory_space<vmem>>
    %c0 = arith.constant 0 : index
    %c0_13 = arith.constant 0 : index
    %27 = vector.load %26[%c0, %c0_13] : memref<304x128xbf16, #tpu.memory_space<vmem>>, vector<256x128xbf16>
    %c0_i32_14 = arith.constant 0 : i32
    %c0_i32_15 = arith.constant 0 : i32
    %28 = tpu.memref_slice %arg7[%9, %c0_i32_14, %c0_i32_15] : memref<2x304x128xbf16, #tpu.memory_space<vmem>> -> memref<1x304x128xbf16, #tpu.memory_space<vmem>>
    %29 = tpu.memref_squeeze %28 : memref<1x304x128xbf16, #tpu.memory_space<vmem>> -> memref<304x128xbf16, #tpu.memory_space<vmem>>
    %c1 = arith.constant 1 : index
    %c0_16 = arith.constant 0 : index
    %30 = vector.load %29[%c1, %c0_16] : memref<304x128xbf16, #tpu.memory_space<vmem>>, vector<256x128xbf16>
    %c0_i32_17 = arith.constant 0 : i32
    %c0_i32_18 = arith.constant 0 : i32
    %31 = tpu.memref_slice %arg7[%9, %c0_i32_17, %c0_i32_18] : memref<2x304x128xbf16, #tpu.memory_space<vmem>> -> memref<1x304x128xbf16, #tpu.memory_space<vmem>>
    %32 = tpu.memref_squeeze %31 : memref<1x304x128xbf16, #tpu.memory_space<vmem>> -> memref<304x128xbf16, #tpu.memory_space<vmem>>
    %c2 = arith.constant 2 : index
    %c0_19 = arith.constant 0 : index
    %33 = vector.load %32[%c2, %c0_19] : memref<304x128xbf16, #tpu.memory_space<vmem>>, vector<256x128xbf16>
    %34 = tpu.concatenate %27, %30, %33 in 1 : vector<256x128xbf16>, vector<256x128xbf16>, vector<256x128xbf16> -> vector<256x384xbf16>
    %c0_20 = arith.constant 0 : index
    %c0_21 = arith.constant 0 : index
    %c0_22 = arith.constant 0 : index
    %35 = vector.load %arg3[%c0_20, %c0_21, %c0_22] : memref<3x384x128xbf16, #tpu.memory_space<vmem>>, vector<1x384x128xbf16>
    %36 = vector.shape_cast %35 : vector<1x384x128xbf16> to vector<384x128xbf16>
    %cst = arith.constant dense<0.000000e+00> : vector<256x128xf32>
    %37 = tpu.matmul %34, %36, %cst {dimension_numbers = #tpu.dot_dimension_numbers<[1], [0], [0], [1], [0, 0, 1, 1], [], []>} : vector<256x384xbf16>, vector<384x128xbf16>, vector<256x128xf32> -> vector<256x128xf32>
    %c0_i32_23 = arith.constant 0 : i32
    %c0_i32_24 = arith.constant 0 : i32
    %38 = tpu.memref_slice %arg7[%9, %c0_i32_23, %c0_i32_24] : memref<2x304x128xbf16, #tpu.memory_space<vmem>> -> memref<1x304x128xbf16, #tpu.memory_space<vmem>>
    %39 = tpu.memref_squeeze %38 : memref<1x304x128xbf16, #tpu.memory_space<vmem>> -> memref<304x128xbf16, #tpu.memory_space<vmem>>
    %c18 = arith.constant 18 : index
    %c0_25 = arith.constant 0 : index
    %40 = vector.load %39[%c18, %c0_25] : memref<304x128xbf16, #tpu.memory_space<vmem>>, vector<256x128xbf16>
    %c0_i32_26 = arith.constant 0 : i32
    %c0_i32_27 = arith.constant 0 : i32
    %41 = tpu.memref_slice %arg7[%9, %c0_i32_26, %c0_i32_27] : memref<2x304x128xbf16, #tpu.memory_space<vmem>> -> memref<1x304x128xbf16, #tpu.memory_space<vmem>>
    %42 = tpu.memref_squeeze %41 : memref<1x304x128xbf16, #tpu.memory_space<vmem>> -> memref<304x128xbf16, #tpu.memory_space<vmem>>
    %c19 = arith.constant 19 : index
    %c0_28 = arith.constant 0 : index
    %43 = vector.load %42[%c19, %c0_28] : memref<304x128xbf16, #tpu.memory_space<vmem>>, vector<256x128xbf16>
    %c0_i32_29 = arith.constant 0 : i32
    %c0_i32_30 = arith.constant 0 : i32
    %44 = tpu.memref_slice %arg7[%9, %c0_i32_29, %c0_i32_30] : memref<2x304x128xbf16, #tpu.memory_space<vmem>> -> memref<1x304x128xbf16, #tpu.memory_space<vmem>>
    %45 = tpu.memref_squeeze %44 : memref<1x304x128xbf16, #tpu.memory_space<vmem>> -> memref<304x128xbf16, #tpu.memory_space<vmem>>
    %c20 = arith.constant 20 : index
    %c0_31 = arith.constant 0 : index
    %46 = vector.load %45[%c20, %c0_31] : memref<304x128xbf16, #tpu.memory_space<vmem>>, vector<256x128xbf16>
    %47 = tpu.concatenate %40, %43, %46 in 1 : vector<256x128xbf16>, vector<256x128xbf16>, vector<256x128xbf16> -> vector<256x384xbf16>
    %c1_32 = arith.constant 1 : index
    %c0_33 = arith.constant 0 : index
    %c0_34 = arith.constant 0 : index
    %48 = vector.load %arg3[%c1_32, %c0_33, %c0_34] : memref<3x384x128xbf16, #tpu.memory_space<vmem>>, vector<1x384x128xbf16>
    %49 = vector.shape_cast %48 : vector<1x384x128xbf16> to vector<384x128xbf16>
    %cst_35 = arith.constant dense<0.000000e+00> : vector<256x128xf32>
    %50 = tpu.matmul %47, %49, %cst_35 {dimension_numbers = #tpu.dot_dimension_numbers<[1], [0], [0], [1], [0, 0, 1, 1], [], []>} : vector<256x384xbf16>, vector<384x128xbf16>, vector<256x128xf32> -> vector<256x128xf32>
    %51 = arith.addf %37, %50 : vector<256x128xf32>
    %c0_i32_36 = arith.constant 0 : i32
    %c0_i32_37 = arith.constant 0 : i32
    %52 = tpu.memref_slice %arg7[%9, %c0_i32_36, %c0_i32_37] : memref<2x304x128xbf16, #tpu.memory_space<vmem>> -> memref<1x304x128xbf16, #tpu.memory_space<vmem>>
    %53 = tpu.memref_squeeze %52 : memref<1x304x128xbf16, #tpu.memory_space<vmem>> -> memref<304x128xbf16, #tpu.memory_space<vmem>>
    %c36 = arith.constant 36 : index
    %c0_38 = arith.constant 0 : index
    %54 = vector.load %53[%c36, %c0_38] : memref<304x128xbf16, #tpu.memory_space<vmem>>, vector<256x128xbf16>
    %c0_i32_39 = arith.constant 0 : i32
    %c0_i32_40 = arith.constant 0 : i32
    %55 = tpu.memref_slice %arg7[%9, %c0_i32_39, %c0_i32_40] : memref<2x304x128xbf16, #tpu.memory_space<vmem>> -> memref<1x304x128xbf16, #tpu.memory_space<vmem>>
    %56 = tpu.memref_squeeze %55 : memref<1x304x128xbf16, #tpu.memory_space<vmem>> -> memref<304x128xbf16, #tpu.memory_space<vmem>>
    %c37 = arith.constant 37 : index
    %c0_41 = arith.constant 0 : index
    %57 = vector.load %56[%c37, %c0_41] : memref<304x128xbf16, #tpu.memory_space<vmem>>, vector<256x128xbf16>
    %c0_i32_42 = arith.constant 0 : i32
    %c0_i32_43 = arith.constant 0 : i32
    %58 = tpu.memref_slice %arg7[%9, %c0_i32_42, %c0_i32_43] : memref<2x304x128xbf16, #tpu.memory_space<vmem>> -> memref<1x304x128xbf16, #tpu.memory_space<vmem>>
    %59 = tpu.memref_squeeze %58 : memref<1x304x128xbf16, #tpu.memory_space<vmem>> -> memref<304x128xbf16, #tpu.memory_space<vmem>>
    %c38 = arith.constant 38 : index
    %c0_44 = arith.constant 0 : index
    %60 = vector.load %59[%c38, %c0_44] : memref<304x128xbf16, #tpu.memory_space<vmem>>, vector<256x128xbf16>
    %61 = tpu.concatenate %54, %57, %60 in 1 : vector<256x128xbf16>, vector<256x128xbf16>, vector<256x128xbf16> -> vector<256x384xbf16>
    %c2_45 = arith.constant 2 : index
    %c0_46 = arith.constant 0 : index
    %c0_47 = arith.constant 0 : index
    %62 = vector.load %arg3[%c2_45, %c0_46, %c0_47] : memref<3x384x128xbf16, #tpu.memory_space<vmem>>, vector<1x384x128xbf16>
    %63 = vector.shape_cast %62 : vector<1x384x128xbf16> to vector<384x128xbf16>
    %cst_48 = arith.constant dense<0.000000e+00> : vector<256x128xf32>
    %64 = tpu.matmul %61, %63, %cst_48 {dimension_numbers = #tpu.dot_dimension_numbers<[1], [0], [0], [1], [0, 0, 1, 1], [], []>} : vector<256x384xbf16>, vector<384x128xbf16>, vector<256x128xf32> -> vector<256x128xf32>
    %65 = arith.addf %51, %64 : vector<256x128xf32>
    %c256_i32_49 = arith.constant 256 : i32
    %66 = arith.muli %arg2, %c256_i32_49 : i32
    %67 = tpu.iota {dimensions = array<i32: 0>} : vector<256x1xi32>
    %68 = vector.broadcast %66 : i32 to vector<256x1xi32>
    %69 = arith.addi %68, %67 : vector<256x1xi32>
    %c288_i32 = arith.constant 288 : i32
    %70 = vector.broadcast %c288_i32 : i32 to vector<256x1xi32>
    %71 = arith.cmpi slt, %69, %70 : vector<256x1xi32>
    %c18_i32 = arith.constant 18 : i32
    %c0_i32_50 = arith.constant 0 : i32
    %72 = arith.cmpi eq, %c18_i32, %c0_i32_50 : i32
    %c1_i32_51 = arith.constant 1 : i32
    %73 = arith.select %72, %c1_i32_51, %c18_i32 : i32
    %74 = vector.broadcast %73 : i32 to vector<256x1xi32>
    %75 = arith.remsi %69, %74 : vector<256x1xi32>
    %c0_i32_52 = arith.constant 0 : i32
    %76 = vector.broadcast %c0_i32_52 : i32 to vector<256x1xi32>
    %77 = arith.cmpi ne, %75, %76 : vector<256x1xi32>
    %c0_i32_53 = arith.constant 0 : i32
    %78 = vector.broadcast %c0_i32_53 : i32 to vector<256x1xi32>
    %79 = arith.cmpi slt, %75, %78 : vector<256x1xi32>
    %c0_i32_54 = arith.constant 0 : i32
    %80 = arith.cmpi slt, %73, %c0_i32_54 : i32
    %81 = vector.broadcast %80 : i1 to vector<256x1xi1>
    %82 = vector.broadcast %81 : vector<256x1xi1> to vector<256x1xi1>
    %83 = arith.xori %79, %82 : vector<256x1xi1>
    %84 = arith.andi %83, %77 : vector<256x1xi1>
    %85 = vector.broadcast %73 : i32 to vector<256x1xi32>
    %86 = arith.addi %75, %85 : vector<256x1xi32>
    %87 = arith.select %84, %86, %75 : vector<256x1xi1>, vector<256x1xi32>
    %c16_i32 = arith.constant 16 : i32
    %88 = vector.broadcast %c16_i32 : i32 to vector<256x1xi32>
    %89 = arith.cmpi slt, %87, %88 : vector<256x1xi32>
    %90 = arith.andi %71, %89 : vector<256x1xi1>
    %cst_55 = arith.constant 0.000000e+00 : f32
    %91 = vector.shape_cast %90 : vector<256x1xi1> to vector<256x1xi1>
    %92 = vector.broadcast %91 : vector<256x1xi1> to vector<256x128xi1>
    %93 = vector.broadcast %cst_55 : f32 to vector<256x128xf32>
    %94 = arith.select %92, %65, %93 : vector<256x128xi1>, vector<256x128xf32>
    %cst_56 = arith.constant dense<0.000000e+00> : vector<128xf32>
    %95 = vector.multi_reduction <add>, %94, %cst_56 [0] : vector<256x128xf32> to vector<128xf32>
    %96 = vector.shape_cast %95 : vector<128xf32> to vector<1x128xf32>
    %c0_57 = arith.constant 0 : index
    %c0_58 = arith.constant 0 : index
    %c0_59 = arith.constant 0 : index
    %c0_60 = arith.constant 0 : index
    %97 = vector.load %arg6[%c0_57, %c0_58, %c0_59, %c0_60] : memref<1x1x2x128xf32, #tpu.memory_space<vmem>>, vector<1x1x1x128xf32>
    %98 = vector.shape_cast %97 : vector<1x1x1x128xf32> to vector<1x128xf32>
    %99 = vector.shape_cast %96 : vector<1x128xf32> to vector<1x1x1x128xf32>
    tpu.vector_store %arg6[%c0_57, %c0_58, %c0_59, %c0_60], %99 {strides = array<i32>} : memref<1x1x2x128xf32, #tpu.memory_space<vmem>>, vector<1x1x1x128xf32>,
    %100 = arith.mulf %94, %65 : vector<256x128xf32>
    %cst_61 = arith.constant dense<0.000000e+00> : vector<128xf32>
    %101 = vector.multi_reduction <add>, %100, %cst_61 [0] : vector<256x128xf32> to vector<128xf32>
    %102 = vector.shape_cast %101 : vector<128xf32> to vector<1x128xf32>
    %c0_62 = arith.constant 0 : index
    %c0_63 = arith.constant 0 : index
    %c1_64 = arith.constant 1 : index
    %c0_65 = arith.constant 0 : index
    %103 = vector.load %arg6[%c0_62, %c0_63, %c1_64, %c0_65] : memref<1x1x2x128xf32, #tpu.memory_space<vmem>>, vector<1x1x1x128xf32>
    %104 = vector.shape_cast %103 : vector<1x1x1x128xf32> to vector<1x128xf32>
    %105 = vector.shape_cast %102 : vector<1x128xf32> to vector<1x1x1x128xf32>
    tpu.vector_store %arg6[%c0_62, %c0_63, %c1_64, %c0_65], %105 {strides = array<i32>} : memref<1x1x2x128xf32, #tpu.memory_space<vmem>>, vector<1x1x1x128xf32>,
    %106 = arith.truncf %65 : vector<256x128xf32> to vector<256x128xbf16>
    %c0_66 = arith.constant 0 : index
    %c0_67 = arith.constant 0 : index
    %c0_68 = arith.constant 0 : index
    %107 = vector.load %arg5[%c0_66, %c0_67, %c0_68] : memref<1x256x128xbf16, #tpu.memory_space<vmem>>, vector<1x256x128xbf16>
    %108 = vector.shape_cast %107 : vector<1x256x128xbf16> to vector<256x128xbf16>
    %109 = vector.shape_cast %106 : vector<256x128xbf16> to vector<1x256x128xbf16>
    tpu.vector_store %arg5[%c0_66, %c0_67, %c0_68], %109 {strides = array<i32>} : memref<1x256x128xbf16, #tpu.memory_space<vmem>>, vector<1x256x128xbf16>,
    return
  }
  func.func @transform_0(%arg0: i32, %arg1: i32, %arg2: i32) -> (i32, i32, i32) {
    %c0_i32 = arith.constant 0 : i32
    %c0_i32_0 = arith.constant 0 : i32
    %c0_i32_1 = arith.constant 0 : i32
    return %c0_i32, %c0_i32_0, %arg1 : i32, i32, i32
  }
  func.func @transform_2(%arg0: i32, %arg1: i32, %arg2: i32) -> (i32, i32, i32) {
    %c0_i32 = arith.constant 0 : i32
    return %arg0, %arg2, %arg1 : i32, i32, i32
  }
  func.func @transform_3(%arg0: i32, %arg1: i32, %arg2: i32) -> (i32, i32, i32, i32) {
    %c0_i32 = arith.constant 0 : i32
    %c0_i32_0 = arith.constant 0 : i32
    return %arg0, %arg2, %c0_i32, %arg1 : i32, i32, i32, i32
  }
}

module attributes {stable_mosaic.version = 11 : i64} {
  func.func @_bn_relu_kernel(%arg0: i32, %arg1: memref<512x128xbf16, #tpu.memory_space<vmem>>, %arg2: memref<1x128xf32, #tpu.memory_space<vmem>>, %arg3: memref<1x128xf32, #tpu.memory_space<vmem>>, %arg4: memref<512x128xbf16, #tpu.memory_space<vmem>>) attributes {dimension_semantics = [#tpu.dimension_semantics<parallel>], iteration_bounds = array<i64: 2>, scalar_prefetch = 0 : i64, scratch_operands = 0 : i64, tpu.core_type = #tpu.core_type<tc>, window_params = [{transform_indices = @transform_0, window_bounds = array<i64: 512, 128>}, {pipeline_mode = #tpu.pipeline_mode<synchronous>, transform_indices = @transform_1, window_bounds = array<i64: 1, 128>}, {pipeline_mode = #tpu.pipeline_mode<synchronous>, transform_indices = @transform_2, window_bounds = array<i64: 1, 128>}, {transform_indices = @transform_3, window_bounds = array<i64: 512, 128>}]} {
    %c0 = arith.constant 0 : index
    %c0_0 = arith.constant 0 : index
    %0 = vector.load %arg1[%c0, %c0_0] : memref<512x128xbf16, #tpu.memory_space<vmem>>, vector<512x128xbf16>
    %1 = arith.extf %0 : vector<512x128xbf16> to vector<512x128xf32>
    %c0_1 = arith.constant 0 : index
    %c0_2 = arith.constant 0 : index
    %2 = vector.load %arg2[%c0_1, %c0_2] : memref<1x128xf32, #tpu.memory_space<vmem>>, vector<1x128xf32>
    %3 = vector.broadcast %2 : vector<1x128xf32> to vector<512x128xf32>
    %4 = arith.mulf %1, %3 : vector<512x128xf32>
    %c0_3 = arith.constant 0 : index
    %c0_4 = arith.constant 0 : index
    %5 = vector.load %arg3[%c0_3, %c0_4] : memref<1x128xf32, #tpu.memory_space<vmem>>, vector<1x128xf32>
    %6 = vector.broadcast %5 : vector<1x128xf32> to vector<512x128xf32>
    %7 = arith.addf %4, %6 : vector<512x128xf32>
    %cst = arith.constant 0.000000e+00 : f32
    %8 = vector.broadcast %cst : f32 to vector<512x128xf32>
    %9 = arith.maximumf %7, %8 : vector<512x128xf32>
    %10 = arith.truncf %9 : vector<512x128xf32> to vector<512x128xbf16>
    %c0_5 = arith.constant 0 : index
    %c0_6 = arith.constant 0 : index
    %11 = vector.load %arg4[%c0_5, %c0_6] : memref<512x128xbf16, #tpu.memory_space<vmem>>, vector<512x128xbf16>
    tpu.vector_store %arg4[%c0_5, %c0_6], %10 {strides = array<i32>} : memref<512x128xbf16, #tpu.memory_space<vmem>>, vector<512x128xbf16>,
    return
  }
  func.func @transform_0(%arg0: i32) -> (i32, i32) {
    %c0_i32 = arith.constant 0 : i32
    %c0_i32_0 = arith.constant 0 : i32
    return %arg0, %c0_i32 : i32, i32
  }
  func.func @transform_1(%arg0: i32) -> (i32, i32) {
    %c0_i32 = arith.constant 0 : i32
    %c0_i32_0 = arith.constant 0 : i32
    %c0_i32_1 = arith.constant 0 : i32
    return %c0_i32, %c0_i32_0 : i32, i32
  }
  func.func @transform_2(%arg0: i32) -> (i32, i32) {
    %c0_i32 = arith.constant 0 : i32
    %c0_i32_0 = arith.constant 0 : i32
    %c0_i32_1 = arith.constant 0 : i32
    return %c0_i32, %c0_i32_0 : i32, i32
  }
  func.func @transform_3(%arg0: i32) -> (i32, i32) {
    %c0_i32 = arith.constant 0 : i32
    %c0_i32_0 = arith.constant 0 : i32
    return %arg0, %c0_i32 : i32, i32
  }
}

</mosaic_0001>

<bundles_post_ra>
// kernel: tile.6
= control target key start
LH: loop header
LB: loop body
LE: loop exit
PB: predicated region body
PF: predicated region fallthrough
CT: control target
= control target key end

     0   :  { %s22_s0 = inlined_call_operand.vmem [shape: f32[4], index: 0, kind: input, shape index: {}]   ;;  %s23_s1 = inlined_call_operand.vmem [shape: f32[4,4], index: 1, kind: output, shape index: {}]  }
   0x1   :  { %v4_v0 = vld [vmem:[%s22_s0] ss:$0 sm:$0xff] }
   0x2   :  { %5 = vst [vmem:[%s23_s1] sm:$0xf] %v4_v0 }

// kernel: tile.7
= control target key start
LH: loop header
LB: loop body
LE: loop exit
PB: predicated region body
PF: predicated region fallthrough
CT: control target
= control target key end

     0   :  { %s37_s8 = smov 4   ;;  %s38_s9 = smov 8   ;;  %vm7_vm0 = vcmask 31744   ;;  %vm13_vm1 = vcmask 130144   ;;  %vm19_vm2 = vcmask 97344   ;;  %vm25_vm3 = vcmask 64544   ;;  %s55_s0 = inlined_call_operand.vmem [shape: f32[4,4], index: 0, kind: input, shape index: {}]   ;;  %s56_s1 = inlined_call_operand.vmem [shape: f32[16], index: 1, kind: output, shape index: {}]  }
   0x1   :  { %v4_v0 = vld [vmem:[%s55_s0] sm:$0xf]  ;;  %s36_s0 = smov 12  }
   0x2   :  { %5 = vst [vmem:[#allocation1] sm:$0xf] %v4_v0 }
   0x9   :  { %v10_v1 = vld [vmem:[#allocation1 + $0x3] sm:$0x1]   ;;  %v22_v2 = vld [vmem:[#allocation1 + $0x1] sm:$0x1]   ;;  %v16_v3 = vld [vmem:[#allocation1 + $0x2] sm:$0x1]  }
   0xa   :  { %11 = vrot.lane.b32.xlu0 %v10_v1, %s36_s0  ;;  %23 = vrot.lane.b32.xlu1 %v22_v2, %s37_s8  ;;  %v6_v4 = vld [vmem:[#allocation1] sm:$0x1]  }
   0xb   :  { %8 = vst.msk [vmem:[#allocation0] sm:$0x1] %vm7_vm0, %v6_v4  }
  0x12   :  { %17 = vrot.lane.b32.xlu0 %v16_v3, %s38_s9 }
  0x7c   :  { %v12_v5 = vpop.permute.xlu0 %11   ;;  %v24_v6 = vpop.permute.xlu1 %23  }
  0x7d   :  { %14 = vst.msk [vmem:[#allocation0] sm:$0x1] %vm13_vm1, %v12_v5  }
  0x84   :  { %v18_v7 = vpop.permute.xlu0 %17  }
  0x85   :  { %20 = vst.msk [vmem:[#allocation0] sm:$0x1] %vm19_vm2, %v18_v7  }
  0x86   :  { %26 = vst.msk [vmem:[#allocation0] sm:$0x1] %vm25_vm3, %v24_v6  }
  0x8d   :  { %v29_v8 = vld [vmem:[#allocation0] sm:$0x1] }
  0x8e   :  { %32 = vst [vmem:[%s56_s1] sm:$0x1] %v29_v8 }

// kernel: up_forward.5
= control target key start
LH: loop header
LB: loop body
LE: loop exit
PB: predicated region body
PF: predicated region fallthrough
CT: control target
= control target key end

     0   :  { %s478_s1 = inlined_call_operand.vmem [shape: bf16[128,128], index: 1, kind: input, shape index: {}]   ;;  %s479_s2 = inlined_call_operand.vmem [shape: f32[1,128], index: 2, kind: input, shape index: {}]   ;;  %s480_s0 = inlined_call_operand.vmem [shape: bf16[128,128], index: 0, kind: input, shape index: {}]   ;;  %s481_s3 = inlined_call_operand.vmem [shape: bf16[128,128], index: 3, kind: output, shape index: {}]  }
   0x1   :  { %v310_v0 = vld [vmem:[%s478_s1 + $0x38] sm:$0xff]  ;;  %v309_v1 = vld [vmem:[%s478_s1 + $0x30] sm:$0xff]  ;;  %v308_v2 = vld [vmem:[%s478_s1 + $0x28] sm:$0xff] }
   0x2   :  { %146 = vmatpush.bf16.msra.mxu0 %v310_v0  ;;  %358 = vmatpush.bf16.msra.mxu1 %v310_v0  ;;  %v307_v3 = vld [vmem:[%s478_s1 + $0x20] sm:$0xff]  ;;  %v306_v4 = vld [vmem:[%s478_s1 + $0x18] sm:$0xff]  ;;  %v305_v5 = vld [vmem:[%s478_s1 + $0x10] sm:$0xff] }
   0x3   :  { %359 = vmatpush.bf16.msra.mxu2 %v310_v0  ;;  %360 = vmatpush.bf16.msra.mxu3 %v310_v0  ;;  %v304_v6 = vld [vmem:[%s478_s1 + $0x8] sm:$0xff]  ;;  %v303_v7 = vld [vmem:[%s478_s1] sm:$0xff]  ;;  %v297_v9 = vld [vmem:[%s480_s0 + $0x10] sm:$0xff] }
   0x4   :  { %v295_v8 = vld [vmem:[%s480_s0] sm:$0xff]  ;;  %v301_v11 = vld [vmem:[%s480_s0 + $0x30] sm:$0xff]  ;;  %v296_v12 = vld [vmem:[%s480_s0 + $0x8] sm:$0xff] }
   0x5   :  { %v299_v10 = vld [vmem:[%s480_s0 + $0x20] sm:$0xff]  ;;  %v298_v13 = vld [vmem:[%s480_s0 + $0x18] sm:$0xff]  ;;  %v300_v14 = vld [vmem:[%s480_s0 + $0x28] sm:$0xff] }
   0x6   :  { %147 = vmatpush.bf16.msra.mxu0 %v309_v1  ;;  %361 = vmatpush.bf16.msra.mxu1 %v309_v1  ;;  %v302_v15 = vld [vmem:[%s480_s0 + $0x38] sm:$0xff]  ;;  %v382_v18 = vld [vmem:[%s479_s2] ss:$0 sm:$0xff] }
   0x7   :  { %362 = vmatpush.bf16.msra.mxu2 %v309_v1  ;;  %363 = vmatpush.bf16.msra.mxu3 %v309_v1 }
   0xa   :  { %148 = vmatpush.bf16.msra.mxu0 %v308_v2  ;;  %364 = vmatpush.bf16.msra.mxu1 %v308_v2 }
   0xb   :  { %365 = vmatpush.bf16.msra.mxu2 %v308_v2  ;;  %366 = vmatpush.bf16.msra.mxu3 %v308_v2 }
   0xe   :  { %149 = vmatpush.bf16.msra.mxu0 %v307_v3  ;;  %367 = vmatpush.bf16.msra.mxu1 %v307_v3 }
   0xf   :  { %368 = vmatpush.bf16.msra.mxu2 %v307_v3  ;;  %369 = vmatpush.bf16.msra.mxu3 %v307_v3 }
  0x12   :  { %150 = vmatpush.bf16.msra.mxu0 %v306_v4  ;;  %370 = vmatpush.bf16.msra.mxu1 %v306_v4 }
  0x13   :  { %371 = vmatpush.bf16.msra.mxu2 %v306_v4  ;;  %372 = vmatpush.bf16.msra.mxu3 %v306_v4 }
  0x16   :  { %151 = vmatpush.bf16.msra.mxu0 %v305_v5  ;;  %373 = vmatpush.bf16.msra.mxu1 %v305_v5 }
  0x17   :  { %374 = vmatpush.bf16.msra.mxu2 %v305_v5  ;;  %375 = vmatpush.bf16.msra.mxu3 %v305_v5 }
  0x1a   :  { %152 = vmatpush.bf16.msra.mxu0 %v304_v6  ;;  %376 = vmatpush.bf16.msra.mxu1 %v304_v6 }
  0x1b   :  { %377 = vmatpush.bf16.msra.mxu2 %v304_v6  ;;  %378 = vmatpush.bf16.msra.mxu3 %v304_v6 }
  0x1e   :  { %153 = vmatpush.bf16.msra.mxu0 %v303_v7  ;;  %379 = vmatpush.bf16.msra.mxu1 %v303_v7 }
  0x1f   :  { %380 = vmatpush.bf16.msra.mxu2 %v303_v7  ;;  %381 = vmatpush.bf16.msra.mxu3 %v303_v7 }
  0x21   :  { %154 = vmatmul.bf16.vlgmr.msra.gmra.mxu0 %v295_v8  ;;  %164 = vmatmul.bf16.vlgmr.msra.gmra.mxu1 %v297_v9 }
  0x22   :  { %174 = vmatmul.bf16.vlgmr.msra.gmra.mxu2 %v299_v10  ;;  %184 = vmatmul.bf16.vlgmr.msra.gmra.mxu3 %v301_v11 }
  0x31   :  { %159 = vmatmul.bf16.gmra.mxu0 %v296_v12  ;;  %169 = vmatmul.bf16.gmra.mxu1 %v298_v13 }
  0x32   :  { %179 = vmatmul.bf16.gmra.mxu2 %v300_v14  ;;  %189 = vmatmul.bf16.gmra.mxu3 %v302_v15 }
  0x9e   :  { %v155_v16 = vpop.f32.mrf.mxu0  ;;  %v165_v17 = vpop.f32.mrf.mxu1 }
  0x9f   :  { %v156_v23 = vadd.f32 %v382_v18, %v155_v16  ;;  %v166_v24 = vadd.f32 %v382_v18, %v165_v17 }
  0xa5   :  { %v175_v19 = vpop.f32.mrf.mxu2  ;;  %v185_v20 = vpop.f32.mrf.mxu3 }
  0xa6   :  { %v157_v21 = vpop.f32.mrf.mxu0  ;;  %v167_v22 = vpop.f32.mrf.mxu1  ;;  %v176_v31 = vadd.f32 %v382_v18, %v175_v19  ;;  %v186_v32 = vadd.f32 %v382_v18, %v185_v20 }
  0xa7   :  { %v158_v25 = vadd.f32 %v382_v18, %v157_v21  ;;  %v168_v26 = vadd.f32 %v382_v18, %v167_v22 }
  0xa9   :  { %v314_v27 = vpack.c.bf16 %v158_v25, %v156_v23  ;;  %v324_v28 = vpack.c.bf16 %v168_v26, %v166_v24 }
  0xab   :  { %315 = vst [vmem:[%s481_s3] sm:$0xff] %v314_v27  }
  0xac   :  { %352 = vst [vmem:[%s481_s3 + $0x10] sm:$0xff] %v324_v28  }
  0xad   :  { %v177_v29 = vpop.f32.mrf.mxu2  ;;  %v187_v30 = vpop.f32.mrf.mxu3 }
  0xae   :  { %v178_v33 = vadd.f32 %v382_v18, %v177_v29  ;;  %v188_v34 = vadd.f32 %v382_v18, %v187_v30  ;;  %v160_v35 = vpop.f32.mrf.mxu0  ;;  %v170_v36 = vpop.f32.mrf.mxu1 }
  0xaf   :  { %v161_v43 = vadd.f32 %v382_v18, %v160_v35  ;;  %v171_v44 = vadd.f32 %v382_v18, %v170_v36 }
  0xb0   :  { %v334_v37 = vpack.c.bf16 %v178_v33, %v176_v31  ;;  %v344_v38 = vpack.c.bf16 %v188_v34, %v186_v32 }
  0xb2   :  { %354 = vst [vmem:[%s481_s3 + $0x20] sm:$0xff] %v334_v37  }
  0xb3   :  { %356 = vst [vmem:[%s481_s3 + $0x30] sm:$0xff] %v344_v38  }
  0xb5   :  { %v180_v39 = vpop.f32.mrf.mxu2  ;;  %v190_v40 = vpop.f32.mrf.mxu3 }
  0xb6   :  { %v162_v41 = vpop.f32.mrf.mxu0  ;;  %v172_v42 = vpop.f32.mrf.mxu1  ;;  %v181_v51 = vadd.f32 %v382_v18, %v180_v39  ;;  %v191_v52 = vadd.f32 %v382_v18, %v190_v40 }
  0xb7   :  { %v163_v45 = vadd.f32 %v382_v18, %v162_v41  ;;  %v173_v46 = vadd.f32 %v382_v18, %v172_v42 }
  0xb9   :  { %v319_v47 = vpack.c.bf16 %v163_v45, %v161_v43  ;;  %v329_v48 = vpack.c.bf16 %v173_v46, %v171_v44 }
  0xbb   :  { %351 = vst [vmem:[%s481_s3 + $0x8] sm:$0xff] %v319_v47  }
  0xbc   :  { %353 = vst [vmem:[%s481_s3 + $0x18] sm:$0xff] %v329_v48  }
  0xbd   :  { %v182_v49 = vpop.f32.mrf.mxu2  ;;  %v192_v50 = vpop.f32.mrf.mxu3 }
  0xbe   :  { %v183_v53 = vadd.f32 %v382_v18, %v182_v49  ;;  %v193_v54 = vadd.f32 %v382_v18, %v192_v50 }
  0xc0   :  { %v339_v55 = vpack.c.bf16 %v183_v53, %v181_v51  ;;  %v349_v56 = vpack.c.bf16 %v193_v54, %v191_v52 }
  0xc2   :  { %355 = vst [vmem:[%s481_s3 + $0x28] sm:$0xff] %v339_v55  }
  0xc3   :  { %357 = vst [vmem:[%s481_s3 + $0x38] sm:$0xff] %v349_v56  }

// kernel: up_forward.7
= control target key start
LH: loop header
LB: loop body
LE: loop exit
PB: predicated region body
PF: predicated region fallthrough
CT: control target
= control target key end

     0   :  { %s1085_s12 = smov 0   ;;  %s1315_s0 = inlined_call_operand.vmem [shape: bf16[1024,128], index: 0, kind: input, shape index: {}]   ;;  %s1316_s1 = inlined_call_operand.vmem [shape: f32[1,128], index: 1, kind: input, shape index: {}]   ;;  %s1317_s2 = inlined_call_operand.vmem [shape: f32[1,128], index: 2, kind: input, shape index: {}]   ;;  %s1318_s3 = inlined_call_operand.vmem [shape: bf16[1024,128], index: 3, kind: output, shape index: {}]  }
   0x1 LB: > { %s686_s13 = sadd.s32 4294967295, %s1063_s12   ;;  %p690_p0 = scmp.ge.s32.totalorder %s1063_s12, 1  ;;  %s1063_s12 = sphi %s1085_s12, %s13_s12  }
   0x2   : > { %p138_p1 = scmp.lt.s32.totalorder %s1063_s12, 3 }
   0x4   : > { %p139_p2 = pnand %p690_p0, %p138_p1 }
   0x5   : > { %s691_s14 = sshll.u32 (!%p139_p2), %s686_s13, 6 }
   0x6   : > { %142 = sbr.rel (%p139_p2) target bundleno = 93 (0x5d), region = 32  ;;  %p163_p3 = scmp.lt.s32.totalorder (!%p139_p2), %s691_s14, 127 }
   0xb   : > { %s1320_s14 = smov (!%p163_p3, %s691_s14), 127  ;;  %v1106_v0 = vld [vmem:[%s1316_s1] ss:$0 sm:$0xff] }
   0xc   : > { %s692_s15 = sshll.u32 %s1320_s14, 2  ;;  %v1114_v6 = vld [vmem:[%s1317_s2] ss:$0 sm:$0xff] }
   0xd   : > { %s1101_s18 = scalar_lea.vmem %s1315_s0, %s692_s15  ;;  %s1140_s25 = scalar_lea.vmem %s1318_s3, %s692_s15 }
   0xe   : > { %v698_v1 = vld [vmem:[%s1101_s18] sm:$0xff]   ;;  %v985_v2 = vld [vmem:[%s1101_s18 + $0x8] sm:$0xff]   ;;  %v986_v3 = vld [vmem:[%s1101_s18 + $0x10] sm:$0xff]  }
   0xf   : > { %v699_v4 = vunpack.c.l.bf16 %v698_v1  ;;  %v700_v5 = vunpack.c.h.bf16 %v698_v1  ;;  %v703_v7 = vunpack.c.l.bf16 %v985_v2  ;;  %v704_v8 = vunpack.c.h.bf16 %v985_v2  ;;  %v987_v9 = vld [vmem:[%s1101_s18 + $0x18] sm:$0xff]   ;;  %v988_v30 = vld [vmem:[%s1101_s18 + $0x20] sm:$0xff]   ;;  %v989_v35 = vld [vmem:[%s1101_s18 + $0x28] sm:$0xff]  }
  0x10   : > { %v707_v10 = vunpack.c.l.bf16 %v986_v3  ;;  %v708_v11 = vunpack.c.h.bf16 %v986_v3  ;;  %v711_v12 = vunpack.c.l.bf16 %v987_v9  ;;  %v712_v13 = vunpack.c.h.bf16 %v987_v9  ;;  %v990_v40 = vld [vmem:[%s1101_s18 + $0x30] sm:$0xff]   ;;  %v991_v45 = vld [vmem:[%s1101_s18 + $0x38] sm:$0xff]   ;;  %v992_v3 = vld [vmem:[%s1101_s18 + $0x40] sm:$0xff]  }
  0x11   : > { %v306_v14 = vmul.f32 %v1106_v0, %v699_v4  ;;  %v307_v15 = vmul.f32 %v1106_v0, %v700_v5  ;;  %v308_v16 = vmul.f32 %v1106_v0, %v703_v7  ;;  %v309_v17 = vmul.f32 %v1106_v0, %v704_v8 }
  0x12   : > { %v310_v18 = vmul.f32 %v1106_v0, %v707_v10  ;;  %v311_v19 = vmul.f32 %v1106_v0, %v708_v11  ;;  %v312_v20 = vmul.f32 %v1106_v0, %v711_v12  ;;  %v313_v21 = vmul.f32 %v1106_v0, %v712_v13  ;;  %v993_v13 = vld [vmem:[%s1101_s18 + $0x48] sm:$0xff]  }
  0x13   : > { %v374_v22 = vadd.f32 %v1114_v6, %v306_v14  ;;  %v375_v23 = vadd.f32 %v1114_v6, %v307_v15  ;;  %v376_v24 = vadd.f32 %v1114_v6, %v308_v16  ;;  %v377_v25 = vadd.f32 %v1114_v6, %v309_v17 }
  0x14   : > { %v378_v26 = vadd.f32 %v1114_v6, %v310_v18  ;;  %v379_v27 = vadd.f32 %v1114_v6, %v311_v19  ;;  %v380_v28 = vadd.f32 %v1114_v6, %v312_v20  ;;  %v381_v29 = vadd.f32 %v1114_v6, %v313_v21  ;;  %v994_v18 = vld [vmem:[%s1101_s18 + $0x50] sm:$0xff]  }
  0x15   : > { %v438_v31 = vmax.f32 %v374_v22, 0.0  ;;  %v439_v32 = vmax.f32 %v375_v23, 0.0  ;;  %v440_v33 = vmax.f32 %v376_v24, 0.0  ;;  %v441_v34 = vmax.f32 %v377_v25, 0.0  ;;  %v995_v23 = vld [vmem:[%s1101_s18 + $0x58] sm:$0xff]  }
  0x16   : > { %v442_v36 = vmax.f32 %v378_v26, 0.0  ;;  %v443_v37 = vmax.f32 %v379_v27, 0.0  ;;  %v444_v38 = vmax.f32 %v380_v28, 0.0  ;;  %v445_v39 = vmax.f32 %v381_v29, 0.0 }
  0x17   : > { %v828_v41 = vpack.c.bf16 %v439_v32, %v438_v31  ;;  %v833_v42 = vpack.c.bf16 %v441_v34, %v440_v33  ;;  %v715_v43 = vunpack.c.l.bf16 %v988_v30  ;;  %v716_v44 = vunpack.c.h.bf16 %v988_v30 }
  0x18   : > { %v838_v46 = vpack.c.bf16 %v443_v37, %v442_v36  ;;  %v843_v47 = vpack.c.bf16 %v445_v39, %v444_v38  ;;  %v719_v48 = vunpack.c.l.bf16 %v989_v35  ;;  %v720_v49 = vunpack.c.h.bf16 %v989_v35 }
  0x19   : > { %829 = vst [vmem:[%s1140_s25] sm:$0xff] %v828_v41   ;;  %v314_v50 = vmul.f32 %v1106_v0, %v715_v43  ;;  %v315_v51 = vmul.f32 %v1106_v0, %v716_v44  ;;  %v723_v52 = vunpack.c.l.bf16 %v990_v40  ;;  %v724_v53 = vunpack.c.h.bf16 %v990_v40  ;;  %v996_v40 = vld [vmem:[%s1101_s18 + $0x60] sm:$0xff]  }
  0x1a   : > { %1016 = vst [vmem:[%s1140_s25 + $0x8] sm:$0xff] %v833_v42   ;;  %v316_v54 = vmul.f32 %v1106_v0, %v719_v48  ;;  %v317_v55 = vmul.f32 %v1106_v0, %v720_v49  ;;  %v727_v56 = vunpack.c.l.bf16 %v991_v45  ;;  %v728_v57 = vunpack.c.h.bf16 %v991_v45 }
  0x1b   : > { %1017 = vst [vmem:[%s1140_s25 + $0x10] sm:$0xff] %v838_v46   ;;  %v382_v58 = vadd.f32 %v1114_v6, %v314_v50  ;;  %v383_v59 = vadd.f32 %v1114_v6, %v315_v51  ;;  %v318_v60 = vmul.f32 %v1106_v0, %v723_v52  ;;  %v319_v61 = vmul.f32 %v1106_v0, %v724_v53  ;;  %v997_v53 = vld [vmem:[%s1101_s18 + $0x68] sm:$0xff]  }
  0x1c   : > { %1018 = vst [vmem:[%s1140_s25 + $0x18] sm:$0xff] %v843_v47   ;;  %v384_v62 = vadd.f32 %v1114_v6, %v316_v54  ;;  %v385_v63 = vadd.f32 %v1114_v6, %v317_v55  ;;  %v320_v1 = vmul.f32 %v1106_v0, %v727_v56  ;;  %v321_v2 = vmul.f32 %v1106_v0, %v728_v57 }
  0x1d   : > { %v446_v4 = vmax.f32 %v382_v58, 0.0  ;;  %v447_v5 = vmax.f32 %v383_v59, 0.0  ;;  %v386_v7 = vadd.f32 %v1114_v6, %v318_v60  ;;  %v387_v8 = vadd.f32 %v1114_v6, %v319_v61  ;;  %v998_v58 = vld [vmem:[%s1101_s18 + $0x70] sm:$0xff]  }
  0x1e   : > { %v448_v9 = vmax.f32 %v384_v62, 0.0  ;;  %v449_v10 = vmax.f32 %v385_v63, 0.0  ;;  %v388_v11 = vadd.f32 %v1114_v6, %v320_v1  ;;  %v389_v12 = vadd.f32 %v1114_v6, %v321_v2  ;;  %v999_v63 = vld [vmem:[%s1101_s18 + $0x78] sm:$0xff]  }
  0x1f   : > { %v848_v14 = vpack.c.bf16 %v447_v5, %v446_v4  ;;  %v450_v15 = vmax.f32 %v386_v7, 0.0  ;;  %v451_v16 = vmax.f32 %v387_v8, 0.0  ;;  %v731_v17 = vunpack.c.l.bf16 %v992_v3 }
  0x20   : > { %v853_v19 = vpack.c.bf16 %v449_v10, %v448_v9  ;;  %v452_v20 = vmax.f32 %v388_v11, 0.0  ;;  %v453_v21 = vmax.f32 %v389_v12, 0.0  ;;  %v732_v22 = vunpack.c.h.bf16 %v992_v3 }
  0x21   : > { %1019 = vst [vmem:[%s1140_s25 + $0x20] sm:$0xff] %v848_v14   ;;  %v858_v24 = vpack.c.bf16 %v451_v16, %v450_v15  ;;  %v322_v25 = vmul.f32 %v1106_v0, %v731_v17  ;;  %v735_v26 = vunpack.c.l.bf16 %v993_v13  ;;  %v736_v27 = vunpack.c.h.bf16 %v993_v13  ;;  %v1000_v14 = vld [vmem:[%s1101_s18 + $0x80] sm:$0xff]  }
  0x22   : > { %1020 = vst [vmem:[%s1140_s25 + $0x28] sm:$0xff] %v853_v19   ;;  %v863_v28 = vpack.c.bf16 %v453_v21, %v452_v20  ;;  %v323_v29 = vmul.f32 %v1106_v0, %v732_v22  ;;  %v739_v30 = vunpack.c.l.bf16 %v994_v18  ;;  %v740_v31 = vunpack.c.h.bf16 %v994_v18 }
  0x23   : > { %1021 = vst [vmem:[%s1140_s25 + $0x30] sm:$0xff] %v858_v24   ;;  %v390_v32 = vadd.f32 %v1114_v6, %v322_v25  ;;  %v324_v33 = vmul.f32 %v1106_v0, %v735_v26  ;;  %v325_v34 = vmul.f32 %v1106_v0, %v736_v27  ;;  %v743_v35 = vunpack.c.l.bf16 %v995_v23 }
  0x24   : > { %1022 = vst [vmem:[%s1140_s25 + $0x38] sm:$0xff] %v863_v28   ;;  %v391_v36 = vadd.f32 %v1114_v6, %v323_v29  ;;  %v326_v37 = vmul.f32 %v1106_v0, %v739_v30  ;;  %v327_v38 = vmul.f32 %v1106_v0, %v740_v31  ;;  %v744_v39 = vunpack.c.h.bf16 %v995_v23  ;;  %v1001_v31 = vld [vmem:[%s1101_s18 + $0x88] sm:$0xff]  }
  0x25   : > { %v454_v41 = vmax.f32 %v390_v32, 0.0  ;;  %v392_v42 = vadd.f32 %v1114_v6, %v324_v33  ;;  %v393_v43 = vadd.f32 %v1114_v6, %v325_v34  ;;  %v328_v44 = vmul.f32 %v1106_v0, %v743_v35 }
  0x26   : > { %v455_v45 = vmax.f32 %v391_v36, 0.0  ;;  %v394_v46 = vadd.f32 %v1114_v6, %v326_v37  ;;  %v395_v47 = vadd.f32 %v1114_v6, %v327_v38  ;;  %v329_v48 = vmul.f32 %v1106_v0, %v744_v39  ;;  %v1002_v36 = vld [vmem:[%s1101_s18 + $0x90] sm:$0xff]  }
  0x27   : > { %v456_v49 = vmax.f32 %v392_v42, 0.0  ;;  %v457_v50 = vmax.f32 %v393_v43, 0.0  ;;  %v396_v51 = vadd.f32 %v1114_v6, %v328_v44  ;;  %v747_v52 = vunpack.c.l.bf16 %v996_v40 }
  0x28   : > { %v868_v54 = vpack.c.bf16 %v455_v45, %v454_v41  ;;  %v458_v55 = vmax.f32 %v394_v46, 0.0  ;;  %v459_v56 = vmax.f32 %v395_v47, 0.0  ;;  %v397_v57 = vadd.f32 %v1114_v6, %v329_v48  ;;  %v1003_v41 = vld [vmem:[%s1101_s18 + $0x98] sm:$0xff]  }
  0x29   : > { %v873_v59 = vpack.c.bf16 %v457_v50, %v456_v49  ;;  %v460_v60 = vmax.f32 %v396_v51, 0.0  ;;  %v748_v61 = vunpack.c.h.bf16 %v996_v40  ;;  %v330_v62 = vmul.f32 %v1106_v0, %v747_v52 }
  0x2a   : > { %1023 = vst [vmem:[%s1140_s25 + $0x40] sm:$0xff] %v868_v54   ;;  %v878_v1 = vpack.c.bf16 %v459_v56, %v458_v55  ;;  %v461_v2 = vmax.f32 %v397_v57, 0.0  ;;  %v751_v3 = vunpack.c.l.bf16 %v997_v53  ;;  %v752_v4 = vunpack.c.h.bf16 %v997_v53  ;;  %v1004_v54 = vld [vmem:[%s1101_s18 + $0xa0] sm:$0xff]  }
  0x2b   : > { %1024 = vst [vmem:[%s1140_s25 + $0x48] sm:$0xff] %v873_v59   ;;  %v331_v5 = vmul.f32 %v1106_v0, %v748_v61  ;;  %v398_v7 = vadd.f32 %v1114_v6, %v330_v62  ;;  %v755_v8 = vunpack.c.l.bf16 %v998_v58  ;;  %v756_v9 = vunpack.c.h.bf16 %v998_v58 }
  0x2c   : > { %1025 = vst [vmem:[%s1140_s25 + $0x50] sm:$0xff] %v878_v1   ;;  %v883_v10 = vpack.c.bf16 %v461_v2, %v460_v60  ;;  %v332_v11 = vmul.f32 %v1106_v0, %v751_v3  ;;  %v333_v12 = vmul.f32 %v1106_v0, %v752_v4  ;;  %v759_v13 = vunpack.c.l.bf16 %v999_v63  ;;  %v1005_v4 = vld [vmem:[%s1101_s18 + $0xa8] sm:$0xff]  }
  0x2d   : > { %v399_v15 = vadd.f32 %v1114_v6, %v331_v5  ;;  %v462_v16 = vmax.f32 %v398_v7, 0.0  ;;  %v334_v17 = vmul.f32 %v1106_v0, %v755_v8  ;;  %v335_v18 = vmul.f32 %v1106_v0, %v756_v9 }
  0x2e   : > { %1026 = vst [vmem:[%s1140_s25 + $0x58] sm:$0xff] %v883_v10   ;;  %v400_v19 = vadd.f32 %v1114_v6, %v332_v11  ;;  %v401_v20 = vadd.f32 %v1114_v6, %v333_v12  ;;  %v760_v21 = vunpack.c.h.bf16 %v999_v63  ;;  %v336_v22 = vmul.f32 %v1106_v0, %v759_v13 }
  0x2f   : > { %v463_v23 = vmax.f32 %v399_v15, 0.0  ;;  %v402_v24 = vadd.f32 %v1114_v6, %v334_v17  ;;  %v403_v25 = vadd.f32 %v1114_v6, %v335_v18  ;;  %v763_v26 = vunpack.c.l.bf16 %v1000_v14 }
  0x30   : > { %v464_v27 = vmax.f32 %v400_v19, 0.0  ;;  %v465_v28 = vmax.f32 %v401_v20, 0.0  ;;  %v337_v29 = vmul.f32 %v1106_v0, %v760_v21  ;;  %v404_v30 = vadd.f32 %v1114_v6, %v336_v22  ;;  %v1007_v19 = vld [vmem:[%s1101_s18 + $0xb8] sm:$0xff]  }
  0x31   : > { %v888_v32 = vpack.c.bf16 %v463_v23, %v462_v16  ;;  %v466_v33 = vmax.f32 %v402_v24, 0.0  ;;  %v467_v34 = vmax.f32 %v403_v25, 0.0  ;;  %v764_v35 = vunpack.c.h.bf16 %v1000_v14  ;;  %v1006_v14 = vld [vmem:[%s1101_s18 + $0xb0] sm:$0xff]  }
  0x32   : > { %v893_v37 = vpack.c.bf16 %v465_v28, %v464_v27  ;;  %v405_v38 = vadd.f32 %v1114_v6, %v337_v29  ;;  %v468_v39 = vmax.f32 %v404_v30, 0.0  ;;  %v338_v40 = vmul.f32 %v1106_v0, %v763_v26 }
  0x33   : > { %1027 = vst [vmem:[%s1140_s25 + $0x60] sm:$0xff] %v888_v32   ;;  %v898_v42 = vpack.c.bf16 %v467_v34, %v466_v33  ;;  %v339_v43 = vmul.f32 %v1106_v0, %v764_v35  ;;  %v767_v44 = vunpack.c.l.bf16 %v1001_v31  ;;  %v768_v45 = vunpack.c.h.bf16 %v1001_v31  ;;  %v1008_v32 = vld [vmem:[%s1101_s18 + $0xc0] sm:$0xff]  }
  0x34   : > { %1028 = vst [vmem:[%s1140_s25 + $0x68] sm:$0xff] %v893_v37   ;;  %v469_v46 = vmax.f32 %v405_v38, 0.0  ;;  %v406_v47 = vadd.f32 %v1114_v6, %v338_v40  ;;  %v771_v48 = vunpack.c.l.bf16 %v1002_v36  ;;  %v772_v49 = vunpack.c.h.bf16 %v1002_v36 }
  0x35   : > { %1029 = vst [vmem:[%s1140_s25 + $0x70] sm:$0xff] %v898_v42   ;;  %v407_v50 = vadd.f32 %v1114_v6, %v339_v43  ;;  %v340_v51 = vmul.f32 %v1106_v0, %v767_v44  ;;  %v341_v52 = vmul.f32 %v1106_v0, %v768_v45  ;;  %v775_v53 = vunpack.c.l.bf16 %v1003_v41  ;;  %v1009_v45 = vld [vmem:[%s1101_s18 + $0xc8] sm:$0xff]  }
  0x36   : > { %v903_v55 = vpack.c.bf16 %v469_v46, %v468_v39  ;;  %v470_v56 = vmax.f32 %v406_v47, 0.0  ;;  %v342_v57 = vmul.f32 %v1106_v0, %v771_v48  ;;  %v343_v58 = vmul.f32 %v1106_v0, %v772_v49 }
  0x37   : > { %v471_v59 = vmax.f32 %v407_v50, 0.0  ;;  %v408_v60 = vadd.f32 %v1114_v6, %v340_v51  ;;  %v409_v61 = vadd.f32 %v1114_v6, %v341_v52  ;;  %v776_v62 = vunpack.c.h.bf16 %v1003_v41 }
  0x38   : > { %1030 = vst [vmem:[%s1140_s25 + $0x78] sm:$0xff] %v903_v55   ;;  %v410_v63 = vadd.f32 %v1114_v6, %v342_v57  ;;  %v411_v1 = vadd.f32 %v1114_v6, %v343_v58  ;;  %v344_v2 = vmul.f32 %v1106_v0, %v775_v53  ;;  %v779_v3 = vunpack.c.l.bf16 %v1004_v54 }
  0x39   : > { %v908_v5 = vpack.c.bf16 %v471_v59, %v470_v56  ;;  %v472_v7 = vmax.f32 %v408_v60, 0.0  ;;  %v473_v8 = vmax.f32 %v409_v61, 0.0  ;;  %v345_v9 = vmul.f32 %v1106_v0, %v776_v62 }
  0x3a   : > { %v474_v10 = vmax.f32 %v410_v63, 0.0  ;;  %v475_v11 = vmax.f32 %v411_v1, 0.0  ;;  %v412_v12 = vadd.f32 %v1114_v6, %v344_v2  ;;  %v780_v13 = vunpack.c.h.bf16 %v1004_v54  ;;  %v1010_v54 = vld [vmem:[%s1101_s18 + $0xd0] sm:$0xff]   ;;  %v1011_v63 = vld [vmem:[%s1101_s18 + $0xd8] sm:$0xff]  }
  0x3b   : > { %1031 = vst [vmem:[%s1140_s25 + $0x80] sm:$0xff] %v908_v5   ;;  %v913_v15 = vpack.c.bf16 %v473_v8, %v472_v7  ;;  %v413_v16 = vadd.f32 %v1114_v6, %v345_v9  ;;  %v346_v17 = vmul.f32 %v1106_v0, %v779_v3  ;;  %v783_v18 = vunpack.c.l.bf16 %v1005_v4 }
  0x3c   : > { %v918_v20 = vpack.c.bf16 %v475_v11, %v474_v10  ;;  %v476_v21 = vmax.f32 %v412_v12, 0.0  ;;  %v347_v22 = vmul.f32 %v1106_v0, %v780_v13  ;;  %v784_v23 = vunpack.c.h.bf16 %v1005_v4  ;;  %v1012_v10 = vld [vmem:[%s1101_s18 + $0xe0] sm:$0xff]  }
  0x3d   : > { %1032 = vst [vmem:[%s1140_s25 + $0x88] sm:$0xff] %v913_v15   ;;  %v477_v24 = vmax.f32 %v413_v16, 0.0  ;;  %v414_v25 = vadd.f32 %v1114_v6, %v346_v17  ;;  %v348_v26 = vmul.f32 %v1106_v0, %v783_v18  ;;  %v787_v27 = vunpack.c.l.bf16 %v1006_v14 }
  0x3e   : > { %1033 = vst [vmem:[%s1140_s25 + $0x90] sm:$0xff] %v918_v20   ;;  %v415_v28 = vadd.f32 %v1114_v6, %v347_v22  ;;  %v349_v29 = vmul.f32 %v1106_v0, %v784_v23  ;;  %v788_v30 = vunpack.c.h.bf16 %v1006_v14  ;;  %v791_v31 = vunpack.c.l.bf16 %v1007_v19  ;;  %v1013_v23 = vld [vmem:[%s1101_s18 + $0xe8] sm:$0xff]  }
  0x3f   : > { %v923_v33 = vpack.c.bf16 %v477_v24, %v476_v21  ;;  %v478_v34 = vmax.f32 %v414_v25, 0.0  ;;  %v416_v35 = vadd.f32 %v1114_v6, %v348_v26  ;;  %v350_v36 = vmul.f32 %v1106_v0, %v787_v27 }
  0x40   : > { %v479_v37 = vmax.f32 %v415_v28, 0.0  ;;  %v417_v38 = vadd.f32 %v1114_v6, %v349_v29  ;;  %v351_v39 = vmul.f32 %v1106_v0, %v788_v30  ;;  %v792_v40 = vunpack.c.h.bf16 %v1007_v19 }
  0x41   : > { %1034 = vst [vmem:[%s1140_s25 + $0x98] sm:$0xff] %v923_v33   ;;  %v480_v41 = vmax.f32 %v416_v35, 0.0  ;;  %v418_v42 = vadd.f32 %v1114_v6, %v350_v36  ;;  %v352_v43 = vmul.f32 %v1106_v0, %v791_v31  ;;  %v795_v44 = vunpack.c.l.bf16 %v1008_v32 }
  0x42   : > { %v928_v46 = vpack.c.bf16 %v479_v37, %v478_v34  ;;  %v481_v47 = vmax.f32 %v417_v38, 0.0  ;;  %v419_v48 = vadd.f32 %v1114_v6, %v351_v39  ;;  %v353_v49 = vmul.f32 %v1106_v0, %v792_v40 }
  0x43   : > { %v482_v50 = vmax.f32 %v418_v42, 0.0  ;;  %v420_v51 = vadd.f32 %v1114_v6, %v352_v43  ;;  %v796_v52 = vunpack.c.h.bf16 %v1008_v32  ;;  %v354_v53 = vmul.f32 %v1106_v0, %v795_v44  ;;  %v1014_v32 = vld [vmem:[%s1101_s18 + $0xf0] sm:$0xff]  }
  0x44   : > { %1035 = vst [vmem:[%s1140_s25 + $0xa0] sm:$0xff] %v928_v46   ;;  %v933_v55 = vpack.c.bf16 %v481_v47, %v480_v41  ;;  %v483_v56 = vmax.f32 %v419_v48, 0.0  ;;  %v421_v57 = vadd.f32 %v1114_v6, %v353_v49  ;;  %v799_v58 = vunpack.c.l.bf16 %v1009_v45  ;;  %v1015_v41 = vld [vmem:[%s1101_s18 + $0xf8] sm:$0xff]  }
  0x45   : > { %v484_v59 = vmax.f32 %v420_v51, 0.0  ;;  %v355_v60 = vmul.f32 %v1106_v0, %v796_v52  ;;  %v422_v61 = vadd.f32 %v1114_v6, %v354_v53  ;;  %v800_v62 = vunpack.c.h.bf16 %v1009_v45 }
  0x46   : > { %1036 = vst [vmem:[%s1140_s25 + $0xa8] sm:$0xff] %v933_v55   ;;  %v938_v1 = vpack.c.bf16 %v483_v56, %v482_v50  ;;  %v485_v2 = vmax.f32 %v421_v57, 0.0  ;;  %v356_v3 = vmul.f32 %v1106_v0, %v799_v58  ;;  %v803_v4 = vunpack.c.l.bf16 %v1010_v54 }
  0x47   : > { %v423_v5 = vadd.f32 %v1114_v6, %v355_v60  ;;  %v486_v7 = vmax.f32 %v422_v61, 0.0  ;;  %v357_v8 = vmul.f32 %v1106_v0, %v800_v62  ;;  %v804_v9 = vunpack.c.h.bf16 %v1010_v54 }
  0x48   : > { %1037 = vst [vmem:[%s1140_s25 + $0xb0] sm:$0xff] %v938_v1   ;;  %v943_v11 = vpack.c.bf16 %v485_v2, %v484_v59  ;;  %v424_v12 = vadd.f32 %v1114_v6, %v356_v3  ;;  %v358_v13 = vmul.f32 %v1106_v0, %v803_v4  ;;  %v807_v14 = vunpack.c.l.bf16 %v1011_v63 }
  0x49   : > { %v487_v15 = vmax.f32 %v423_v5, 0.0  ;;  %v425_v16 = vadd.f32 %v1114_v6, %v357_v8  ;;  %v359_v17 = vmul.f32 %v1106_v0, %v804_v9  ;;  %v808_v18 = vunpack.c.h.bf16 %v1011_v63 }
  0x4a   : > { %1038 = vst [vmem:[%s1140_s25 + $0xb8] sm:$0xff] %v943_v11   ;;  %v488_v19 = vmax.f32 %v424_v12, 0.0  ;;  %v426_v20 = vadd.f32 %v1114_v6, %v358_v13  ;;  %v360_v21 = vmul.f32 %v1106_v0, %v807_v14  ;;  %v811_v22 = vunpack.c.l.bf16 %v1012_v10 }
  0x4b   : > { %v948_v24 = vpack.c.bf16 %v487_v15, %v486_v7  ;;  %v489_v25 = vmax.f32 %v425_v16, 0.0  ;;  %v427_v26 = vadd.f32 %v1114_v6, %v359_v17  ;;  %v361_v27 = vmul.f32 %v1106_v0, %v808_v18 }
  0x4c   : > { %v490_v28 = vmax.f32 %v426_v20, 0.0  ;;  %v428_v29 = vadd.f32 %v1114_v6, %v360_v21  ;;  %v812_v30 = vunpack.c.h.bf16 %v1012_v10  ;;  %v362_v31 = vmul.f32 %v1106_v0, %v811_v22 }
  0x4d   : > { %1039 = vst [vmem:[%s1140_s25 + $0xc0] sm:$0xff] %v948_v24   ;;  %v953_v33 = vpack.c.bf16 %v489_v25, %v488_v19  ;;  %v491_v34 = vmax.f32 %v427_v26, 0.0  ;;  %v429_v35 = vadd.f32 %v1114_v6, %v361_v27  ;;  %v815_v36 = vunpack.c.l.bf16 %v1013_v23 }
  0x4e   : > { %v492_v37 = vmax.f32 %v428_v29, 0.0  ;;  %v363_v38 = vmul.f32 %v1106_v0, %v812_v30  ;;  %v430_v39 = vadd.f32 %v1114_v6, %v362_v31  ;;  %v816_v40 = vunpack.c.h.bf16 %v1013_v23 }
  0x4f   : > { %1040 = vst [vmem:[%s1140_s25 + $0xc8] sm:$0xff] %v953_v33   ;;  %v958_v42 = vpack.c.bf16 %v491_v34, %v490_v28  ;;  %v493_v43 = vmax.f32 %v429_v35, 0.0  ;;  %v364_v44 = vmul.f32 %v1106_v0, %v815_v36  ;;  %v819_v45 = vunpack.c.l.bf16 %v1014_v32 }
  0x50   : > { %v431_v46 = vadd.f32 %v1114_v6, %v363_v38  ;;  %v494_v47 = vmax.f32 %v430_v39, 0.0  ;;  %v365_v48 = vmul.f32 %v1106_v0, %v816_v40  ;;  %v820_v49 = vunpack.c.h.bf16 %v1014_v32 }
  0x51   : > { %1041 = vst [vmem:[%s1140_s25 + $0xd0] sm:$0xff] %v958_v42   ;;  %v963_v50 = vpack.c.bf16 %v493_v43, %v492_v37  ;;  %v432_v51 = vadd.f32 %v1114_v6, %v364_v44  ;;  %v366_v52 = vmul.f32 %v1106_v0, %v819_v45  ;;  %v823_v53 = vunpack.c.l.bf16 %v1015_v41 }
  0x52   : > { %v495_v54 = vmax.f32 %v431_v46, 0.0  ;;  %v433_v55 = vadd.f32 %v1114_v6, %v365_v48  ;;  %v367_v56 = vmul.f32 %v1106_v0, %v820_v49  ;;  %v824_v57 = vunpack.c.h.bf16 %v1015_v41 }
  0x53   : > { %1042 = vst [vmem:[%s1140_s25 + $0xd8] sm:$0xff] %v963_v50   ;;  %v496_v58 = vmax.f32 %v432_v51, 0.0  ;;  %v434_v59 = vadd.f32 %v1114_v6, %v366_v52  ;;  %v368_v60 = vmul.f32 %v1106_v0, %v823_v53 }
  0x54   : > { %v968_v61 = vpack.c.bf16 %v495_v54, %v494_v47  ;;  %v497_v62 = vmax.f32 %v433_v55, 0.0  ;;  %v435_v63 = vadd.f32 %v1114_v6, %v367_v56  ;;  %v369_v1 = vmul.f32 %v1106_v0, %v824_v57 }
  0x55   : > { %v498_v2 = vmax.f32 %v434_v59, 0.0  ;;  %v436_v3 = vadd.f32 %v1114_v6, %v368_v60 }
  0x56   : > { %1043 = vst [vmem:[%s1140_s25 + $0xe0] sm:$0xff] %v968_v61   ;;  %v973_v4 = vpack.c.bf16 %v497_v62, %v496_v58  ;;  %v499_v5 = vmax.f32 %v435_v63, 0.0  ;;  %v437_v7 = vadd.f32 %v1114_v6, %v369_v1 }
  0x57   : > { %v500_v8 = vmax.f32 %v436_v3, 0.0 }
  0x58   : > { %1044 = vst [vmem:[%s1140_s25 + $0xe8] sm:$0xff] %v973_v4   ;;  %v978_v9 = vpack.c.bf16 %v499_v5, %v498_v2  ;;  %v501_v10 = vmax.f32 %v437_v7, 0.0 }
  0x5a   : > { %1045 = vst [vmem:[%s1140_s25 + $0xf0] sm:$0xff] %v978_v9   ;;  %v983_v11 = vpack.c.bf16 %v501_v10, %v500_v8 }
  0x5c   : > { %1046 = vst [vmem:[%s1140_s25 + $0xf8] sm:$0xff] %v983_v11  }
  0x5d PF: > { %s13_s12 = sadd.s32 1, %s1063_s12  }
  0x5e   : > { %p10_p4 = scmp.ge.s32.totalorder %s13_s12, 4  }
  0x60   :  { %12 = sbr.rel (!%p10_p4) target bundleno = 1 (0x1), region = 62 }

// kernel: up_forward.6
= control target key start
LH: loop header
LB: loop body
LE: loop exit
PB: predicated region body
PF: predicated region fallthrough
CT: control target
= control target key end

     0   :  { %s5291_s12 = smov 0   ;;  %s5293_s13 = smov 0   ;;  %s7721_s0 = inlined_call_operand.vmem [shape: bf16[3,384,128], index: 0, kind: input, shape index: {}]   ;;  %s7722_s1 = inlined_call_operand.vmem [shape: bf16[2,576,128], index: 1, kind: input, shape index: {}]   ;;  %s7723_s2 = inlined_call_operand.vmem [shape: bf16[2,512,128], index: 2, kind: output, shape index: {0}]   ;;  %s7724_s3 = inlined_call_operand.vmem [shape: f32[2,2,2,128], index: 3, kind: output, shape index: {1}]  }
   0x1   :  { %s5295_s14 = smov 0   ;;  %s5297_s15 = smov 0  }
   0x2   :  { %s5299_s16 = smov 0  }
   0x3 LB: > { %s26_s17 = sadd.s32 1, %s5260_s14  ;;  %s33_s18 = sadd.s32 1, %s5264_s15  ;;  %s5268_s16 = sphi %s5299_s16, %s14_s16   ;;  %s5264_s15 = sphi %s5297_s15, %s7911_s15   ;;  %s5260_s14 = sphi %s5295_s14, %s7910_s14   ;;  %s5256_s13 = sphi %s5293_s13, %s7909_s13   ;;  %s5252_s12 = sphi %s5291_s12, %s7908_s12  }
   0x4   : > { %p27_p0 = scmp.ge.s32.totalorder %s26_s17, 2  ;;  %p4420_p1 = scmp.ge.s32.totalorder %s5268_s16, 1 }
   0x5   : > { %p142_p2 = scmp.lt.s32.totalorder %s5268_s16, 5 }
   0x6   : > { %s7913_s17 = smov (%p27_p0, %s26_s17), 0  ;;  %s7915_s18 = smov (!%p27_p0, %s33_s18), %s5264_s15 }
   0x7   : > { %p143_p3 = pnand %p4420_p1, %p142_p2  ;;  %p35_p4 = scmp.ge.s32.totalorder %s7915_s18, 2 }
   0x9   : > { %s7917_s18 = smov (%p35_p4, %s7915_s18), 0  ;;  %146 = sbr.rel (%p143_p3) target bundleno = 945 (0x3b1), region = 24 }
   0xe   : > { %s4421_s19 = sshll.u32 %s5252_s12, 5  ;;  %p186_p5 = scmp.lt.s32.totalorder %s5256_s13, 1 }
   0xf   : > { %p188_p6 = scmp.lt.s32.totalorder %s4421_s19, 63  ;;  %p200_p7 = scmp.lt.s32.totalorder %s5252_s12, 1 }
  0x10   : > { %s187_s20 = scalar_select %p186_p5, %s5256_s13, 1 }
  0x11   : > { %s7919_s19 = smov (!%p188_p6, %s4421_s19), 63  ;;  %s210_s25 = ssub.s32 0, %s5252_s12 }
  0x12   : > { %s4422_s21 = sshll.u32 %s187_s20, 6  ;;  %s4424_s23 = sshll.u32 %s187_s20, 1 }
  0x13   : > { %s194_s22 = sadd.s32 %s4422_s21, %s7919_s19  ;;  %s4426_s29 = smin.u32 %s5252_s12, %s210_s25 }
  0x14   : > { %s4423_s24 = sshll.u32 %s194_s22, 2  ;;  %p209_p8 = scmp.lt.s32.totalorder %s5252_s12, 0 }
  0x15   : > { %s5333_s28 = scalar_lea.vmem %s7723_s2, %s4423_s24  ;;  %s212_s4 = sand.u32 1, %s4426_s29  }
  0x16   : > { %s201_s30 = scalar_select %p200_p7, %s5252_s12, 1 }
  0x17   : > { %s213_s6 = ssub.s32 0, %s212_s4  ;;  %p4429_p10 = scmp.ne.s32.totalorder %s5252_s12, 0 }
  0x18   : > { %s206_s5 = sadd.s32 %s4424_s23, %s201_s30  ;;  %s7921_s6 = smov (!%p209_p8, %s213_s6), %s212_s4 }
  0x19   : > { %s4425_s7 = sshll.u32 %s206_s5, 1  ;;  %p4428_p9 = scmp.lt.s32.totalorder %s7921_s6, 0 }
  0x1a   : > { %s5341_s10 = scalar_lea.vmem %s7724_s3, %s4425_s7  ;;  %s219_s11 = sadd.s32 2, %s7921_s6 }
  0x1b   : > { %s7923_s11 = smov (!%p4428_p9, %s219_s11), %s7921_s6  ;;  %224 = sbr.rel (%p4429_p10) target bundleno = 53 (0x35), region = 28 }
  0x1c   : > { %s4945_s19 = smul.u32 (!%p4429_p10), 288, %s5256_s13 }
  0x1e   : > { %s5350_s22 = scalar_lea.vmem (!%p4429_p10), %s7722_s1, %s4945_s19 }
  0x20   : > { %v239_v0 = vld [vmem:[%s5350_s22] sm:$0xff]  ;;  %v241_v1 = vld [vmem:[%s5350_s22 + $0x8] sm:$0xff]  ;;  %v243_v2 = vld [vmem:[%s5350_s22 + $0x10] sm:$0xff] }
  0x21   : > { %240 = vst [vmem:[#allocation2] sm:$0xff] %v239_v0  ;;  %v245_v3 = vld [vmem:[%s5350_s22 + $0x18] sm:$0xff]  ;;  %v247_v4 = vld [vmem:[%s5350_s22 + $0x20] sm:$0xff]  ;;  %v249_v5 = vld [vmem:[%s5350_s22 + $0x28] sm:$0xff] }
  0x22   : > { %242 = vst [vmem:[#allocation2 + $0x8] sm:$0xff] %v241_v1  ;;  %v251_v6 = vld [vmem:[%s5350_s22 + $0x30] sm:$0xff]  ;;  %v253_v7 = vld [vmem:[%s5350_s22 + $0x38] sm:$0xff]  ;;  %v255_v8 = vld [vmem:[%s5350_s22 + $0x40] sm:$0xff] }
  0x23   : > { %244 = vst [vmem:[#allocation2 + $0x10] sm:$0xff] %v243_v2  ;;  %v257_v9 = vld [vmem:[%s5350_s22 + $0x48] sm:$0xff]  ;;  %v259_v10 = vld [vmem:[%s5350_s22 + $0x50] sm:$0xff]  ;;  %v261_v11 = vld [vmem:[%s5350_s22 + $0x58] sm:$0xff] }
  0x24   : > { %246 = vst [vmem:[#allocation2 + $0x18] sm:$0xff] %v245_v3  ;;  %v263_v12 = vld [vmem:[%s5350_s22 + $0x60] sm:$0xff]  ;;  %v265_v13 = vld [vmem:[%s5350_s22 + $0x68] sm:$0xff]  ;;  %v267_v14 = vld [vmem:[%s5350_s22 + $0x70] sm:$0xff] }
  0x25   : > { %248 = vst [vmem:[#allocation2 + $0x20] sm:$0xff] %v247_v4  ;;  %v269_v15 = vld [vmem:[%s5350_s22 + $0x78] sm:$0xff]  ;;  %v271_v16 = vld [vmem:[%s5350_s22 + $0x80] sm:$0xff]  ;;  %v273_v17 = vld [vmem:[%s5350_s22 + $0x88] sm:$0xff] }
  0x26   : > { %250 = vst [vmem:[#allocation2 + $0x28] sm:$0xff] %v249_v5  ;;  %v275_v18 = vld [vmem:[%s5350_s22 + $0x90] sm:$0xff] }
  0x27   : > { %252 = vst [vmem:[#allocation2 + $0x30] sm:$0xff] %v251_v6 }
  0x28   : > { %254 = vst [vmem:[#allocation2 + $0x38] sm:$0xff] %v253_v7 }
  0x29   : > { %256 = vst [vmem:[#allocation2 + $0x40] sm:$0xff] %v255_v8 }
  0x2a   : > { %258 = vst [vmem:[#allocation2 + $0x48] sm:$0xff] %v257_v9 }
  0x2b   : > { %260 = vst [vmem:[#allocation2 + $0x50] sm:$0xff] %v259_v10 }
  0x2c   : > { %262 = vst [vmem:[#allocation2 + $0x58] sm:$0xff] %v261_v11 }
  0x2d   : > { %264 = vst [vmem:[#allocation2 + $0x60] sm:$0xff] %v263_v12 }
  0x2e   : > { %266 = vst [vmem:[#allocation2 + $0x68] sm:$0xff] %v265_v13 }
  0x2f   : > { %268 = vst [vmem:[#allocation2 + $0x70] sm:$0xff] %v267_v14 }
  0x30   : > { %270 = vst [vmem:[#allocation2 + $0x78] sm:$0xff] %v269_v15 }
  0x31   : > { %272 = vst [vmem:[#allocation2 + $0x80] sm:$0xff] %v271_v16 }
  0x32   : > { %274 = vst [vmem:[#allocation2 + $0x88] sm:$0xff] %v273_v17 }
  0x33   : > { %276 = vst [vmem:[#allocation2 + $0x90] sm:$0xff] %v275_v18 }
  0x34   : > { %282 = vsyncadd [#allocation3], 2432 }
  0x35 PF: > { %s4431_s23 = sshll.u32 %s5252_s12, 8  ;;  %s4946_s24 = smul.u32 152, %s7923_s11 }
  0x36   : > { %s287_s26 = scalar_lea.sflag [#allocation3], %s7923_s11 }
  0x37   : > { %s5373_s25 = scalar_lea.vmem [#allocation2], %s4946_s24 }
  0x38   : > { %5248 = dma.done.wait %s287_s26, 2432 }
  0x39   : > { %5249 = vsyncadd %s287_s26, 4294964864  ;;  %s292_s27 = sadd.s32 1, %s5252_s12 }
  0x3a   : > { %p4433_p11 = scmp.ge.s32.totalorder %s292_s27, 2 }
  0x3b   : > { %s297_s29 = ssub.s32 (!%p4433_p11), 1, %s7923_s11  ;;  %s4948_s30 = sadd.s32 (!%p4433_p11), 256, %s4431_s23 }
  0x3c   : > { %296 = sbr.rel (%p4433_p11) target bundleno = 87 (0x57), region = 51  ;;  %s299_s4 = sshra.s32 (!%p4433_p11), %s4948_s30, 3 }
  0x3d   : > { %s301_s5 = smul.u32 (!%p4433_p11), 72, %s5256_s13  ;;  %s308_s21 = scalar_lea.sflag (!%p4433_p11), [#allocation3], %s297_s29 }
  0x3e   : > { %s4949_s6 = smul.u32 (!%p4433_p11), 152, %s297_s29 }
  0x3f   : > { %s302_s7 = sadd.s32 (!%p4433_p11), %s301_s5, %s299_s4 }
  0x40   : > { %s4435_s8 = sshll.u32 (!%p4433_p11), %s302_s7, 2  ;;  %s5391_s13 = scalar_lea.vmem (!%p4433_p11), [#allocation2], %s4949_s6 }
  0x41   : > { %s5386_s20 = scalar_lea.vmem %s7722_s1, %s4435_s8 }
  0x42   : > { %v319_v19 = vld [vmem:[%s5386_s20] sm:$0xff]  ;;  %v321_v20 = vld [vmem:[%s5386_s20 + $0x8] sm:$0xff]  ;;  %v323_v21 = vld [vmem:[%s5386_s20 + $0x10] sm:$0xff] }
  0x43   : > { %320 = vst [vmem:[%s5391_s13] sm:$0xff] %v319_v19  ;;  %v325_v22 = vld [vmem:[%s5386_s20 + $0x18] sm:$0xff]  ;;  %v327_v23 = vld [vmem:[%s5386_s20 + $0x20] sm:$0xff]  ;;  %v329_v24 = vld [vmem:[%s5386_s20 + $0x28] sm:$0xff] }
  0x44   : > { %322 = vst [vmem:[%s5391_s13 + $0x8] sm:$0xff] %v321_v20  ;;  %v331_v25 = vld [vmem:[%s5386_s20 + $0x30] sm:$0xff]  ;;  %v333_v26 = vld [vmem:[%s5386_s20 + $0x38] sm:$0xff]  ;;  %v335_v27 = vld [vmem:[%s5386_s20 + $0x40] sm:$0xff] }
  0x45   : > { %324 = vst [vmem:[%s5391_s13 + $0x10] sm:$0xff] %v323_v21  ;;  %v337_v28 = vld [vmem:[%s5386_s20 + $0x48] sm:$0xff]  ;;  %v339_v29 = vld [vmem:[%s5386_s20 + $0x50] sm:$0xff]  ;;  %v341_v30 = vld [vmem:[%s5386_s20 + $0x58] sm:$0xff] }
  0x46   : > { %326 = vst [vmem:[%s5391_s13 + $0x18] sm:$0xff] %v325_v22  ;;  %v343_v31 = vld [vmem:[%s5386_s20 + $0x60] sm:$0xff]  ;;  %v345_v32 = vld [vmem:[%s5386_s20 + $0x68] sm:$0xff]  ;;  %v347_v33 = vld [vmem:[%s5386_s20 + $0x70] sm:$0xff] }
  0x47   : > { %328 = vst [vmem:[%s5391_s13 + $0x20] sm:$0xff] %v327_v23  ;;  %v349_v34 = vld [vmem:[%s5386_s20 + $0x78] sm:$0xff]  ;;  %v351_v35 = vld [vmem:[%s5386_s20 + $0x80] sm:$0xff]  ;;  %v353_v36 = vld [vmem:[%s5386_s20 + $0x88] sm:$0xff] }
  0x48   : > { %330 = vst [vmem:[%s5391_s13 + $0x28] sm:$0xff] %v329_v24  ;;  %v355_v37 = vld [vmem:[%s5386_s20 + $0x90] sm:$0xff] }
  0x49   : > { %332 = vst [vmem:[%s5391_s13 + $0x30] sm:$0xff] %v331_v25 }
  0x4a   : > { %334 = vst [vmem:[%s5391_s13 + $0x38] sm:$0xff] %v333_v26 }
  0x4b   : > { %336 = vst [vmem:[%s5391_s13 + $0x40] sm:$0xff] %v335_v27 }
  0x4c   : > { %338 = vst [vmem:[%s5391_s13 + $0x48] sm:$0xff] %v337_v28 }
  0x4d   : > { %340 = vst [vmem:[%s5391_s13 + $0x50] sm:$0xff] %v339_v29 }
  0x4e   : > { %342 = vst [vmem:[%s5391_s13 + $0x58] sm:$0xff] %v341_v30 }
  0x4f   : > { %344 = vst [vmem:[%s5391_s13 + $0x60] sm:$0xff] %v343_v31 }
  0x50   : > { %346 = vst [vmem:[%s5391_s13 + $0x68] sm:$0xff] %v345_v32 }
  0x51   : > { %348 = vst [vmem:[%s5391_s13 + $0x70] sm:$0xff] %v347_v33 }
  0x52   : > { %350 = vst [vmem:[%s5391_s13 + $0x78] sm:$0xff] %v349_v34 }
  0x53   : > { %352 = vst [vmem:[%s5391_s13 + $0x80] sm:$0xff] %v351_v35 }
  0x54   : > { %354 = vst [vmem:[%s5391_s13 + $0x88] sm:$0xff] %v353_v36 }
  0x55   : > { %356 = vst [vmem:[%s5391_s13 + $0x90] sm:$0xff] %v355_v37 }
  0x56   : > { %362 = vsyncadd %s308_s21, 2432 }
  0x57 PF: > { %v4996_v38 = vld [vmem:[%s7721_s0 + $0xf8] sm:$0xff]  ;;  %v4995_v39 = vld [vmem:[%s7721_s0 + $0xf0] sm:$0xff]  ;;  %v4994_v40 = vld [vmem:[%s7721_s0 + $0xe8] sm:$0xff]  ;;  %vm648_vm0 = vcmask 1046528   ;;  %vm496_vm1 = vsmask.f32 7424 }
  0x58   : > { %1097 = vmatpush.bf16.msra.mxu0 %v4996_v38  ;;  %5159 = vmatpush.bf16.msra.mxu1 %v4996_v38  ;;  %v4993_v41 = vld [vmem:[%s7721_s0 + $0xe0] sm:$0xff]  ;;  %v4992_v42 = vld [vmem:[%s7721_s0 + $0xd8] sm:$0xff]  ;;  %v4991_v45 = vld [vmem:[%s7721_s0 + $0xd0] sm:$0xff]  ;;  %vm2116_vm2 = vcmask 1045504  }
  0x59   : > { %5160 = vmatpush.bf16.msra.mxu2 %v4996_v38  ;;  %5161 = vmatpush.bf16.msra.mxu3 %v4996_v38  ;;  %v4990_v48 = vld [vmem:[%s7721_s0 + $0xc8] sm:$0xff]  ;;  %v4989_v57 = vld [vmem:[%s7721_s0 + $0xc0] sm:$0xff]  ;;  %v5012_v2 = vld [vmem:[%s7721_s0 + $0x178] sm:$0xff] }
  0x5a   : > { %v4971_v3 = vld [vmem:[%s7721_s0 + $0x38] sm:$0xff]  ;;  %v5011_v10 = vld [vmem:[%s7721_s0 + $0x170] sm:$0xff]  ;;  %v5010_v14 = vld [vmem:[%s7721_s0 + $0x168] sm:$0xff] }
  0x5b   : > { %v5004_v8 = vld [vmem:[%s7721_s0 + $0x138] sm:$0xff]  ;;  %v4970_v11 = vld [vmem:[%s7721_s0 + $0x30] sm:$0xff]  ;;  %v4969_v15 = vld [vmem:[%s7721_s0 + $0x28] sm:$0xff] }
  0x5c   : > { %1098 = vmatpush.bf16.msra.mxu0 %v4995_v39  ;;  %5162 = vmatpush.bf16.msra.mxu1 %v4995_v39  ;;  %v5446_v43 = vld [vmem:[%s5373_s25 + $0x8] sm:$0xff]   ;;  %v5457_v49 = vld [vmem:[%s5373_s25 + $0x10] sm:$0xff]  ;;  %v4979_v9 = vld [vmem:[%s7721_s0 + $0x78] sm:$0xff] }
  0x5d   : > { %5163 = vmatpush.bf16.msra.mxu2 %v4995_v39  ;;  %5164 = vmatpush.bf16.msra.mxu3 %v4995_v39  ;;  %v746_v44 = vld [vmem:[%s5373_s25 + $0x8] sm:$0xe]  ;;  %v5059_v46 = vunpack.c.h.b16 %v5446_v43  ;;  %v5467_v52 = vld [vmem:[%s5373_s25 + $0x30] sm:$0xff]  ;;  %v5485_v58 = vrot.slane %v5457_v49, 1  ;;  %v5545_v16 = vld [vmem:[%s5373_s25 + $0x18] sm:$0xff] }
  0x5e   : > { %v756_v47 = vunpack.c.l.b16 %v746_v44  ;;  %v5464_v51 = vld [vmem:[%s5373_s25 + $0x28] sm:$0xff]  ;;  %v5473_v54 = vld [vmem:[%s5373_s25 + $0x50] sm:$0xff]  ;;  %v660_v61 = vrot.slane %v5467_v52, 1  ;;  %v5548_v17 = vld [vmem:[%s5373_s25 + $0x38] sm:$0xff]  ;;  %v654_v24 = vrot.slane %v5545_v16, 1 }
  0x5f   : > { %v5470_v53 = vld [vmem:[%s5373_s25 + $0x48] sm:$0xff]  ;;  %v5479_v56 = vld [vmem:[%s5373_s25 + $0x70] sm:$0xff]  ;;  %v658_v60 = vrot.slane %v5464_v51, 1  ;;  %v668_v63 = vrot.slane %v5473_v54, 1  ;;  %v5551_v18 = vld [vmem:[%s5373_s25 + $0x58] sm:$0xff]  ;;  %v662_v25 = vrot.slane %v5548_v17, 1 }
  0x60   : > { %1099 = vmatpush.bf16.msra.mxu0 %v4994_v40  ;;  %5165 = vmatpush.bf16.msra.mxu1 %v4994_v40  ;;  %v5461_v50 = vpack.c.b16 %v5059_v46, %v756_v47  ;;  %v5476_v55 = vld [vmem:[%s5373_s25 + $0x68] sm:$0xff]  ;;  %v666_v62 = vrot.slane %v5470_v53, 1  ;;  %v676_v1 = vrot.slane %v5479_v56, 1  ;;  %v5003_v12 = vld [vmem:[%s7721_s0 + $0x130] sm:$0xff]  ;;  %v670_v26 = vrot.slane %v5551_v18, 1  ;;  %v5008_v30 = vld [vmem:[%s7721_s0 + $0x158] sm:$0xff] }
  0x61   : > { %5166 = vmatpush.bf16.msra.mxu2 %v4994_v40  ;;  %5167 = vmatpush.bf16.msra.mxu3 %v4994_v40  ;;  %v674_v0 = vrot.slane %v5476_v55, 1  ;;  %v5505_v5 = vsel %vm648_vm0, %v658_v60, %v660_v61  ;;  %v4978_v13 = vld [vmem:[%s7721_s0 + $0x70] sm:$0xff]  ;;  %v5002_v20 = vld [vmem:[%s7721_s0 + $0x128] sm:$0xff]  ;;  %v5009_v22 = vld [vmem:[%s7721_s0 + $0x160] sm:$0xff]  ;;  %v5588_v32 = vsel %vm648_vm0, %v5485_v58, %v654_v24  ;;  %v5591_v33 = vsel %vm648_vm0, %v660_v61, %v662_v25 }
  0x62   : > { %v848_v59 = vrot.slane %v5461_v50, 1  ;;  %7746 = vst [vmem:[#allocation7_spill] sm:$0xff] %v5505_v5  ;;  %v5510_v6 = vsel %vm648_vm0, %v666_v62, %v668_v63  ;;  %v5554_v19 = vld [vmem:[%s5373_s25 + $0x78] sm:$0xff]  ;;  %v4977_v21 = vld [vmem:[%s7721_s0 + $0x68] sm:$0xff]  ;;  %v4968_v23 = vld [vmem:[%s7721_s0 + $0x20] sm:$0xff]  ;;  %v5594_v34 = vsel %vm648_vm0, %v668_v63, %v670_v26 }
  0x63   : > { %7747 = vst [vmem:[#allocation8_spill] sm:$0xff] %v5510_v6  ;;  %v5515_v7 = vsel %vm648_vm0, %v674_v0, %v676_v1  ;;  %v5572_v27 = vrot.slane %v5554_v19, 1  ;;  %v5001_v28 = vld [vmem:[%s7721_s0 + $0x120] sm:$0xff]  ;;  %v4967_v31 = vld [vmem:[%s7721_s0 + $0x18] sm:$0xff]  ;;  %v5007_v38 = vld [vmem:[%s7721_s0 + $0x150] sm:$0xff] }
  0x64   : > { %1100 = vmatpush.bf16.msra.mxu0 %v4993_v41  ;;  %5168 = vmatpush.bf16.msra.mxu1 %v4993_v41  ;;  %v849_v4 = vsel %vm648_vm0, %v848_v59, %v5485_v58  ;;  %v4976_v29 = vld [vmem:[%s7721_s0 + $0x60] sm:$0xff]  ;;  %7749 = vst [vmem:[#allocation10_spill] sm:$0xff] %v5591_v33  ;;  %v5000_v36 = vld [vmem:[%s7721_s0 + $0x118] sm:$0xff]  ;;  %v4966_v39 = vld [vmem:[%s7721_s0 + $0x10] sm:$0xff] }
  0x65   : > { %5169 = vmatpush.bf16.msra.mxu2 %v4993_v41  ;;  %5170 = vmatpush.bf16.msra.mxu3 %v4993_v41  ;;  %7748 = vst [vmem:[#allocation9_spill] sm:$0xff] %v5572_v27  ;;  %v5598_v35 = vsel %vm648_vm0, %v676_v1, %v5572_v27  ;;  %v4975_v37 = vld [vmem:[%s7721_s0 + $0x58] sm:$0xff]  ;;  %v4999_v40 = vld [vmem:[%s7721_s0 + $0x110] sm:$0xff]  ;;  %v4965_v44 = vld [vmem:[%s7721_s0 + $0x8] sm:$0xff] }
  0x66   : > { %7750 = vst [vmem:[#allocation11_spill] sm:$0xff] %v5594_v34  ;;  %v4974_v41 = vld [vmem:[%s7721_s0 + $0x50] sm:$0xff]  ;;  %v5632_v47 = vld [vmem:[%s5373_s25 + $0x40] sm:$0xff]  ;;  %v4998_v59 = vld [vmem:[%s7721_s0 + $0x108] sm:$0xff] }
  0x67   : > { %7751 = vst [vmem:[#allocation12_spill] sm:$0xff] %v5598_v35  ;;  %v4973_v61 = vld [vmem:[%s7721_s0 + $0x48] sm:$0xff]  ;;  %v5005_v63 = vld [vmem:[%s7721_s0 + $0x140] sm:$0xff] }
  0x68   : > { %1101 = vmatpush.bf16.msra.mxu0 %v4992_v42  ;;  %5171 = vmatpush.bf16.msra.mxu1 %v4992_v42  ;;  %v4964_v1 = vld [vmem:[%s7721_s0] sm:$0xff] }
  0x69   : > { %5172 = vmatpush.bf16.msra.mxu2 %v4992_v42  ;;  %5173 = vmatpush.bf16.msra.mxu3 %v4992_v42  ;;  %v5006_v42 = vld [vmem:[%s7721_s0 + $0x148] sm:$0xff] }
  0x6c   : > { %1102 = vmatpush.bf16.msra.mxu0 %v4991_v45  ;;  %5174 = vmatpush.bf16.msra.mxu1 %v4991_v45 }
  0x6d   : > { %5175 = vmatpush.bf16.msra.mxu2 %v4991_v45  ;;  %5176 = vmatpush.bf16.msra.mxu3 %v4991_v45  ;;  %v5629_v45 = vld [vmem:[%s5373_s25 + $0x20] sm:$0xff] }
  0x70   : > { %1103 = vmatpush.bf16.msra.mxu0 %v4990_v48  ;;  %5177 = vmatpush.bf16.msra.mxu1 %v4990_v48 }
  0x71   : > { %5178 = vmatpush.bf16.msra.mxu2 %v4990_v48  ;;  %5179 = vmatpush.bf16.msra.mxu3 %v4990_v48  ;;  %v5635_v48 = vld [vmem:[%s5373_s25 + $0x60] sm:$0xff] }
  0x74   : > { %1104 = vmatpush.bf16.msra.mxu0 %v4989_v57  ;;  %5180 = vmatpush.bf16.msra.mxu1 %v4989_v57 }
  0x75   : > { %5181 = vmatpush.bf16.msra.mxu2 %v4989_v57  ;;  %5182 = vmatpush.bf16.msra.mxu3 %v4989_v57  ;;  %v5638_v57 = vld [vmem:[%s5373_s25 + $0x80] sm:$0xff] }
  0x77   : > { %1105 = vmatmul.bf16.vlgmr.msra.gmra.mxu0 %v849_v4  ;;  %1125 = vmatmul.bf16.vlgmr.msra.gmra.mxu1 %v5505_v5  ;;  %v672_v4 = vrot.slane %v5635_v48, 1 }
  0x78   : > { %1145 = vmatmul.bf16.vlgmr.msra.gmra.mxu2 %v5510_v6  ;;  %1165 = vmatmul.bf16.vlgmr.msra.gmra.mxu3 %v5515_v7 }
  0x79   : > { %1275 = vmatpush.bf16.msrb.mxu2 %v5012_v2  ;;  %1508 = vmatpush.bf16.msrb.mxu3 %v4971_v3  ;;  %v656_v2 = vrot.slane %v5629_v45, 1  ;;  %v664_v3 = vrot.slane %v5632_v47, 1 }
  0x7a   : > { %1186 = vmatpush.bf16.msrb.mxu1 %v5004_v8  ;;  %1597 = vmatpush.bf16.msrb.mxu0 %v4979_v9  ;;  %v5656_v8 = vrot.slane %v5638_v57, 1  ;;  %v4997_v9 = vld [vmem:[%s7721_s0 + $0x100] sm:$0xff] }
  0x7d   : > { %1276 = vmatpush.bf16.msrb.mxu2 %v5011_v10  ;;  %1509 = vmatpush.bf16.msrb.mxu3 %v4970_v11  ;;  %v4972_v10 = vld [vmem:[%s7721_s0 + $0x40] sm:$0xff]  ;;  %v5665_v11 = vsel %vm648_vm0, %v654_v24, %v656_v2  ;;  %v5051_v24 = vld [vmem:[%s7721_s0 + $0x238] sm:$0xff] }
  0x7e   : > { %1187 = vmatpush.bf16.msrb.mxu1 %v5003_v12  ;;  %1598 = vmatpush.bf16.msrb.mxu0 %v4978_v13  ;;  %v5668_v12 = vsel %vm648_vm0, %v662_v25, %v664_v3  ;;  %v5671_v13 = vsel %vm648_vm0, %v670_v26, %v672_v4  ;;  %v751_v26 = vld [vmem:[%s5373_s25 + $0x8] sm:$0xc] }
  0x7f   : > { %7752 = vst [vmem:[#allocation13_spill] sm:$0xff] %v5668_v12 }
  0x80   : > { %7753 = vst [vmem:[#allocation14_spill] sm:$0xff] %v5671_v13 }
  0x81   : > { %1277 = vmatpush.bf16.msrb.mxu2 %v5010_v14  ;;  %1510 = vmatpush.bf16.msrb.mxu3 %v4969_v15  ;;  %v5676_v14 = vsel %vm648_vm0, %v5572_v27, %v5656_v8  ;;  %v749_v15 = vld [vmem:[%s5373_s25 + $0x88] sm:$0x1] }
  0x82   : > { %1188 = vmatpush.bf16.msrb.mxu1 %v5002_v20  ;;  %1599 = vmatpush.bf16.msrb.mxu0 %v4977_v21  ;;  %v759_v20 = vunpack.c.l.b16 %v749_v15  ;;  %v5035_v21 = vld [vmem:[%s7721_s0 + $0x1b8] sm:$0xff] }
  0x84   : > { %v762_v25 = vpack.c.b16 %v759_v20, %v759_v20 }
  0x85   : > { %1278 = vmatpush.bf16.msrb.mxu2 %v5009_v22  ;;  %1511 = vmatpush.bf16.msrb.mxu3 %v4968_v23  ;;  %v5043_v22 = vld [vmem:[%s7721_s0 + $0x1f8] sm:$0xff] }
  0x86   : > { %1189 = vmatpush.bf16.msrb.mxu1 %v5001_v28  ;;  %1600 = vmatpush.bf16.msrb.mxu0 %v4976_v29  ;;  %v4987_v23 = vld [vmem:[%s7721_s0 + $0xb8] sm:$0xff]  ;;  %v912_v28 = vrot.slane %v762_v25, 1  ;;  %v513_v29 = vshll.u32 %v5457_v49, 16 }
  0x87   : > { %1110 = vmatmul.bf16.gmra.mxu0 %v5588_v32  ;;  %1130 = vmatmul.bf16.gmra.mxu1 %v5591_v33 }
  0x88   : > { %1150 = vmatmul.bf16.gmra.mxu2 %v5594_v34  ;;  %1170 = vmatmul.bf16.gmra.mxu3 %v5598_v35 }
  0x89   : > { %1279 = vmatpush.bf16.msrb.mxu2 %v5008_v30  ;;  %1512 = vmatpush.bf16.msrb.mxu3 %v4967_v31  ;;  %v769_v30 = vshll.u32 %v5461_v50, 16  ;;  %v791_v31 = vunpack.c.l.b16 %v751_v26 }
  0x8a   : > { %1190 = vmatpush.bf16.msrb.mxu1 %v5000_v36  ;;  %1601 = vmatpush.bf16.msrb.mxu0 %v4975_v37  ;;  %v5701_v36 = vsel %vm648_vm0, %v656_v2, %v658_v60  ;;  %v5706_v37 = vsel %vm648_vm0, %v664_v3, %v666_v62  ;;  %v767_v60 = vshrl.u32 %v5461_v50, 16 }
  0x8b   : > { %7754 = vst [vmem:[#allocation15_spill] sm:$0xff] %v5706_v37  ;;  %v792_v62 = vpack.c.b16 %v5059_v46, %v791_v31  ;;  %v5034_v31 = vld [vmem:[%s7721_s0 + $0x1b0] sm:$0xff] }
  0x8d   : > { %1280 = vmatpush.bf16.msrb.mxu2 %v5007_v38  ;;  %1513 = vmatpush.bf16.msrb.mxu3 %v4966_v39  ;;  %v5711_v38 = vsel %vm648_vm0, %v672_v4, %v674_v0  ;;  %v913_v39 = vsel %vm648_vm0, %v5656_v8, %v912_v28  ;;  %v793_v2 = vrot.slane %v792_v62, 1  ;;  %v505_v4 = vshll.u32 %v5446_v43, 16 }
  0x8e   : > { %1191 = vmatpush.bf16.msrb.mxu1 %v4999_v40  ;;  %1602 = vmatpush.bf16.msrb.mxu0 %v4974_v41  ;;  %v517_v40 = vshrl.u32 %v5457_v49, 16  ;;  %v515_v41 = vrot.slane %v513_v29, 1  ;;  %v525_v29 = vshrl.u32 %v5545_v16, 16 }
  0x91   : > { %1281 = vmatpush.bf16.msrb.mxu2 %v5006_v42  ;;  %1514 = vmatpush.bf16.msrb.mxu3 %v4965_v44  ;;  %v521_v42 = vshll.u32 %v5545_v16, 16  ;;  %v771_v44 = vrot.slane %v769_v30, 1  ;;  %v529_v30 = vshll.u32 %v5629_v45, 16 }
  0x92   : > { %1192 = vmatpush.bf16.msrb.mxu1 %v4998_v59  ;;  %1603 = vmatpush.bf16.msrb.mxu0 %v4973_v61  ;;  %v5053_v59 = vld [vmem:[%s5373_s25] sm:$0xff]   ;;  %v519_v61 = vor.u32 %v517_v40, %v515_v41  ;;  %v4986_v40 = vld [vmem:[%s7721_s0 + $0xb0] sm:$0xff] }
  0x93   : > { %v500_v0 = vshll.u32 %v5053_v59, 16  ;;  %v498_v3 = vshrl.u32 %v5053_v59, 16 }
  0x95   : > { %1282 = vmatpush.bf16.msrb.mxu2 %v5005_v63  ;;  %1515 = vmatpush.bf16.msrb.mxu3 %v4964_v1  ;;  %v523_v63 = vrot.slane %v521_v42, 1  ;;  %v772_v1 = vor.u32 %v771_v44, %v767_v60  ;;  %v502_v50 = vrot.slane %v500_v0, 1  ;;  %v531_v60 = vrot.slane %v529_v30, 1  ;;  %v5050_v44 = vld [vmem:[%s7721_s0 + $0x230] sm:$0xff] }
  0x96   : > { %1193 = vmatpush.bf16.msrb.mxu1 %v4997_v9  ;;  %1604 = vmatpush.bf16.msrb.mxu0 %v4972_v10  ;;  %v794_v10 = vsel %vm648_vm0, %v793_v2, %v5485_v58 }
  0x97   : > { %1115 = vmatmul.bf16.gmra.mxu0 %v5665_v11  ;;  %1135 = vmatmul.bf16.gmra.mxu1 %v5668_v12  ;;  %v524_v9 = vsel %vm496_vm1, %v519_v61, %v523_v63  ;;  %v773_v46 = vsel %vm496_vm1, %v772_v1, %v515_v41  ;;  %v527_v42 = vor.u32 %v525_v29, %v523_v63  ;;  %v858_v1 = vrot.slane %v5665_v11, 1  ;;  %v4985_v29 = vld [vmem:[%s7721_s0 + $0xa8] sm:$0xff] }
  0x98   : > { %1155 = vmatmul.bf16.gmra.mxu2 %v5671_v13  ;;  %1175 = vmatmul.bf16.gmra.mxu3 %v5676_v14  ;;  %v850_v15 = vrot.slane %v773_v46, 1  ;;  %v851_v20 = vrot.slane %v524_v9, 1 }
  0x99   : > { %2408 = vmatpush.bf16.msra.mxu2 %v5035_v21  ;;  %2497 = vmatpush.bf16.msra.mxu3 %v5043_v22  ;;  %v503_v21 = vor.u32 %v502_v50, %v498_v3  ;;  %v507_v22 = vrot.slane %v505_v4, 1  ;;  %v532_v62 = vsel %vm496_vm1, %v527_v42, %v531_v60  ;;  %v533_v50 = vshrl.u32 %v5629_v45, 16 }
  0x9a   : > { %1686 = vmatpush.bf16.msra.mxu1 %v4987_v23  ;;  %2586 = vmatpush.bf16.msra.mxu0 %v5051_v24  ;;  %v854_v23 = vrot.slane %v5588_v32, 1  ;;  %v853_v24 = vrot.slane %v794_v10, 1  ;;  %v852_v25 = vsel %vm648_vm0, %v850_v15, %v851_v20  ;;  %v856_v0 = vrot.slane %v532_v62, 1 }
  0x9b   : > { %v508_v26 = vsel %vm496_vm1, %v503_v21, %v507_v22  ;;  %v537_v4 = vshll.u32 %v5464_v51, 16  ;;  %v535_v46 = vor.u32 %v533_v50, %v531_v60  ;;  %v549_v42 = vshrl.u32 %v5467_v52, 16 }
  0x9c   : > { %v855_v28 = vsel %vm648_vm0, %v853_v24, %v854_v23  ;;  %v857_v2 = vsel %vm648_vm0, %v851_v20, %v856_v0  ;;  %v859_v3 = vsel %vm648_vm0, %v854_v23, %v858_v1  ;;  %v862_v20 = vrot.slane %v5701_v36, 1 }
  0x9d   : > { %2409 = vmatpush.bf16.msra.mxu2 %v5034_v31  ;;  %v539_v10 = vrot.slane %v537_v4, 1  ;;  %v541_v23 = vshrl.u32 %v5464_v51, 16  ;;  %v545_v24 = vshll.u32 %v5467_v52, 16  ;;  %v866_v31 = vrot.slane %v5505_v5, 1 }
  0x9e   : > { %1687 = vmatpush.bf16.msra.mxu1 %v4986_v40  ;;  %2587 = vmatpush.bf16.msra.mxu0 %v5050_v44  ;;  %v553_v60 = vshll.u32 %v5548_v17, 16  ;;  %v561_v4 = vshll.u32 %v5632_v47, 16 }
  0x9f   : > { %v540_v15 = vsel %vm496_vm1, %v535_v46, %v539_v10  ;;  %v867_v40 = vsel %vm648_vm0, %v862_v20, %v866_v31  ;;  %v5040_v46 = vld [vmem:[%s7721_s0 + $0x1e0] sm:$0xff] }
  0xa0   : > { %v860_v21 = vrot.slane %v540_v15, 1 }
  0xa2   : > { %1688 = vmatpush.bf16.msra.mxu1 %v4985_v29 }
  0xa7   : > { %1120 = vmatmul.bf16.gmra.mxu0 %v5701_v36  ;;  %1140 = vmatmul.bf16.gmra.mxu1 %v5706_v37 }
  0xa8   : > { %1160 = vmatmul.bf16.gmra.mxu2 %v5711_v38  ;;  %1180 = vmatmul.bf16.gmra.mxu3 %v913_v39  ;;  %v5042_v39 = vld [vmem:[%s7721_s0 + $0x1f0] sm:$0xff] }
  0xa9   : > { %2498 = vmatpush.bf16.msra.mxu3 %v5042_v39 }
  0xb7   : > { %1194 = vmatmul.bf16.vlgmr.msrb.gmra.mxu1 %v852_v25  ;;  %1605 = vmatmul.bf16.vlgmr.msrb.gmra.mxu0 %v508_v26  ;;  %v5041_v25 = vld [vmem:[%s7721_s0 + $0x1e8] sm:$0xff]  ;;  %v543_v26 = vor.u32 %v541_v23, %v539_v10  ;;  %v5048_v23 = vld [vmem:[%s7721_s0 + $0x220] sm:$0xff] }
  0xb8   : > { %1283 = vmatmul.bf16.vlgmr.msrb.gmra.mxu2 %v855_v28  ;;  %1516 = vmatmul.bf16.vlgmr.msrb.gmra.mxu3 %v5053_v59  ;;  %v509_v59 = vshrl.u32 %v5446_v43, 16  ;;  %v547_v28 = vrot.slane %v545_v24, 1 }
  0xb9   : > { %2499 = vmatpush.bf16.msra.mxu3 %v5041_v25  ;;  %v874_v25 = vrot.slane %v5668_v12, 1  ;;  %v585_v12 = vshll.u32 %v5551_v18, 16 }
  0xba   : > { %v511_v61 = vor.u32 %v509_v59, %v507_v22  ;;  %v863_v22 = vsel %vm648_vm0, %v858_v1, %v862_v20  ;;  %v551_v44 = vor.u32 %v549_v42, %v547_v28  ;;  %v555_v59 = vrot.slane %v553_v60, 1 }
  0xbb   : > { %v870_v1 = vrot.slane %v5591_v33, 1 }
  0xbc   : > { %v516_v63 = vsel %vm496_vm1, %v511_v61, %v515_v41  ;;  %v861_v41 = vsel %vm648_vm0, %v856_v0, %v860_v21  ;;  %v556_v0 = vsel %vm496_vm1, %v551_v44, %v555_v59 }
  0xbd   : > { %v868_v61 = vrot.slane %v556_v0, 1  ;;  %v871_v50 = vsel %vm648_vm0, %v866_v31, %v870_v1  ;;  %2500 = vmatpush.bf16.msra.mxu3 %v5040_v46  ;;  %v875_v31 = vsel %vm648_vm0, %v870_v1, %v874_v25 }
  0xc7   : > { %1199 = vmatmul.bf16.gmra.mxu1 %v857_v2  ;;  %1610 = vmatmul.bf16.gmra.mxu0 %v516_v63 }
  0xc8   : > { %1288 = vmatmul.bf16.gmra.mxu2 %v859_v3  ;;  %1521 = vmatmul.bf16.gmra.mxu3 %v5446_v43  ;;  %v5033_v43 = vld [vmem:[%s7721_s0 + $0x1a8] sm:$0xff] }
  0xc9   : > { %2410 = vmatpush.bf16.msra.mxu2 %v5033_v43 }
  0xd7   : > { %1204 = vmatmul.bf16.gmra.mxu1 %v861_v41  ;;  %1615 = vmatmul.bf16.gmra.mxu0 %v524_v9  ;;  %v548_v9 = vsel %vm496_vm1, %v543_v26, %v547_v28 }
  0xd8   : > { %1293 = vmatmul.bf16.gmra.mxu2 %v863_v22  ;;  %1526 = vmatmul.bf16.gmra.mxu3 %v5457_v49  ;;  %v5049_v49 = vld [vmem:[%s7721_s0 + $0x228] sm:$0xff]  ;;  %v864_v30 = vrot.slane %v548_v9, 1 }
  0xd9   : > { %2588 = vmatpush.bf16.msra.mxu0 %v5049_v49 }
  0xda   : > { %v865_v39 = vsel %vm648_vm0, %v860_v21, %v864_v30  ;;  %v869_v3 = vsel %vm648_vm0, %v864_v30, %v868_v61  ;;  %v563_v21 = vrot.slane %v561_v4, 1 }
  0xdd   : > { %2589 = vmatpush.bf16.msra.mxu0 %v5048_v23  ;;  %v5031_v23 = vld [vmem:[%s7721_s0 + $0x198] sm:$0xff] }
  0xe7   : > { %1209 = vmatmul.bf16.gmra.mxu1 %v865_v39  ;;  %1620 = vmatmul.bf16.gmra.mxu0 %v532_v62  ;;  %v557_v62 = vshrl.u32 %v5548_v17, 16  ;;  %v565_v39 = vshrl.u32 %v5632_v47, 16 }
  0xe8   : > { %1298 = vmatmul.bf16.gmra.mxu2 %v867_v40  ;;  %1531 = vmatmul.bf16.gmra.mxu3 %v5545_v16  ;;  %v5032_v16 = vld [vmem:[%s7721_s0 + $0x1a0] sm:$0xff]  ;;  %v569_v40 = vshll.u32 %v5470_v53, 16 }
  0xe9   : > { %v559_v10 = vor.u32 %v557_v62, %v555_v59  ;;  %2411 = vmatpush.bf16.msra.mxu2 %v5032_v16  ;;  %v567_v42 = vor.u32 %v565_v39, %v563_v21  ;;  %v878_v62 = vrot.slane %v5706_v37, 1  ;;  %v581_v37 = vshrl.u32 %v5473_v54, 16 }
  0xea   : > { %v571_v60 = vrot.slane %v569_v40, 1 }
  0xeb   : > { %v5814_v24 = vsel %vm496_vm1, %v559_v10, %v563_v21  ;;  %v879_v10 = vsel %vm648_vm0, %v874_v25, %v878_v62  ;;  %v573_v21 = vshrl.u32 %v5470_v53, 16 }
  0xec   : > { %v872_v43 = vrot.slane %v5814_v24, 1  ;;  %v572_v1 = vsel %vm496_vm1, %v567_v42, %v571_v60  ;;  %v4983_v42 = vld [vmem:[%s7721_s0 + $0x98] sm:$0xff] }
  0xed   : > { %2412 = vmatpush.bf16.msra.mxu2 %v5031_v23 }
  0xee   : > { %v873_v30 = vsel %vm648_vm0, %v868_v61, %v872_v43 }
  0xf4   : > { %v5784_v2 = vpop.f32.mrf.mxu0  ;;  %v5786_v63 = vpop.f32.mrf.mxu1 }
  0xf7   : > { %1214 = vmatmul.bf16.gmra.mxu1 %v869_v3  ;;  %1625 = vmatmul.bf16.gmra.mxu0 %v540_v15 }
  0xf8   : > { %1303 = vmatmul.bf16.gmra.mxu2 %v871_v50  ;;  %1536 = vmatmul.bf16.gmra.mxu3 %v5629_v45  ;;  %v4984_v45 = vld [vmem:[%s7721_s0 + $0xa0] sm:$0xff]  ;;  %v876_v50 = vrot.slane %v572_v1, 1 }
  0xf9   : > { %1689 = vmatpush.bf16.msra.mxu1 %v4984_v45  ;;  %v577_v45 = vshll.u32 %v5473_v54, 16 }
  0xfa   : > { %v877_v46 = vsel %vm648_vm0, %v872_v43, %v876_v50  ;;  %v575_v43 = vor.u32 %v573_v21, %v571_v60  ;;  %v5047_v60 = vld [vmem:[%s7721_s0 + $0x218] sm:$0xff] }
  0xfb   : > { %v5799_v20 = vpop.f32.mrf.mxu2  ;;  %v5801_v41 = vpop.f32.mrf.mxu3  ;;  %2590 = vmatpush.bf16.msra.mxu0 %v5047_v60  ;;  %v587_v60 = vrot.slane %v585_v12, 1 }
  0xfc   : > { %7755 = vst [vmem:[#allocation16_spill] sm:$0xff] %v5801_v41  ;;  %v5803_v15 = vpop.f32.mrf.mxu0  ;;  %v5805_v22 = vpop.f32.mrf.mxu1  ;;  %v597_v41 = vshrl.u32 %v5635_v48, 16 }
  0xfd   : > { %1690 = vmatpush.bf16.msra.mxu1 %v4983_v42 }
 0x103   : > { %v5818_v26 = vpop.f32.mrf.mxu2  ;;  %v5820_v28 = vpop.f32.mrf.mxu3 }
 0x104   : > { %7756 = vst [vmem:[#allocation17_spill] sm:$0xff] %v5820_v28  ;;  %v5822_v29 = vpop.f32.mrf.mxu0  ;;  %v5824_v49 = vpop.f32.mrf.mxu1  ;;  %v4982_v28 = vld [vmem:[%s7721_s0 + $0x90] sm:$0xff] }
 0x105   : > { %1691 = vmatpush.bf16.msra.mxu1 %v4982_v28  ;;  %v601_v28 = vshll.u32 %v5476_v55, 16 }
 0x107   : > { %1219 = vmatmul.bf16.gmra.mxu1 %v873_v30  ;;  %1630 = vmatmul.bf16.gmra.mxu0 %v548_v9  ;;  %v5039_v30 = vld [vmem:[%s7721_s0 + $0x1d8] sm:$0xff] }
 0x108   : > { %1308 = vmatmul.bf16.gmra.mxu2 %v875_v31  ;;  %1541 = vmatmul.bf16.gmra.mxu3 %v5464_v51  ;;  %v579_v31 = vrot.slane %v577_v45, 1 }
 0x109   : > { %2501 = vmatpush.bf16.msra.mxu3 %v5039_v30 }
 0x10a   : > { %v583_v42 = vor.u32 %v581_v37, %v579_v31 }
 0x10b   : > { %v5831_v44 = vpop.f32.mrf.mxu2  ;;  %v5833_v59 = vpop.f32.mrf.mxu3 }
 0x10c   : > { %7757 = vst [vmem:[#allocation18_spill] sm:$0xff] %v5833_v59  ;;  %v5835_v3 = vpop.f32.mrf.mxu0  ;;  %v5837_v61 = vpop.f32.mrf.mxu1 }
 0x113   : > { %v5841_v4 = vpop.f32.mrf.mxu2  ;;  %v5843_v9 = vpop.f32.mrf.mxu3 }
 0x114   : > { %7758 = vst [vmem:[#allocation19_spill] sm:$0xff] %v5843_v9  ;;  %v5845_v51 = vpop.f32.mrf.mxu0  ;;  %v5847_v16 = vpop.f32.mrf.mxu1  ;;  %v589_v9 = vshrl.u32 %v5551_v18, 16 }
 0x117   : > { %1224 = vmatmul.bf16.gmra.mxu1 %v877_v46  ;;  %1635 = vmatmul.bf16.gmra.mxu0 %v556_v0 }
 0x118   : > { %1313 = vmatmul.bf16.gmra.mxu2 %v879_v10  ;;  %1546 = vmatmul.bf16.gmra.mxu3 %v5467_v52  ;;  %v5869_v52 = vsel %vm496_vm1, %v575_v43, %v579_v31  ;;  %v882_v10 = vrot.slane %v5510_v6, 1 }
 0x119   : > { %v880_v46 = vrot.slane %v5869_v52, 1 }
 0x11a   : > { %v883_v27 = vsel %vm648_vm0, %v878_v62, %v882_v10  ;;  %v5902_v62 = vsel %vm496_vm1, %v583_v42, %v587_v60  ;;  %v593_v42 = vshll.u32 %v5635_v48, 16 }
 0x11b   : > { %v5860_v25 = vpop.f32.mrf.mxu2  ;;  %v5862_v39 = vpop.f32.mrf.mxu3  ;;  %v881_v43 = vsel %vm648_vm0, %v876_v50, %v880_v46 }
 0x11c   : > { %7759 = vst [vmem:[#allocation20_spill] sm:$0xff] %v5862_v39  ;;  %v5864_v0 = vpop.f32.mrf.mxu0  ;;  %v5866_v40 = vpop.f32.mrf.mxu1 }
 0x123   : > { %v5879_v21 = vpop.f32.mrf.mxu2  ;;  %v5881_v45 = vpop.f32.mrf.mxu3 }
 0x124   : > { %7760 = vst [vmem:[#allocation21_spill] sm:$0xff] %v5881_v45  ;;  %v5883_v23 = vpop.f32.mrf.mxu0  ;;  %v5885_v30 = vpop.f32.mrf.mxu1 }
 0x127   : > { %1229 = vmatmul.bf16.gmra.mxu1 %v881_v43  ;;  %1640 = vmatmul.bf16.gmra.mxu0 %v5814_v24  ;;  %v884_v43 = vrot.slane %v5902_v62, 1  ;;  %v886_v24 = vrot.slane %v5594_v34, 1  ;;  %v5030_v34 = vld [vmem:[%s7721_s0 + $0x190] sm:$0xff] }
 0x128   : > { %1318 = vmatmul.bf16.gmra.mxu2 %v883_v27  ;;  %1551 = vmatmul.bf16.gmra.mxu3 %v5548_v17 }
 0x129   : > { %v885_v31 = vsel %vm648_vm0, %v880_v46, %v884_v43  ;;  %v887_v33 = vsel %vm648_vm0, %v882_v10, %v886_v24  ;;  %v5038_v46 = vld [vmem:[%s7721_s0 + $0x1d0] sm:$0xff]  ;;  %2413 = vmatpush.bf16.msra.mxu2 %v5030_v34 }
 0x12a   : > { %2502 = vmatpush.bf16.msra.mxu3 %v5038_v46  ;;  %v5046_v34 = vld [vmem:[%s7721_s0 + $0x210] sm:$0xff] }
 0x12b   : > { %v5893_v6 = vpop.f32.mrf.mxu2  ;;  %v5895_v45 = vpop.f32.mrf.mxu3  ;;  %2591 = vmatpush.bf16.msra.mxu0 %v5046_v34 }
 0x12c   : > { %7761 = vst [vmem:[#allocation22_spill] sm:$0xff] %v5895_v45  ;;  %v5897_v39 = vpop.f32.mrf.mxu0  ;;  %v5899_v50 = vpop.f32.mrf.mxu1 }
 0x133   : > { %v5906_v27 = vpop.f32.mrf.mxu2  ;;  %v5908_v17 = vpop.f32.mrf.mxu3 }
 0x134   : > { %7762 = vst [vmem:[#allocation23_spill] sm:$0xff] %v5908_v17  ;;  %v1195_v12 = vpop.f32.mrf.mxu1  ;;  %v1606_v37 = vpop.f32.mrf.mxu0 }
 0x135   : > { %v1196_v45 = vadd.f32 %v1195_v12, %v5784_v2  ;;  %v591_v2 = vor.u32 %v589_v9, %v587_v60  ;;  %v595_v12 = vrot.slane %v593_v42, 1 }
 0x137   : > { %1234 = vmatmul.bf16.gmra.mxu1 %v885_v31  ;;  %1645 = vmatmul.bf16.gmra.mxu0 %v572_v1 }
 0x138   : > { %1323 = vmatmul.bf16.gmra.mxu2 %v887_v33  ;;  %1556 = vmatmul.bf16.gmra.mxu3 %v5632_v47  ;;  %v5924_v47 = vsel %vm496_vm1, %v591_v2, %v595_v12 }
 0x139   : > { %v888_v9 = vrot.slane %v5924_v47, 1 }
 0x13b   : > { %v1284_v10 = vpop.f32.mrf.mxu2  ;;  %v1517_v17 = vpop.f32.mrf.mxu3  ;;  %v889_v2 = vsel %vm648_vm0, %v884_v43, %v888_v9 }
 0x13c   : > { %v1285_v59 = vadd.f32 %v1284_v10, %v1196_v45  ;;  %v1197_v31 = vpop.f32.mrf.mxu1  ;;  %v1608_v1 = vpop.f32.mrf.mxu0 }
 0x13d   : > { %v1198_v33 = vadd.f32 %v1197_v31, %v5803_v15  ;;  %v890_v15 = vrot.slane %v5671_v13, 1 }
 0x13e   : > { %v1518_v5 = vadd.f32 %v1517_v17, %v1285_v59 }
 0x13f   : > { %v891_v31 = vsel %vm648_vm0, %v886_v24, %v890_v15 }
 0x140   : > { %v5933_v45 = vadd.f32 %v1606_v37, %v1518_v5  ;;  %v599_v37 = vor.u32 %v597_v41, %v595_v12 }
 0x142   : > { %7763 = vst [vmem:[#allocation24_spill] sm:$0xff] %v5933_v45 }
 0x143   : > { %v1286_v60 = vpop.f32.mrf.mxu2  ;;  %v1519_v42 = vpop.f32.mrf.mxu3 }
 0x144   : > { %v1287_v46 = vadd.f32 %v1286_v60, %v1198_v33  ;;  %v1200_v59 = vpop.f32.mrf.mxu1  ;;  %v1611_v17 = vpop.f32.mrf.mxu0  ;;  %v603_v33 = vrot.slane %v601_v28, 1 }
 0x145   : > { %v1201_v10 = vadd.f32 %v1200_v59, %v5822_v29 }
 0x146   : > { %v1520_v34 = vadd.f32 %v1519_v42, %v1287_v46  ;;  %v5947_v45 = vsel %vm496_vm1, %v599_v37, %v603_v33  ;;  %v609_v37 = vshll.u32 %v5479_v56, 16 }
 0x147   : > { %1239 = vmatmul.bf16.gmra.mxu1 %v889_v2  ;;  %1650 = vmatmul.bf16.gmra.mxu0 %v5869_v52  ;;  %v892_v52 = vrot.slane %v5947_v45, 1 }
 0x148   : > { %1328 = vmatmul.bf16.gmra.mxu2 %v891_v31  ;;  %1561 = vmatmul.bf16.gmra.mxu3 %v5470_v53  ;;  %v5943_v5 = vadd.f32 %v1608_v1, %v1520_v34  ;;  %v894_v53 = vrot.slane %v5711_v38, 1  ;;  %v605_v34 = vshrl.u32 %v5476_v55, 16 }
 0x14a   : > { %v607_v55 = vor.u32 %v605_v34, %v603_v33  ;;  %v5045_v33 = vld [vmem:[%s7721_s0 + $0x208] sm:$0xff] }
 0x14b   : > { %v1289_v43 = vpop.f32.mrf.mxu2  ;;  %v1522_v60 = vpop.f32.mrf.mxu3  ;;  %2592 = vmatpush.bf16.msra.mxu0 %v5045_v33 }
 0x14c   : > { %v1290_v29 = vadd.f32 %v1289_v43, %v1201_v10  ;;  %v1202_v59 = vpop.f32.mrf.mxu1  ;;  %v1613_v24 = vpop.f32.mrf.mxu0  ;;  %v893_v10 = vsel %vm648_vm0, %v888_v9, %v892_v52 }
 0x14d   : > { %v1203_v13 = vadd.f32 %v1202_v59, %v5835_v3  ;;  %v895_v3 = vsel %vm648_vm0, %v890_v15, %v894_v53  ;;  %v611_v15 = vrot.slane %v609_v37, 1 }
 0x14e   : > { %v1523_v42 = vadd.f32 %v1522_v60, %v1290_v29 }
 0x150   : > { %v5950_v46 = vadd.f32 %v1611_v17, %v1523_v42  ;;  %v5970_v42 = vsel %vm496_vm1, %v607_v55, %v611_v15  ;;  %v617_v55 = vshll.u32 %v5554_v19, 16 }
 0x153   : > { %v1291_v1 = vpop.f32.mrf.mxu2  ;;  %v1524_v41 = vpop.f32.mrf.mxu3 }
 0x154   : > { %v1292_v12 = vadd.f32 %v1291_v1, %v1203_v13  ;;  %v1205_v2 = vpop.f32.mrf.mxu1  ;;  %v1616_v31 = vpop.f32.mrf.mxu0  ;;  %v5029_v13 = vld [vmem:[%s7721_s0 + $0x188] sm:$0xff] }
 0x155   : > { %v1206_v28 = vadd.f32 %v1205_v2, %v5845_v51  ;;  %v5037_v51 = vld [vmem:[%s7721_s0 + $0x1c8] sm:$0xff]  ;;  %2414 = vmatpush.bf16.msra.mxu2 %v5029_v13 }
 0x156   : > { %v1525_v43 = vadd.f32 %v1524_v41, %v1292_v12  ;;  %2503 = vmatpush.bf16.msra.mxu3 %v5037_v51  ;;  %v896_v41 = vrot.slane %v5970_v42, 1  ;;  %v613_v51 = vshrl.u32 %v5479_v56, 16 }
 0x157   : > { %1244 = vmatmul.bf16.gmra.mxu1 %v893_v10  ;;  %1655 = vmatmul.bf16.gmra.mxu0 %v5902_v62 }
 0x158   : > { %1333 = vmatmul.bf16.gmra.mxu2 %v895_v3  ;;  %1566 = vmatmul.bf16.gmra.mxu3 %v5473_v54  ;;  %v5966_v9 = vadd.f32 %v1613_v24, %v1525_v43  ;;  %v4981_v24 = vld [vmem:[%s7721_s0 + $0x88] sm:$0xff]  ;;  %v897_v37 = vsel %vm648_vm0, %v892_v52, %v896_v41 }
 0x159   : > { %1692 = vmatpush.bf16.msra.mxu1 %v4981_v24 }
 0x15b   : > { %v1294_v17 = vpop.f32.mrf.mxu2  ;;  %v1527_v60 = vpop.f32.mrf.mxu3 }
 0x15c   : > { %v1295_v62 = vadd.f32 %v1294_v17, %v1206_v28  ;;  %v1207_v29 = vpop.f32.mrf.mxu1  ;;  %v1618_v59 = vpop.f32.mrf.mxu0 }
 0x15d   : > { %v1208_v54 = vadd.f32 %v1207_v29, %v5864_v0  ;;  %v898_v0 = vrot.slane %v5515_v7, 1 }
 0x15e   : > { %v1528_v1 = vadd.f32 %v1527_v60, %v1295_v62  ;;  %v615_v60 = vor.u32 %v613_v51, %v611_v15  ;;  %v619_v62 = vrot.slane %v617_v55, 1 }
 0x15f   : > { %v899_v13 = vsel %vm648_vm0, %v894_v53, %v898_v0 }
 0x160   : > { %v5979_v12 = vadd.f32 %v1616_v31, %v1528_v1  ;;  %v5993_v1 = vsel %vm496_vm1, %v615_v60, %v619_v62 }
 0x163   : > { %v1296_v2 = vpop.f32.mrf.mxu2  ;;  %v1529_v10 = vpop.f32.mrf.mxu3 }
 0x164   : > { %v1297_v28 = vadd.f32 %v1296_v2, %v1208_v54  ;;  %v1210_v3 = vpop.f32.mrf.mxu1  ;;  %v1621_v34 = vpop.f32.mrf.mxu0 }
 0x165   : > { %v1211_v43 = vadd.f32 %v1210_v3, %v5883_v23 }
 0x166   : > { %v1530_v17 = vadd.f32 %v1529_v10, %v1297_v28 }
 0x167   : > { %1249 = vmatmul.bf16.gmra.mxu1 %v897_v37  ;;  %1660 = vmatmul.bf16.gmra.mxu0 %v5924_v47  ;;  %v900_v47 = vrot.slane %v5993_v1, 1  ;;  %v621_v37 = vshrl.u32 %v5554_v19, 16 }
 0x168   : > { %1338 = vmatmul.bf16.gmra.mxu2 %v899_v13  ;;  %1571 = vmatmul.bf16.gmra.mxu3 %v5551_v18  ;;  %v5989_v31 = vadd.f32 %v1618_v59, %v1530_v17  ;;  %v902_v18 = vrot.slane %v5598_v35, 1  ;;  %v750_v17 = vld [vmem:[%s5373_s25 + $0x88] sm:$0x3] }
 0x169   : > { %v901_v3 = vsel %vm648_vm0, %v896_v41, %v900_v47  ;;  %v5036_v41 = vld [vmem:[%s7721_s0 + $0x1c0] sm:$0xff]  ;;  %v6013_v19 = vor.u32 %v621_v37, %v619_v62 }
 0x16a   : > { %2504 = vmatpush.bf16.msra.mxu3 %v5036_v41  ;;  %v4980_v62 = vld [vmem:[%s7721_s0 + $0x80] sm:$0xff]  ;;  %v779_v41 = vshrl.u32 %v5638_v57, 16 }
 0x16b   : > { %v1299_v52 = vpop.f32.mrf.mxu2  ;;  %v1532_v29 = vpop.f32.mrf.mxu3  ;;  %1693 = vmatpush.bf16.msra.mxu1 %v4980_v62  ;;  %v395_v62 = vld [vmem:[%s5373_s25 + $0x80] sm:$0x1] }
 0x16c   : > { %v1300_v23 = vadd.f32 %v1299_v52, %v1211_v43  ;;  %v1212_v54 = vpop.f32.mrf.mxu1  ;;  %v1623_v53 = vpop.f32.mrf.mxu0  ;;  %v775_v43 = vshll.u32 %v5638_v57, 16 }
 0x16d   : > { %v1213_v56 = vadd.f32 %v1212_v54, %v5897_v39  ;;  %v903_v39 = vsel %vm648_vm0, %v898_v0, %v902_v18  ;;  %v764_v54 = vunpack.c.l.b16 %v750_v17 }
 0x16e   : > { %v1533_v24 = vadd.f32 %v1532_v29, %v1300_v23  ;;  %v777_v51 = vrot.slane %v775_v43, 1 }
 0x170   : > { %v5996_v33 = vadd.f32 %v1621_v34, %v1533_v24  ;;  %v5028_v34 = vld [vmem:[%s7721_s0 + $0x180] sm:$0xff]  ;;  %v778_v23 = vsel %vm496_vm1, %v6013_v19, %v777_v51  ;;  %v781_v17 = vor.u32 %v779_v41, %v777_v51 }
 0x171   : > { %2415 = vmatpush.bf16.msra.mxu2 %v5028_v34 }
 0x173   : > { %v1301_v59 = vpop.f32.mrf.mxu2  ;;  %v1534_v15 = vpop.f32.mrf.mxu3 }
 0x174   : > { %v1302_v2 = vadd.f32 %v1301_v59, %v1213_v56  ;;  %v1215_v10 = vpop.f32.mrf.mxu1  ;;  %v1626_v28 = vpop.f32.mrf.mxu0  ;;  %v906_v59 = vrot.slane %v5676_v14, 1  ;;  %v5224_v14 = vld [vmem:[%s5373_s25 + $0x68] sm:$0xff] }
 0x175   : > { %v1216_v55 = vadd.f32 %v1215_v10, %v5786_v63  ;;  %v5044_v63 = vld [vmem:[%s7721_s0 + $0x200] sm:$0xff] }
 0x176   : > { %v1535_v13 = vadd.f32 %v1534_v15, %v1302_v2  ;;  %2593 = vmatpush.bf16.msra.mxu0 %v5044_v63  ;;  %v6028_v15 = vpack.c.b16 %v764_v54, %v764_v54  ;;  %v907_v34 = vsel %vm648_vm0, %v902_v18, %v906_v59 }
 0x177   : > { %1254 = vmatmul.bf16.gmra.mxu1 %v901_v3  ;;  %1665 = vmatmul.bf16.gmra.mxu0 %v5947_v45 }
 0x178   : > { %1343 = vmatmul.bf16.gmra.mxu2 %v903_v39  ;;  %1576 = vmatmul.bf16.gmra.mxu3 %v5635_v48  ;;  %v6011_v0 = vadd.f32 %v1623_v53, %v1535_v13  ;;  %v904_v53 = vrot.slane %v778_v23, 1  ;;  %v797_v18 = vrot.slane %v6028_v15, 1 }
 0x17a   : > { %v905_v13 = vsel %vm648_vm0, %v900_v47, %v904_v53 }
 0x17b   : > { %v1304_v45 = vpop.f32.mrf.mxu2  ;;  %v1537_v48 = vpop.f32.mrf.mxu3 }
 0x17c   : > { %v1305_v60 = vadd.f32 %v1304_v45, %v1216_v55  ;;  %v1217_v52 = vpop.f32.mrf.mxu1  ;;  %v1628_v29 = vpop.f32.mrf.mxu0 }
 0x17d   : > { %v1218_v2 = vadd.f32 %v1217_v52, %v5805_v22 }
 0x17e   : > { %v1538_v56 = vadd.f32 %v1537_v48, %v1305_v60 }
 0x180   : > { %v6025_v24 = vadd.f32 %v1626_v28, %v1538_v56  ;;  %v783_v28 = vshll.u32 %v6028_v15, 16  ;;  %v798_v56 = vsel %vm648_vm0, %v5656_v8, %v797_v18 }
 0x181   : > { %v910_v51 = vrot.slane %v798_v56, 1 }
 0x182   : > { %v785_v45 = vrot.slane %v783_v28, 1  ;;  %v1775_v28 = vld [vmem:[%s5373_s25 + $0x10] sm:$0xc] }
 0x183   : > { %v1306_v10 = vpop.f32.mrf.mxu2  ;;  %v1539_v3 = vpop.f32.mrf.mxu3  ;;  %v911_v41 = vsel %vm648_vm0, %v906_v59, %v910_v51 }
 0x184   : > { %v1307_v39 = vadd.f32 %v1306_v10, %v1218_v2  ;;  %v1220_v37 = vpop.f32.mrf.mxu1  ;;  %v1631_v43 = vpop.f32.mrf.mxu0  ;;  %v786_v54 = vsel %vm496_vm1, %v781_v17, %v785_v45 }
 0x185   : > { %v1221_v47 = vadd.f32 %v1220_v37, %v5824_v49 }
 0x186   : > { %v1540_v55 = vadd.f32 %v1539_v3, %v1307_v39 }
 0x187   : > { %1259 = vmatmul.bf16.gmra.mxu1 %v905_v13  ;;  %1670 = vmatmul.bf16.gmra.mxu0 %v5970_v42 }
 0x188   : > { %1348 = vmatmul.bf16.gmra.mxu2 %v907_v34  ;;  %1581 = vmatmul.bf16.gmra.mxu3 %v5224_v14  ;;  %v6037_v22 = vadd.f32 %v1628_v29, %v1540_v55  ;;  %v908_v29 = vrot.slane %v786_v54, 1  ;;  %v494_v34 = vunpack.c.l.b16 %v395_v62  ;;  %v1776_v55 = vld [vmem:[%s5373_s25 + $0x14] sm:$0xf]  ;;  %v6064_v62 = vld [vmem:[%s5373_s25 + $0x18] sm:$0xff] }
 0x18a   : > { %v909_v13 = vsel %vm648_vm0, %v904_v53, %v908_v29  ;;  %v6055_v14 = vpack.c.b16 %v494_v34, %v494_v34  ;;  %v1843_v53 = vunpack.c.l.b16 %v1775_v28  ;;  %v6072_v34 = vld [vmem:[%s5373_s25 + $0x20] sm:$0xff] }
 0x18b   : > { %v1309_v48 = vpop.f32.mrf.mxu2  ;;  %v1542_v57 = vpop.f32.mrf.mxu3 }
 0x18c   : > { %v1310_v60 = vadd.f32 %v1309_v48, %v1221_v47  ;;  %v1222_v52 = vpop.f32.mrf.mxu1  ;;  %v1633_v23 = vpop.f32.mrf.mxu0  ;;  %7764 = vst [vmem:[#allocation25_spill] sm:$0xff] %v6055_v14  ;;  %v1844_v47 = vunpack.c.l.b16 %v1776_v55 }
 0x18d   : > { %v1223_v49 = vadd.f32 %v1222_v52, %v5837_v61  ;;  %v787_v61 = vshrl.u32 %v6028_v15, 16 }
 0x18e   : > { %v1543_v42 = vadd.f32 %v1542_v57, %v1310_v60  ;;  %v6061_v56 = vpack.c.b16 %v1844_v47, %v1843_v53 }
 0x18f   : > { %v789_v54 = vor.u32 %v787_v61, %v785_v45  ;;  %v1904_v45 = vshll.u32 %v6064_v62, 16 }
 0x190   : > { %v6045_v63 = vadd.f32 %v1631_v43, %v1543_v42  ;;  %v5225_v43 = vld [vmem:[%s5373_s25 + $0x70] sm:$0xff]  ;;  %v625_v42 = vshll.u32 %v6055_v14, 16 }
 0x193   : > { %v1311_v2 = vpop.f32.mrf.mxu2  ;;  %v1544_v10 = vpop.f32.mrf.mxu3 }
 0x194   : > { %v1312_v3 = vadd.f32 %v1311_v2, %v1223_v49  ;;  %v1225_v39 = vpop.f32.mrf.mxu1  ;;  %v1636_v37 = vpop.f32.mrf.mxu0  ;;  %v914_v49 = vrot.slane %v789_v54, 1  ;;  %v627_v2 = vrot.slane %v625_v42, 1  ;;  %v5141_v54 = vld [vmem:[%s5373_s25] sm:$0xf0]  ;;  %v5142_v42 = vld [vmem:[%s5373_s25] sm:$0xe] }
 0x195   : > { %v1226_v59 = vadd.f32 %v1225_v39, %v5847_v16  ;;  %v916_v16 = vrot.slane %v797_v18, 1 }
 0x196   : > { %v1545_v8 = vadd.f32 %v1544_v10, %v1312_v3  ;;  %v1899_v3 = vshll.u32 %v6061_v56, 16  ;;  %v628_v18 = vsel %vm496_vm1, %v6013_v19, %v627_v2 }
 0x197   : > { %1264 = vmatmul.bf16.gmra.mxu1 %v909_v13  ;;  %1675 = vmatmul.bf16.gmra.mxu0 %v5993_v1  ;;  %v917_v61 = vsel %vm648_vm0, %v910_v51, %v916_v16  ;;  %v2035_v51 = vrot.slane %v6064_v62, 1 }
 0x198   : > { %1353 = vmatmul.bf16.gmra.mxu2 %v911_v41  ;;  %1586 = vmatmul.bf16.gmra.mxu3 %v5225_v43  ;;  %v6057_v17 = vadd.f32 %v1633_v23, %v1545_v8  ;;  %v1809_v23 = vld [vmem:[%s5373_s25 + $0x10] sm:$0x8]  ;;  %v1901_v53 = vrot.slane %v1899_v3, 1 }
 0x199   : > { %v2032_v39 = vunpack.c.l.b16 %v1809_v23  ;;  %v2037_v23 = vrot.slane %v6072_v34, 1 }
 0x19a   : > { %7765 = vst [vmem:[#allocation26_spill] sm:$0xff] %v6057_v17 }
 0x19b   : > { %v1314_v48 = vpop.f32.mrf.mxu2  ;;  %v1547_v57 = vpop.f32.mrf.mxu3 }
 0x19c   : > { %v1315_v60 = vadd.f32 %v1314_v48, %v1226_v59  ;;  %v1227_v1 = vpop.f32.mrf.mxu1  ;;  %v1638_v52 = vpop.f32.mrf.mxu0  ;;  %v2033_v59 = vpack.c.b16 %v1844_v47, %v2032_v39 }
 0x19d   : > { %v1228_v13 = vadd.f32 %v1227_v1, %v5866_v40  ;;  %v1897_v40 = vshrl.u32 %v6061_v56, 16  ;;  %v1912_v1 = vshll.u32 %v6072_v34, 16 }
 0x19e   : > { %v1548_v15 = vadd.f32 %v1547_v57, %v1315_v60  ;;  %v1906_v57 = vrot.slane %v1904_v45, 1  ;;  %v1908_v60 = vshrl.u32 %v6064_v62, 16 }
 0x19f   : > { %v1902_v19 = vor.u32 %v1901_v53, %v1897_v40  ;;  %v1914_v2 = vrot.slane %v1912_v1, 1  ;;  %v5227_v40 = vld [vmem:[%s5373_s25 + $0x8] sm:$0xff]   ;;  %v2117_v53 = vrot.slane %v6061_v56, 2 }
 0x1a0   : > { %v6067_v10 = vadd.f32 %v1636_v37, %v1548_v15  ;;  %v915_v37 = vsel %vm648_vm0, %v908_v29, %v914_v49  ;;  %v5226_v29 = vld [vmem:[%s5373_s25 + $0x78] sm:$0xff]  ;;  %v2034_v15 = vrot.slane %v2033_v59, 1  ;;  %v1910_v49 = vor.u32 %v1908_v60, %v1906_v57 }
 0x1a1   : > { %v2118_v60 = vrot.slane %v6064_v62, 2 }
 0x1a2   : > { %7766 = vst [vmem:[#allocation27_spill] sm:$0xff] %v6067_v10 }
 0x1a3   : > { %v1316_v41 = vpop.f32.mrf.mxu2  ;;  %v1549_v8 = vpop.f32.mrf.mxu3 }
 0x1a4   : > { %v1317_v28 = vadd.f32 %v1316_v41, %v1228_v13  ;;  %v1230_v55 = vpop.f32.mrf.mxu1  ;;  %v1641_v43 = vpop.f32.mrf.mxu0  ;;  %v5143_v13 = vor.u32 %v5142_v42, %v5141_v54  ;;  %v6099_v42 = vld [vmem:[%s5373_s25 + $0x28] sm:$0xff] }
 0x1a5   : > { %v1231_v47 = vadd.f32 %v1230_v55, %v5885_v30  ;;  %v1915_v30 = vsel %vm496_vm1, %v1910_v49, %v1914_v2 }
 0x1a6   : > { %v1550_v48 = vadd.f32 %v1549_v8, %v1317_v28  ;;  %v2036_v28 = vsel %vm648_vm0, %v2034_v15, %v2035_v51  ;;  %v649_v55 = vrot.slane %v5143_v13, 1 }
 0x1a7   : > { %1269 = vmatmul.bf16.gmra.mxu1 %v915_v37  ;;  %1680 = vmatmul.bf16.gmra.mxu0 %v628_v18  ;;  %v2038_v37 = vsel %vm648_vm0, %v2035_v51, %v2037_v23  ;;  %v2123_v59 = vrot.slane %v2036_v28, 2 }
 0x1a8   : > { %1358 = vmatmul.bf16.gmra.mxu2 %v917_v61  ;;  %1591 = vmatmul.bf16.gmra.mxu3 %v5226_v29  ;;  %v6088_v16 = vadd.f32 %v1638_v52, %v1550_v48  ;;  %v1907_v61 = vsel %vm496_vm1, %v1902_v19, %v1906_v57  ;;  %v650_v52 = vrot.slane %v5227_v40, 1  ;;  %v2124_v48 = vrot.slane %v2038_v37, 2 }
 0x1a9   : > { %v2120_v1 = vrot.slane %v1907_v61, 2  ;;  %v2121_v29 = vrot.slane %v1915_v30, 2 }
 0x1aa   : > { %7767 = vst [vmem:[#allocation28_spill] sm:$0xff] %v6088_v16  ;;  %v651_v56 = vsel %vm648_vm0, %v649_v55, %v650_v52 }
 0x1ab   : > { %v1319_v3 = vpop.f32.mrf.mxu2  ;;  %v1552_v39 = vpop.f32.mrf.mxu3  ;;  %v2122_v62 = vsel %vm2116_vm2, %v2120_v1, %v2121_v29 }
 0x1ac   : > { %v1320_v45 = vadd.f32 %v1319_v3, %v1231_v47  ;;  %v1232_v41 = vpop.f32.mrf.mxu1  ;;  %v1643_v8 = vpop.f32.mrf.mxu0  ;;  %v2125_v3 = vsel %vm2116_vm2, %v2123_v59, %v2124_v48 }
 0x1ad   : > { %v1233_v54 = vadd.f32 %v1232_v41, %v5899_v50  ;;  %v1916_v50 = vshrl.u32 %v6072_v34, 16 }
 0x1ae   : > { %v1553_v18 = vadd.f32 %v1552_v39, %v1320_v45  ;;  %v2119_v39 = vsel %vm2116_vm2, %v2117_v53, %v2118_v60  ;;  %v1920_v45 = vshll.u32 %v6099_v42, 16 }
 0x1af   : > { %v1918_v28 = vor.u32 %v1916_v50, %v1914_v2 }
 0x1b0   : > { %v6101_v15 = vadd.f32 %v1641_v43, %v1553_v18  ;;  %v2039_v43 = vrot.slane %v6099_v42, 1  ;;  %v1922_v37 = vrot.slane %v1920_v45, 1 }
 0x1b2   : > { %7768 = vst [vmem:[#allocation29_spill] sm:$0xff] %v6101_v15  ;;  %v2040_v53 = vsel %vm648_vm0, %v2037_v23, %v2039_v43  ;;  %v1923_v1 = vsel %vm496_vm1, %v1918_v28, %v1922_v37  ;;  %v653_v23 = vsel %vm648_vm0, %v650_v52, %v5485_v58 }
 0x1b3   : > { %v1321_v57 = vpop.f32.mrf.mxu2  ;;  %v1554_v19 = vpop.f32.mrf.mxu3 }
 0x1b4   : > { %v1322_v51 = vadd.f32 %v1321_v57, %v1233_v54  ;;  %v1235_v47 = vpop.f32.mrf.mxu1  ;;  %v1646_v49 = vpop.f32.mrf.mxu0  ;;  %v2130_v54 = vrot.slane %v2040_v53, 2  ;;  %v2126_v57 = vrot.slane %v6072_v34, 2 }
 0x1b5   : > { %v1236_v41 = vadd.f32 %v1235_v47, %v5799_v20 }
 0x1b6   : > { %v1555_v13 = vadd.f32 %v1554_v19, %v1322_v51  ;;  %v2128_v19 = vrot.slane %v1923_v1, 2  ;;  %v2131_v50 = vsel %vm2116_vm2, %v2124_v48, %v2130_v54  ;;  %v2127_v45 = vsel %vm2116_vm2, %v2118_v60, %v2126_v57 }
 0x1b7   : > { %1694 = vmatmul.bf16.vlgmr.msra.gmra.mxu1 %v651_v56  ;;  %2594 = vmatmul.bf16.vlgmr.msra.gmra.mxu0 %v2125_v3  ;;  %v6116_v56 = vld [vmem:[%s5373_s25 + $0x30] sm:$0xff] }
 0x1b8   : > { %2416 = vmatmul.bf16.vlgmr.msra.gmra.mxu2 %v2119_v39  ;;  %2505 = vmatmul.bf16.vlgmr.msra.gmra.mxu3 %v2122_v62  ;;  %v6118_v47 = vadd.f32 %v1643_v8, %v1555_v13  ;;  %v2129_v34 = vsel %vm2116_vm2, %v2121_v29, %v2128_v19  ;;  %v1928_v28 = vshll.u32 %v6116_v56, 16  ;;  %v2041_v8 = vrot.slane %v6116_v56, 1 }
 0x1ba   : > { %7769 = vst [vmem:[#allocation30_spill] sm:$0xff] %v6118_v47  ;;  %v1930_v52 = vrot.slane %v1928_v28, 1 }
 0x1bb   : > { %v1324_v18 = vpop.f32.mrf.mxu2  ;;  %v1557_v61 = vpop.f32.mrf.mxu3 }
 0x1bc   : > { %v1325_v30 = vadd.f32 %v1324_v18, %v1236_v41  ;;  %v1237_v55 = vpop.f32.mrf.mxu1  ;;  %v1648_v40 = vpop.f32.mrf.mxu0 }
 0x1bd   : > { %v1238_v51 = vadd.f32 %v1237_v55, %v5818_v26  ;;  %v1924_v26 = vshrl.u32 %v6099_v42, 16  ;;  %v2042_v55 = vsel %vm648_vm0, %v2039_v43, %v2041_v8 }
 0x1be   : > { %v1558_v59 = vadd.f32 %v1557_v61, %v1325_v30 }
 0x1bf   : > { %v1926_v58 = vor.u32 %v1924_v26, %v1922_v37  ;;  %v1932_v26 = vshrl.u32 %v6116_v56, 16 }
 0x1c0   : > { %v6129_v18 = vadd.f32 %v1646_v49, %v1558_v59 }
 0x1c1   : > { %v1931_v1 = vsel %vm496_vm1, %v1926_v58, %v1930_v52 }
 0x1c2   : > { %7770 = vst [vmem:[#allocation31_spill] sm:$0xff] %v6129_v18 }
 0x1c3   : > { %v1326_v20 = vpop.f32.mrf.mxu2  ;;  %v1559_v2 = vpop.f32.mrf.mxu3 }
 0x1c4   : > { %v1327_v3 = vadd.f32 %v1326_v20, %v1238_v51  ;;  %v1240_v39 = vpop.f32.mrf.mxu1  ;;  %v1651_v62 = vpop.f32.mrf.mxu0  ;;  %v2136_v51 = vrot.slane %v2042_v55, 2  ;;  %v2132_v20 = vrot.slane %v6099_v42, 2 }
 0x1c5   : > { %v1241_v13 = vadd.f32 %v1240_v39, %v5831_v44  ;;  %v2134_v44 = vrot.slane %v1931_v1, 2  ;;  %v2138_v1 = vrot.slane %v6116_v56, 2 }
 0x1c6   : > { %v1560_v41 = vadd.f32 %v1559_v2, %v1327_v3  ;;  %v6138_v2 = vld [vmem:[%s5373_s25 + $0x38] sm:$0xff] }
 0x1c7   : > { %1699 = vmatmul.bf16.gmra.mxu1 %v653_v23  ;;  %2599 = vmatmul.bf16.gmra.mxu0 %v2131_v50  ;;  %v2137_v50 = vsel %vm2116_vm2, %v2130_v54, %v2136_v51  ;;  %v2043_v28 = vrot.slane %v6138_v2, 1  ;;  %v1940_v56 = vshrl.u32 %v6138_v2, 16 }
 0x1c8   : > { %2421 = vmatmul.bf16.gmra.mxu2 %v2127_v45  ;;  %2510 = vmatmul.bf16.gmra.mxu3 %v2129_v34  ;;  %v6143_v43 = vadd.f32 %v1648_v40, %v1560_v41  ;;  %v2133_v45 = vsel %vm2116_vm2, %v2126_v57, %v2132_v20  ;;  %v2135_v34 = vsel %vm2116_vm2, %v2128_v19, %v2134_v44 }
 0x1c9   : > { %v1934_v40 = vor.u32 %v1932_v26, %v1930_v52 }
 0x1ca   : > { %7771 = vst [vmem:[#allocation32_spill] sm:$0xff] %v6143_v43 }
 0x1cb   : > { %v1329_v48 = vpop.f32.mrf.mxu2  ;;  %v1562_v60 = vpop.f32.mrf.mxu3 }
 0x1cc   : > { %v1330_v29 = vadd.f32 %v1329_v48, %v1241_v13  ;;  %v1242_v61 = vpop.f32.mrf.mxu1  ;;  %v6131_v30 = vpop.f32.mrf.mxu0 }
 0x1cd   : > { %v1243_v37 = vadd.f32 %v1242_v61, %v5841_v4  ;;  %v1936_v4 = vshll.u32 %v6138_v2, 16 }
 0x1ce   : > { %v1563_v53 = vadd.f32 %v1562_v60, %v1330_v29  ;;  %v2044_v60 = vsel %vm648_vm0, %v2041_v8, %v2043_v28 }
 0x1cf   : > { %v1938_v41 = vrot.slane %v1936_v4, 1  ;;  %v2142_v55 = vrot.slane %v2044_v60, 2 }
 0x1d0   : > { %v6156_v61 = vadd.f32 %v1651_v62, %v1563_v53 }
 0x1d1   : > { %v2143_v8 = vsel %vm2116_vm2, %v2136_v51, %v2142_v55  ;;  %v1942_v51 = vor.u32 %v1940_v56, %v1938_v41  ;;  %v7775_v56 = vld [vmem:[#allocation16_spill] sm:$0xff] }
 0x1d2   : > { %7772 = vst [vmem:[#allocation33_spill] sm:$0xff] %v6156_v61 }
 0x1d3   : > { %v1331_v3 = vpop.f32.mrf.mxu2  ;;  %v1564_v49 = vpop.f32.mrf.mxu3 }
 0x1d4   : > { %v1332_v59 = vadd.f32 %v1331_v3, %v1243_v37  ;;  %v1245_v39 = vpop.f32.mrf.mxu1  ;;  %v6140_v23 = vpop.f32.mrf.mxu0  ;;  %v6161_v37 = vld [vmem:[%s5373_s25 + $0x40] sm:$0xff] }
 0x1d5   : > { %v1246_v54 = vadd.f32 %v1245_v39, %v5860_v25 }
 0x1d6   : > { %v1565_v42 = vadd.f32 %v1564_v49, %v1332_v59 }
 0x1d7   : > { %1704 = vmatmul.bf16.gmra.mxu1 %v5588_v32  ;;  %2604 = vmatmul.bf16.gmra.mxu0 %v2137_v50  ;;  %v1939_v32 = vsel %vm496_vm1, %v1934_v40, %v1938_v41 }
 0x1d8   : > { %2426 = vmatmul.bf16.gmra.mxu2 %v2133_v45  ;;  %2515 = vmatmul.bf16.gmra.mxu3 %v2135_v34  ;;  %v2140_v25 = vrot.slane %v1939_v32, 2  ;;  %v2139_v45 = vsel %vm2116_vm2, %v2132_v20, %v2138_v1  ;;  %v1944_v34 = vshll.u32 %v6161_v37, 16  ;;  %v6184_v32 = vld [vmem:[%s5373_s25 + $0x48] sm:$0xff] }
 0x1da   : > { %v2141_v62 = vsel %vm2116_vm2, %v2134_v44, %v2140_v25  ;;  %v1946_v4 = vrot.slane %v1944_v34, 1 }
 0x1db   : > { %v1334_v57 = vpop.f32.mrf.mxu2  ;;  %v1567_v13 = vpop.f32.mrf.mxu3 }
 0x1dc   : > { %v1335_v19 = vadd.f32 %v1334_v57, %v1246_v54  ;;  %v1247_v58 = vpop.f32.mrf.mxu1  ;;  %v6152_v48 = vpop.f32.mrf.mxu0 }
 0x1dd   : > { %v1248_v52 = vadd.f32 %v1247_v58, %v5879_v21  ;;  %v2045_v21 = vrot.slane %v6161_v37, 1  ;;  %v1947_v58 = vsel %vm496_vm1, %v1942_v51, %v1946_v4 }
 0x1de   : > { %v1568_v29 = vadd.f32 %v1567_v13, %v1335_v19  ;;  %v6176_v13 = vadd.f32 %v6131_v30, %v1565_v42  ;;  %v2146_v41 = vrot.slane %v1947_v58, 2  ;;  %v6219_v58 = vstv %s4431_s23 }
 0x1e0   : > { %7773 = vst [vmem:[#allocation34_spill] sm:$0xff] %v6176_v13 }
 0x1e3   : > { %v1336_v3 = vpop.f32.mrf.mxu2  ;;  %v1569_v49 = vpop.f32.mrf.mxu3 }
 0x1e4   : > { %v1337_v59 = vadd.f32 %v1336_v3, %v1248_v52  ;;  %v1250_v39 = vpop.f32.mrf.mxu1  ;;  %v6163_v50 = vpop.f32.mrf.mxu0 }
 0x1e5   : > { %v1251_v26 = vadd.f32 %v1250_v39, %v5893_v6  ;;  %v2144_v6 = vrot.slane %v6138_v2, 2  ;;  %v1952_v2 = vshll.u32 %v6184_v32, 16 }
 0x1e6   : > { %v1570_v53 = vadd.f32 %v1569_v49, %v1337_v59 }
 0x1e7   : > { %1709 = vmatmul.bf16.gmra.mxu1 %v5665_v11  ;;  %2609 = vmatmul.bf16.gmra.mxu0 %v2143_v8  ;;  %v2046_v11 = vsel %vm648_vm0, %v2043_v28, %v2045_v21  ;;  %v2145_v28 = vsel %vm2116_vm2, %v2138_v1, %v2144_v6  ;;  %v2147_v8 = vsel %vm2116_vm2, %v2140_v25, %v2146_v41  ;;  %v1954_v1 = vrot.slane %v1952_v2, 1 }
 0x1e8   : > { %2431 = vmatmul.bf16.gmra.mxu2 %v2139_v45  ;;  %2520 = vmatmul.bf16.gmra.mxu3 %v2141_v62  ;;  %v2148_v60 = vrot.slane %v2046_v11, 2  ;;  %v1948_v45 = vshrl.u32 %v6161_v37, 16  ;;  %v2047_v25 = vrot.slane %v6184_v32, 1 }
 0x1ea   : > { %v2149_v42 = vsel %vm2116_vm2, %v2142_v55, %v2148_v60  ;;  %v1950_v55 = vor.u32 %v1948_v45, %v1946_v4  ;;  %v7778_v45 = vld [vmem:[#allocation17_spill] sm:$0xff] }
 0x1eb   : > { %v1339_v20 = vpop.f32.mrf.mxu2  ;;  %v1572_v54 = vpop.f32.mrf.mxu3 }
 0x1ec   : > { %v1340_v44 = vadd.f32 %v1339_v20, %v1251_v26  ;;  %v1252_v40 = vpop.f32.mrf.mxu1  ;;  %v6173_v57 = vpop.f32.mrf.mxu0  ;;  %v2707_v20 = vlaneseq }
 0x1ed   : > { %v1253_v52 = vadd.f32 %v1252_v40, %v5906_v27  ;;  %v6197_v27 = vadd.f32 %v6140_v23, %v1568_v29  ;;  %v6208_v29 = vsel %vm648_vm0, %v2045_v21, %v2047_v25  ;;  %v6211_v40 = vld [vmem:[%s5373_s25 + $0x50] sm:$0xff] }
 0x1ee   : > { %v6179_v19 = vadd.f32 %v1572_v54, %v1340_v44  ;;  %v6213_v4 = vshrl.u32 %v2707_v20, 7  ;;  %v7734_v21 = vrot.slane %v6208_v29, 2 }
 0x1ef   : > { %7774 = vst [vmem:[#allocation35_spill] sm:$0xff] %v6197_v27 }
 0x1f0   : > { %v2155_v20 = vsel %vm2116_vm2, %v2148_v60, %v7734_v21  ;;  %v2709_v21 = vadd.s32 8, %v6213_v4 }
 0x1f3   : > { %v1341_v3 = vpop.f32.mrf.mxu2  ;;  %v1574_v49 = vpop.f32.mrf.mxu3 }
 0x1f4   : > { %v1342_v59 = vadd.f32 %v1341_v3, %v1253_v52  ;;  %v1255_v39 = vpop.f32.mrf.mxu1  ;;  %v6187_v30 = vpop.f32.mrf.mxu0  ;;  %v6223_v52 = vadd.s32 %v6219_v58, %v6213_v4  ;;  %v7733_v3 = vrot.slane %v6161_v37, 2 }
 0x1f5   : > { %v1256_v34 = vadd.f32 %v1255_v39, %v7775_v56  ;;  %v1956_v39 = vshrl.u32 %v6184_v32, 16 }
 0x1f6   : > { %v6194_v62 = vadd.f32 %v1574_v49, %v1342_v59  ;;  %v6229_v59 = vadd.f32 %v6152_v48, %v1570_v53  ;;  %vm2805_vm3 = vcmp.lt.s32.totalorder %v6223_v52, 0 }
 0x1f7   : > { %1714 = vmatmul.bf16.gmra.mxu1 %v5701_v36  ;;  %2614 = vmatmul.bf16.gmra.mxu0 %v2149_v42  ;;  %v6205_v36 = vsel %vm496_vm1, %v1950_v55, %v1954_v1  ;;  %v1960_v42 = vshll.u32 %v6211_v40, 16 }
 0x1f8   : > { %2436 = vmatmul.bf16.gmra.mxu2 %v2145_v28  ;;  %2525 = vmatmul.bf16.gmra.mxu3 %v2147_v8  ;;  %v7735_v49 = vrot.slane %v6205_v36, 2  ;;  %7777 = vst [vmem:[#allocation36_spill] sm:$0xff] %v6229_v59  ;;  %v7736_v28 = vrot.slane %v6211_v40, 1  ;;  %v2806_v8 = vsub.s32 0, %v6223_v52 }
 0x1fa   : > { %v6240_v48 = vsel %vm2805_vm3, %v2806_v8, %v6223_v52  ;;  %v1958_v8 = vor.u32 %v1956_v39, %v1954_v1 }
 0x1fb   : > { %v1344_v26 = vpop.f32.mrf.mxu2  ;;  %v1577_v51 = vpop.f32.mrf.mxu3 }
 0x1fc   : > { %v1345_v54 = vadd.f32 %v1344_v26, %v1256_v34  ;;  %v1257_v44 = vpop.f32.mrf.mxu1  ;;  %v6202_v23 = vpop.f32.mrf.mxu0 }
 0x1fd   : > { %7776 = vst [vmem:[#allocation16_spill] sm:$0xff] %v6202_v23  ;;  %v1258_v2 = vadd.f32 %v1257_v44, %v7778_v45  ;;  %v2153_v44 = vsel %vm2116_vm2, %v2146_v41, %v7735_v49  ;;  %v1962_v45 = vrot.slane %v1960_v42, 1  ;;  %v1964_v41 = vshrl.u32 %v6211_v40, 16 }
 0x1fe   : > { %v6215_v11 = vadd.f32 %v1577_v51, %v1345_v54  ;;  %v2151_v51 = vsel %vm2116_vm2, %v2144_v6, %v7733_v3  ;;  %v2808_v54 = vand.u32 65535, %v6240_v48  ;;  %v2809_v3 = vshrl.u32 %v6240_v48, 16 }
 0x1ff   : > { %v6269_v42 = vadd.s32 %v6219_v58, %v2709_v21  ;;  %v6273_v49 = vsel %vm496_vm1, %v1958_v8, %v1962_v45 }
 0x200   : > { %v2812_v60 = vmul.u32 58254, %v2808_v54  ;;  %v2811_v1 = vmul.u32 14564, %v2808_v54  ;;  %v2813_v39 = vmul.u32 14564, %v2809_v3  ;;  %v7737_v54 = vmov 0  }
 0x201   : > { %vm2834_vm5 = vcmp.lt.s32.totalorder %v6269_v42, 0  ;;  %v2835_v21 = vsub.s32 0, %v6269_v42 }
 0x202   : > { %v2817_v23 = vshll.u32 %v2813_v39, 16 }
 0x203   : > { %v1346_v55 = vpop.f32.mrf.mxu2  ;;  %v1579_v56 = vpop.f32.mrf.mxu3 }
 0x204   : > { %v1347_v53 = vadd.f32 %v1346_v55, %v1258_v2  ;;  %v1260_v34 = vpop.f32.mrf.mxu1  ;;  %v6242_v26 = vpop.f32.mrf.mxu0  ;;  %v6257_v2 = vsel %vm648_vm0, %v2047_v25, %v7736_v28  ;;  %v6260_v55 = vld [vmem:[%s5373_s25 + $0x58] sm:$0xff]  ;;  %v2815_v25 = vshll.u32 %v2812_v60, 16  ;;  %v1966_v28 = vor.u32 %v1964_v41, %v1962_v45 }
 0x205   : > { %7779 = vst [vmem:[#allocation17_spill] sm:$0xff] %v6242_v26  ;;  %v7781_v26 = vld [vmem:[#allocation7_spill] sm:$0xff] }
 0x206   : > { %v6262_v6 = vadd.f32 %v1579_v56, %v1347_v53  ;;  %v7782_v56 = vld [vmem:[#allocation18_spill] sm:$0xff]  ;;  %vm2819_vm4 = vc.u32 %v2811_v1, %v2815_v25  ;;  %v2821_v59 = vadd.s32 %v2815_v25, %v2811_v1  ;;  %v6289_v1 = vsel %vm2834_vm5, %v2835_v21, %v6269_v42 }
 0x207   : > { %1719 = vmatmul.bf16.gmra.mxu1 %v7781_v26  ;;  %2619 = vmatmul.bf16.gmra.mxu0 %v2155_v20  ;;  %v1261_v53 = vadd.f32 %v1260_v34, %v7782_v56  ;;  %v1968_v26 = vshll.u32 %v6260_v55, 16  ;;  %v2814_v20 = vmul.u32 58254, %v2809_v3  ;;  %v6284_v3 = vadd.f32 %v6163_v50, %v6179_v19 }
 0x208   : > { %7780 = vst [vmem:[#allocation37_spill] sm:$0xff] %v6262_v6  ;;  %2441 = vmatmul.bf16.gmra.mxu2 %v2151_v51  ;;  %2530 = vmatmul.bf16.gmra.mxu3 %v2153_v44  ;;  %v2820_v6 = vsel %vm2819_vm4, 1, %v7737_v54  ;;  %vm2823_vm6 = vc.u32 %v2821_v59, %v2817_v23  ;;  %v2710_v25 = vadd.s32 16, %v6213_v4  ;;  %v2838_v50 = vshrl.u32 %v6289_v1, 16 }
 0x209   : > { %v2822_v27 = vadd.s32 %v2820_v6, %v2814_v20  ;;  %7784 = vst [vmem:[#allocation18_spill] sm:$0xff] %v6284_v3  ;;  %v1970_v13 = vrot.slane %v1968_v26, 1  ;;  %v2824_v45 = vsel %vm2823_vm6, 1, %v7737_v54  ;;  %v2837_v6 = vand.u32 65535, %v6289_v1  ;;  %v6304_v20 = vld [vmem:[%s5373_s25 + $0x60] sm:$0xff]  ;;  %v7788_v54 = vld [vmem:[#allocation19_spill] sm:$0xff] }
 0x20a   : > { %v6298_v19 = vadd.s32 %v6219_v58, %v2710_v25  ;;  %v7787_v21 = vrot.slane %v6208_v29, 2  ;;  %v6313_v25 = vmul.u32 14564, %v2838_v50  ;;  %v1972_v3 = vshrl.u32 %v6260_v55, 16 }
 0x20b   : > { %v1349_v51 = vpop.f32.mrf.mxu2  ;;  %v1582_v44 = vpop.f32.mrf.mxu3  ;;  %v2826_v41 = vadd.s32 %v2824_v45, %v2822_v27  ;;  %v6311_v45 = vmul.u32 58254, %v2837_v6  ;;  %v6317_v59 = vsel %vm496_vm1, %v1966_v28, %v1970_v13  ;;  %v2840_v26 = vmul.u32 14564, %v2837_v6 }
 0x20c   : > { %v1350_v34 = vadd.f32 %v1349_v51, %v1261_v53  ;;  %v1262_v8 = vpop.f32.mrf.mxu1  ;;  %v6280_v56 = vpop.f32.mrf.mxu0  ;;  %v2816_v51 = vshrl.u32 %v2812_v60, 16  ;;  %v7786_v60 = vrot.slane %v6257_v2, 2  ;;  %vm2863_vm7 = vcmp.lt.s32.totalorder %v6298_v19, 0 }
 0x20d   : > { %7783 = vst [vmem:[#allocation7_spill] sm:$0xff] %v6280_v56  ;;  %v1263_v23 = vadd.f32 %v1262_v8, %v7788_v54  ;;  %v2864_v56 = vsub.s32 0, %v6298_v19  ;;  %v7790_v54 = vrot.slane %v6260_v55, 1  ;;  %v7791_v28 = vrot.slane %v6211_v40, 1 }
 0x20e   : > { %v6292_v53 = vadd.f32 %v1582_v44, %v1350_v34  ;;  %v2818_v44 = vshrl.u32 %v2813_v39, 16  ;;  %v2161_v27 = vsel %vm2116_vm2, %v7787_v21, %v7786_v60  ;;  %v2827_v34 = vadd.s32 %v2826_v41, %v2816_v51 }
 0x20f   : > { %v2844_v60 = vshll.u32 %v6311_v45, 16  ;;  %v6330_v8 = vsel %vm648_vm0, %v7791_v28, %v7790_v54  ;;  %v1976_v6 = vshll.u32 %v6304_v20, 16  ;;  %v2843_v61 = vmul.u32 58254, %v2838_v50  ;;  %v7797_v50 = vld [vmem:[#allocation10_spill] sm:$0xff] }
 0x210   : > { %7785 = vst [vmem:[#allocation38_spill] sm:$0xff] %v6292_v53  ;;  %v2828_v29 = vadd.s32 %v2827_v34, %v2818_v44  ;;  %v7792_v44 = vrot.slane %v6184_v32, 2  ;;  %v7793_v34 = vrot.slane %v6161_v37, 2  ;;  %v2846_v54 = vshll.u32 %v6313_v25, 16 }
 0x211   : > { %vm2848_vm8 = vc.u32 %v2840_v26, %v2844_v60  ;;  %v6350_v37 = vsel %vm2863_vm7, %v2864_v56, %v6298_v19 }
 0x212   : > { %v2157_v43 = vsel %vm2116_vm2, %v7793_v34, %v7792_v44  ;;  %v2829_v47 = vshrl.u32 %v2828_v29, 4  ;;  %v1974_v34 = vor.u32 %v1972_v3, %v1970_v13  ;;  %v2866_v56 = vand.u32 65535, %v6350_v37  ;;  %v7800_v44 = vld [vmem:[#allocation20_spill] sm:$0xff] }
 0x213   : > { %v1351_v39 = vpop.f32.mrf.mxu2  ;;  %v1584_v53 = vpop.f32.mrf.mxu3 }
 0x214   : > { %v1352_v51 = vadd.f32 %v1351_v39, %v1263_v23  ;;  %v1265_v41 = vpop.f32.mrf.mxu1  ;;  %v6323_v21 = vpop.f32.mrf.mxu0  ;;  %v7794_v23 = vrot.slane %v6273_v49, 2  ;;  %v7795_v39 = vrot.slane %v6205_v36, 2  ;;  %v7739_v36 = vrot.slane %v6317_v59, 2 }
 0x215   : > { %7789 = vst [vmem:[#allocation19_spill] sm:$0xff] %v6323_v21  ;;  %v2830_v29 = vmul.u32 18, %v2829_v47  ;;  %v1266_v13 = vadd.f32 %v1265_v41, %v7800_v44  ;;  %v7802_v41 = vrot.slane %v6211_v40, 2 }
 0x216   : > { %v2159_v21 = vsel %vm2116_vm2, %v7795_v39, %v7794_v23  ;;  %v6345_v28 = vadd.f32 %v1584_v53, %v1352_v51  ;;  %v7798_v23 = vmov 0   ;;  %v1978_v53 = vrot.slane %v1976_v6, 1 }
 0x217   : > { %1724 = vmatmul.bf16.gmra.mxu1 %v7797_v50  ;;  %2624 = vmatmul.bf16.gmra.mxu0 %v2161_v27  ;;  %v2849_v39 = vsel %vm2848_vm8, 1, %v7798_v23  ;;  %v2850_v51 = vadd.s32 %v2844_v60, %v2840_v26  ;;  %v2867_v50 = vshrl.u32 %v6350_v37, 16  ;;  %v6361_v27 = vadd.f32 %v6173_v57, %v6194_v62 }
 0x218   : > { %7796 = vst [vmem:[#allocation39_spill] sm:$0xff] %v6345_v28  ;;  %2446 = vmatmul.bf16.gmra.mxu2 %v2157_v43  ;;  %2535 = vmatmul.bf16.gmra.mxu3 %v2159_v21  ;;  %v2851_v18 = vadd.s32 %v2849_v39, %v2843_v61  ;;  %v7740_v28 = vrot.slane %v6304_v20, 1  ;;  %v2831_v3 = vsub.s32 %v6240_v48, %v2830_v29  ;;  %v2845_v43 = vshrl.u32 %v6311_v45, 16 }
 0x219   : > { %7799 = vst [vmem:[#allocation10_spill] sm:$0xff] %v6361_v27  ;;  %vm2852_vm9 = vc.u32 %v2850_v51, %v2846_v54  ;;  %v2869_v60 = vmul.u32 14564, %v2866_v56  ;;  %v6367_v21 = vmul.u32 58254, %v2866_v56  ;;  %v6369_v6 = vmul.u32 14564, %v2867_v50  ;;  %v7809_v27 = vld [vmem:[#allocation21_spill] sm:$0xff] }
 0x21a   : > { %v2853_v61 = vsel %vm2852_vm9, 1, %v7798_v23  ;;  %v7803_v48 = vrot.slane %v6184_v32, 2  ;;  %v2847_v54 = vshrl.u32 %v6313_v25, 16  ;;  %v7804_v29 = vrot.slane %v6273_v49, 2 }
 0x21b   : > { %v1354_v47 = vpop.f32.mrf.mxu2  ;;  %v1587_v26 = vpop.f32.mrf.mxu3  ;;  %v2855_v44 = vadd.s32 %v2853_v61, %v2851_v18  ;;  %v6385_v56 = vsel %vm496_vm1, %v1974_v34, %v1978_v53  ;;  %v2832_v18 = vsub.s32 0, %v2831_v3  ;;  %v2711_v49 = vadd.s32 24, %v6213_v4 }
 0x21c   : > { %v1355_v39 = vadd.f32 %v1354_v47, %v1266_v13  ;;  %v1267_v57 = vpop.f32.mrf.mxu1  ;;  %v6371_v62 = vpop.f32.mrf.mxu0  ;;  %v2163_v45 = vsel %vm2116_vm2, %v7803_v48, %v7802_v41  ;;  %v2165_v51 = vsel %vm2116_vm2, %v7804_v29, %v7739_v36  ;;  %v7805_v13 = vrot.slane %v6260_v55, 1  ;;  %v6398_v41 = vld [vmem:[%s5373_s25 + $0x68] sm:$0xff] }
 0x21d   : > { %7801 = vst [vmem:[#allocation20_spill] sm:$0xff] %v6371_v62  ;;  %v2873_v47 = vshll.u32 %v6367_v21, 16  ;;  %v2856_v61 = vadd.s32 %v2855_v44, %v2845_v43  ;;  %v7807_v34 = vrot.slane %v6330_v8, 2  ;;  %v7808_v48 = vrot.slane %v6257_v2, 2 }
 0x21e   : > { %v6392_v32 = vsel %vm648_vm0, %v7805_v13, %v7740_v28  ;;  %v6395_v25 = vadd.f32 %v1587_v26, %v1355_v39  ;;  %v2872_v36 = vmul.u32 58254, %v2867_v50  ;;  %v2875_v13 = vshll.u32 %v6369_v6, 16 }
 0x21f   : > { %v2167_v29 = vsel %vm2116_vm2, %v7808_v48, %v7807_v34  ;;  %vm2877_vm10 = vc.u32 %v2869_v60, %v2873_v47  ;;  %v2857_v26 = vadd.s32 %v2856_v61, %v2847_v54  ;;  %v1980_v39 = vshrl.u32 %v6304_v20, 16 }
 0x220   : > { %7806 = vst [vmem:[#allocation40_spill] sm:$0xff] %v6395_v25  ;;  %v1984_v43 = vshll.u32 %v6398_v41, 16  ;;  %v2878_v25 = vsel %vm2877_vm10, 1, %v7798_v23  ;;  %v2879_v2 = vadd.s32 %v2873_v47, %v2869_v60  ;;  %v1268_v34 = vadd.f32 %v1267_v57, %v7809_v27 }
 0x221   : > { %v6416_v50 = vsel %vm2805_vm3, %v2832_v18, %v2831_v3  ;;  %v2858_v48 = vshrl.u32 %v2857_v26, 4  ;;  %v6419_v54 = vadd.s32 %v6219_v58, %v2711_v49  ;;  %v1982_v15 = vor.u32 %v1980_v39, %v1978_v53  ;;  %v7812_v18 = vld [vmem:[#allocation13_spill] sm:$0xff] }
 0x222   : > { %v2874_v44 = vshrl.u32 %v6367_v21, 16  ;;  %v2880_v14 = vadd.s32 %v2878_v25, %v2872_v36  ;;  %vm2881_vm11 = vc.u32 %v2879_v2, %v2875_v13  ;;  %v6424_v57 = vrot.slane %v1984_v43, 1  ;;  %v7819_v43 = vld [vmem:[#allocation22_spill] sm:$0xff] }
 0x223   : > { %v1356_v61 = vpop.f32.mrf.mxu2  ;;  %v1589_v28 = vpop.f32.mrf.mxu3  ;;  %v2859_v27 = vmul.u32 18, %v2858_v48  ;;  %v2882_v3 = vsel %vm2881_vm11, 1, %v7798_v23  ;;  %vm3733_vm12 = vcmp.ne.s32.totalorder %v6416_v50, 0  ;;  %vm3765_vm13 = vcmp.lt.s32.totalorder %v6416_v50, 0 }
 0x224   : > { %v1357_v62 = vadd.f32 %v1356_v61, %v1268_v34  ;;  %v1270_v16 = vpop.f32.mrf.mxu1  ;;  %v6422_v60 = vpop.f32.mrf.mxu0  ;;  %v7742_v47 = vrot.slane %v6398_v41, 1  ;;  %v2876_v53 = vshrl.u32 %v6369_v6, 16  ;;  %v2884_v25 = vadd.s32 %v2882_v3, %v2880_v14  ;;  %vm6459_vm15 = vmand %vm3765_vm13, %vm3733_vm12 }
 0x225   : > { %7810 = vst [vmem:[#allocation21_spill] sm:$0xff] %v6422_v60  ;;  %v2860_v36 = vsub.s32 %v6289_v1, %v2859_v27  ;;  %vm2892_vm14 = vcmp.lt.s32.totalorder %v6419_v54, 0  ;;  %v7813_v49 = vrot.slane %v6260_v55, 2  ;;  %v7814_v13 = vrot.slane %v6211_v40, 2 }
 0x226   : > { %v6431_v21 = vadd.f32 %v1589_v28, %v1357_v62  ;;  %v6444_v39 = vadd.s32 18, %v6416_v50  ;;  %v2893_v28 = vsub.s32 0, %v6419_v54  ;;  %v2712_v1 = vadd.s32 32, %v6213_v4 }
 0x227   : > { %1729 = vmatmul.bf16.gmra.mxu1 %v7812_v18  ;;  %2629 = vmatmul.bf16.gmra.mxu0 %v2167_v29  ;;  %v6441_v26 = vsel %vm2116_vm2, %v7814_v13, %v7813_v49  ;;  %v7815_v14 = vrot.slane %v6385_v56, 2  ;;  %v7816_v6 = vrot.slane %v6317_v59, 2  ;;  %v2861_v29 = vsub.s32 0, %v2860_v36 }
 0x228   : > { %7811 = vst [vmem:[#allocation41_spill] sm:$0xff] %v6431_v21  ;;  %2451 = vmatmul.bf16.gmra.mxu2 %v2163_v45  ;;  %2540 = vmatmul.bf16.gmra.mxu3 %v2165_v51  ;;  %v6465_v45 = vsel %vm496_vm1, %v1982_v15, %v6424_v57  ;;  %v2885_v51 = vadd.s32 %v2884_v25, %v2874_v44  ;;  %v7820_v59 = vrot.slane %v6304_v20, 1  ;;  %v7822_v18 = vrot.slane %v6392_v32, 2 }
 0x229   : > { %v6453_v62 = vsel %vm2116_vm2, %v7816_v6, %v7815_v14  ;;  %v1271_v2 = vadd.f32 %v1270_v16, %v7819_v43  ;;  %v6478_v48 = vsel %vm2892_vm14, %v2893_v28, %v6419_v54  ;;  %v6482_v61 = vadd.f32 %v6187_v30, %v6215_v11 }
 0x22a   : > { %v6473_v34 = vsel %vm648_vm0, %v7820_v59, %v7742_v47  ;;  %v6486_v15 = vsel %vm2834_vm5, %v2861_v29, %v2860_v36  ;;  %v2886_v16 = vadd.s32 %v2885_v51, %v2876_v53  ;;  %v2895_v44 = vand.u32 65535, %v6478_v48 }
 0x22b   : > { %7821 = vst [vmem:[#allocation13_spill] sm:$0xff] %v6482_v61  ;;  %v2896_v27 = vshrl.u32 %v6478_v48, 16  ;;  %v1359_v3 = vpop.f32.mrf.mxu2  ;;  %v1592_v25 = vpop.f32.mrf.mxu3  ;;  %v7823_v49 = vrot.slane %v6330_v8, 2  ;;  %v3861_v30 = vsel %vm6459_vm15, %v6444_v39, %v6416_v50  ;;  %v6501_v53 = vadd.s32 %v6219_v58, %v2712_v1 }
 0x22c   : > { %v1360_v36 = vadd.f32 %v1359_v3, %v1271_v2  ;;  %v1272_v28 = vpop.f32.mrf.mxu1  ;;  %v6503_v14 = vpop.f32.mrf.mxu0  ;;  %v2887_v6 = vshrl.u32 %v2886_v16, 4  ;;  %v2898_v29 = vmul.u32 14564, %v2895_v44  ;;  %v2899_v8 = vmul.u32 58254, %v2895_v44  ;;  %v7826_v44 = vld [vmem:[#allocation23_spill] sm:$0xff] }
 0x22d   : > { %v2173_v13 = vsel %vm2116_vm2, %v7823_v49, %v7822_v18  ;;  %7824 = vst [vmem:[#allocation22_spill] sm:$0xff] %v6503_v14  ;;  %vm3734_vm3 = vcmp.ne.s32.totalorder %v6486_v15, 0  ;;  %v2900_v50 = vmul.u32 14564, %v2896_v27  ;;  %v2901_v59 = vmul.u32 58254, %v2896_v27  ;;  %v6511_v18 = vld [vmem:[%s5373_s25 + $0x70] sm:$0xff] }
 0x22e   : > { %v6508_v39 = vadd.f32 %v1592_v25, %v1360_v36  ;;  %v2888_v43 = vmul.u32 18, %v2887_v6  ;;  %v2902_v1 = vshll.u32 %v2899_v8, 16  ;;  %vm3766_vm4 = vcmp.lt.s32.totalorder %v6486_v15, 0 }
 0x22f   : > { %v2904_v2 = vshll.u32 %v2900_v50, 16  ;;  %vm2921_vm5 = vcmp.lt.s32.totalorder %v6501_v53, 0  ;;  %v2922_v16 = vsub.s32 0, %v6501_v53  ;;  %v1273_v3 = vadd.f32 %v1272_v28, %v7826_v44 }
 0x230   : > { %7825 = vst [vmem:[#allocation42_spill] sm:$0xff] %v6508_v39  ;;  %v2889_v49 = vsub.s32 %v6350_v37, %v2888_v43  ;;  %vm2906_vm6 = vc.u32 %v2898_v29, %v2902_v1  ;;  %v2908_v47 = vadd.s32 %v2902_v1, %v2898_v29  ;;  %v2903_v25 = vshrl.u32 %v2899_v8, 16 }
 0x231   : > { %v2907_v36 = vsel %vm2906_vm6, 1, %v7798_v23  ;;  %v1988_v27 = vshrl.u32 %v6398_v41, 16  ;;  %v1992_v6 = vshll.u32 %v6511_v18, 16  ;;  %v6524_v11 = vsel %vm2921_vm5, %v2922_v16, %v6501_v53 }
 0x232   : > { %v2890_v40 = vsub.s32 0, %v2889_v49  ;;  %v2909_v51 = vadd.s32 %v2907_v36, %v2901_v59  ;;  %vm2910_vm8 = vc.u32 %v2908_v47, %v2904_v2  ;;  %v2905_v37 = vshrl.u32 %v2900_v50, 16 }
 0x233   : > { %v1361_v28 = vpop.f32.mrf.mxu2  ;;  %v1594_v44 = vpop.f32.mrf.mxu3  ;;  %v2911_v29 = vsel %vm2910_vm8, 1, %v7798_v23  ;;  %v1990_v8 = vor.u32 %v1988_v27, %v6424_v57  ;;  %v7743_v43 = vrot.slane %v6511_v18, 1  ;;  %v6533_v2 = vrot.slane %v1992_v6, 1 }
 0x234   : > { %v1362_v1 = vadd.f32 %v1361_v28, %v1273_v3  ;;  %v1695_v60 = vpop.f32.mrf.mxu1  ;;  %v2595_v39 = vpop.f32.mrf.mxu0  ;;  %v6531_v47 = vsel %vm2863_vm7, %v2890_v40, %v2889_v49  ;;  %v2913_v59 = vadd.s32 %v2911_v29, %v2909_v51  ;;  %vm2773_vm9 = vcmp.lt.s32.totalorder %v6223_v52, 288  ;;  %vm6549_vm7 = vmand %vm3766_vm4, %vm3734_vm3  ;;  %v7832_v40 = vld [vmem:[#allocation15_spill] sm:$0xff] }
 0x235   : > { %vm6536_vm10 = vcmp.lt.s32.totalorder %v3861_v30, 16  ;;  %v3830_v57 = vadd.s32 18, %v6486_v15  ;;  %v2924_v16 = vand.u32 65535, %v6524_v11  ;;  %v2713_v3 = vadd.s32 40, %v6213_v4 }
 0x236   : > { %v6543_v36 = vadd.f32 %v1594_v44, %v1362_v1  ;;  %vm3735_vm11 = vcmp.ne.s32.totalorder %v6531_v47, 0  ;;  %vm3767_vm12 = vcmp.lt.s32.totalorder %v6531_v47, 0  ;;  %v2914_v30 = vadd.s32 %v2913_v59, %v2903_v25 }
 0x237   : > { %1734 = vmatmul.bf16.gmra.mxu1 %v7832_v40  ;;  %2634 = vmatmul.bf16.gmra.mxu0 %v2173_v13  ;;  %v7833_v49 = vrot.slane %v6304_v20, 2  ;;  %v7834_v27 = vrot.slane %v6260_v55, 2  ;;  %v7835_v28 = vrot.slane %v6465_v45, 2  ;;  %v7836_v44 = vrot.slane %v6385_v56, 2  ;;  %vm6601_vm13 = vmand %vm3767_vm12, %vm3735_vm11 }
 0x238   : > { %7829 = vst [vmem:[#allocation23_spill] sm:$0xff] %v6543_v36  ;;  %v7837_v1 = vrot.slane %v6473_v34, 2  ;;  %v7838_v25 = vrot.slane %v6392_v32, 2  ;;  %v2925_v59 = vshrl.u32 %v6524_v11, 16  ;;  %2456 = vmatmul.bf16.gmra.mxu2 %v6441_v26  ;;  %2545 = vmatmul.bf16.gmra.mxu3 %v6453_v62  ;;  %v6581_v55 = vadd.s32 18, %v6531_v47 }
 0x239   : > { %v6561_v6 = vsel %vm2116_vm2, %v7834_v27, %v7833_v49  ;;  %v6568_v29 = vsel %vm2116_vm2, %v7836_v44, %v7835_v28  ;;  %v2915_v56 = vadd.s32 %v2914_v30, %v2905_v37  ;;  %v6585_v40 = vsel %vm496_vm1, %v1990_v8, %v6533_v2  ;;  %v7842_v27 = vld [vmem:[#allocation24_spill] sm:$0xff] }
 0x23a   : > { %v6575_v13 = vsel %vm2116_vm2, %v7838_v25, %v7837_v1  ;;  %v7839_v32 = vrot.slane %v6398_v41, 1  ;;  %v3862_v26 = vsel %vm6549_vm7, %v3830_v57, %v6486_v15  ;;  %v2927_v8 = vmul.u32 14564, %v2924_v16  ;;  %vm3925_vm7 = vmand %vm2773_vm9, %vm6536_vm10 }
 0x23b   : > { %v2928_v30 = vmul.u32 58254, %v2924_v16  ;;  %v1696_v28 = vadd.f32 %v1695_v60, %v7842_v27  ;;  %v2916_v44 = vshrl.u32 %v2915_v56, 4  ;;  %v6607_v1 = vmul.u32 14564, %v2925_v59  ;;  %v2417_v15 = vpop.f32.mrf.mxu2  ;;  %v2506_v57 = vpop.f32.mrf.mxu3 }
 0x23c   : > { %v6592_v49 = vsel %vm648_vm0, %v7839_v32, %v7743_v43  ;;  %v6610_v51 = vadd.s32 %v6219_v58, %v2713_v3  ;;  %v7744_v25 = vrot.slane %v6585_v40, 2  ;;  %v2930_v43 = vmul.u32 58254, %v2925_v59  ;;  %v1697_v37 = vpop.f32.mrf.mxu1  ;;  %v2597_v21 = vpop.f32.mrf.mxu0 }
 0x23d   : > { %v2931_v14 = vshll.u32 %v2928_v30, 16  ;;  %v2507_v36 = vadd.f32 %v2506_v57, %v2417_v15  ;;  %vm2774_vm15 = vcmp.lt.s32.totalorder %v6269_v42, 288  ;;  %vm6615_vm3 = vcmp.lt.s32.totalorder %v3862_v26, 16 }
 0x23e   : > { %v3863_v16 = vsel %vm6601_vm13, %v6581_v55, %v6531_v47  ;;  %v2917_v3 = vmul.u32 18, %v2916_v44  ;;  %v2933_v56 = vshll.u32 %v6607_v1, 16  ;;  %v7845_v59 = vrot.slane %v6398_v41, 2  ;;  %vm6698_vm13 = vmand %vm2774_vm15, %vm6615_vm3 }
 0x23f   : > { %v7846_v27 = vrot.slane %v6304_v20, 2  ;;  %vm2935_vm4 = vc.u32 %v2927_v8, %v2931_v14  ;;  %v2937_v26 = vadd.s32 %v2931_v14, %v2927_v8  ;;  %vm2950_vm6 = vcmp.lt.s32.totalorder %v6610_v51, 0 }
 0x240   : > { %v2596_v57 = vadd.f32 %v2595_v39, %v2507_v36  ;;  %v2918_v32 = vsub.s32 %v6478_v48, %v2917_v3  ;;  %v2936_v62 = vsel %vm2935_vm4, 1, %v7798_v23  ;;  %v2951_v47 = vsub.s32 0, %v6610_v51 }
 0x241   : > { %v6629_v15 = vsel %vm2116_vm2, %v7846_v27, %v7845_v59  ;;  %v7847_v55 = vrot.slane %v6465_v45, 2  ;;  %v7848_v44 = vrot.slane %v6592_v49, 2  ;;  %v7849_v14 = vrot.slane %v6473_v34, 2 }
 0x242   : > { %v2938_v39 = vadd.s32 %v2936_v62, %v2930_v43  ;;  %vm2939_vm8 = vc.u32 %v2937_v26, %v2933_v56  ;;  %v6649_v48 = vadd.f32 %v2596_v57, %v1696_v28  ;;  %v2919_v45 = vsub.s32 0, %v2918_v32 }
 0x243   : > { %v6640_v20 = vsel %vm2116_vm2, %v7847_v55, %v7744_v25  ;;  %v6647_v8 = vsel %vm2116_vm2, %v7849_v14, %v7848_v44  ;;  %v2932_v36 = vshrl.u32 %v2928_v30, 16  ;;  %v2940_v3 = vsel %vm2939_vm8, 1, %v7798_v23  ;;  %v2419_v26 = vpop.f32.mrf.mxu2  ;;  %v2508_v57 = vpop.f32.mrf.mxu3 }
 0x244   : > { %v2942_v59 = vadd.s32 %v2940_v3, %v2938_v39  ;;  %v6659_v34 = vsel %vm2950_vm6, %v2951_v47, %v6610_v51  ;;  %v2714_v43 = vadd.s32 48, %v6213_v4  ;;  %v2715_v28 = vadd.s32 56, %v6213_v4  ;;  %v6675_v47 = vld [vmem:[%s5373_s25 + $0x78] sm:$0xff]  ;;  %v1700_v55 = vpop.f32.mrf.mxu1  ;;  %v2600_v44 = vpop.f32.mrf.mxu0 }
 0x245   : > { %v6665_v50 = vsel %vm2892_vm14, %v2919_v45, %v2918_v32  ;;  %v2934_v52 = vshrl.u32 %v6607_v1, 16  ;;  %v2953_v30 = vand.u32 65535, %v6659_v34  ;;  %v2954_v56 = vshrl.u32 %v6659_v34, 16 }
 0x246   : > { %v4021_v27 = vsel %vm3925_vm7, %v6649_v48, 0.0  ;;  %vm3736_vm9 = vcmp.ne.s32.totalorder %v6665_v50, 0  ;;  %vm3768_vm10 = vcmp.lt.s32.totalorder %v6665_v50, 0  ;;  %v3832_v62 = vadd.s32 18, %v6665_v50 }
 0x247   : > { %v2509_v32 = vadd.f32 %v2508_v57, %v2419_v26  ;;  %vm2775_vm14 = vcmp.lt.s32.totalorder %v6298_v19, 288  ;;  %vm6678_vm11 = vcmp.lt.s32.totalorder %v3863_v16, 16  ;;  %v2943_v14 = vadd.s32 %v2942_v59, %v2932_v36  ;;  %vm6683_vm12 = vmand %vm3768_vm10, %vm3736_vm9  ;;  %2639 = vmatmul.bf16.gmra.mxu0 %v6575_v13 }
 0x248   : > { %v2956_v39 = vmul.u32 14564, %v2953_v30  ;;  %v2957_v45 = vmul.u32 58254, %v2953_v30  ;;  %v1698_v3 = vadd.f32 %v1697_v37, %v5943_v5  ;;  %v6687_v61 = vmul.u32 14564, %v2954_v56  ;;  %v7856_v37 = vld [vmem:[#allocation8_spill] sm:$0xff]  ;;  %2461 = vmatmul.bf16.gmra.mxu2 %v6561_v6  ;;  %2550 = vmatmul.bf16.gmra.mxu3 %v6568_v29  ;;  %vm3927_vm7 = vmand %vm2775_vm14, %vm6678_vm11 }
 0x249   : > { %v1996_v26 = vshrl.u32 %v6511_v18, 16  ;;  %v6691_v57 = vadd.s32 %v6219_v58, %v2714_v43  ;;  %v2598_v16 = vadd.f32 %v2597_v21, %v2509_v32  ;;  %v2944_v10 = vadd.s32 %v2943_v14, %v2934_v52  ;;  %1739 = vmatmul.bf16.gmra.mxu1 %v7856_v37 }
 0x24a   : > { %v2959_v35 = vmul.u32 58254, %v2954_v56  ;;  %v2960_v17 = vshll.u32 %v2957_v45, 16  ;;  %v4091_v36 = vmul.f32 %v4021_v27, %v6649_v48  ;;  %v2962_v59 = vshll.u32 %v6687_v61, 16 }
 0x24b   : > { %v2000_v21 = vshll.u32 %v6675_v47, 16  ;;  %v6707_v43 = vadd.s32 %v6219_v58, %v2715_v28  ;;  %v2676_v52 = vadd.f32 %v2598_v16, %v1698_v3  ;;  %v3864_v42 = vsel %vm6683_vm12, %v3832_v62, %v6665_v50  ;;  %v2422_v25 = vpop.f32.mrf.mxu2  ;;  %v2511_v50 = vpop.f32.mrf.mxu3 }
 0x24c   : > { %v2945_v60 = vshrl.u32 %v2944_v10, 4  ;;  %vm2964_vm15 = vc.u32 %v2956_v39, %v2960_v17  ;;  %v2961_v13 = vshrl.u32 %v2957_v45, 16  ;;  %v2966_v56 = vadd.s32 %v2960_v17, %v2956_v39  ;;  %v1702_v45 = vpop.f32.mrf.mxu1  ;;  %v2602_v17 = vpop.f32.mrf.mxu0 }
 0x24d   : > { %v2965_v30 = vsel %vm2964_vm15, 1, %v7798_v23  ;;  %v1998_v32 = vor.u32 %v1996_v26, %v6533_v2  ;;  %v4022_v28 = vsel %vm6698_vm13, %v2676_v52, 0.0  ;;  %v5063_v6 = vpack.c.bf16 %v2676_v52, %v6649_v48 }
 0x24e   : > { %v2946_v14 = vmul.u32 18, %v2945_v60  ;;  %v2967_v29 = vadd.s32 %v2965_v30, %v2959_v35  ;;  %v4053_v3 = vadd.f32 %v4022_v28, %v4021_v27  ;;  %v4092_v16 = vmul.f32 %v4022_v28, %v2676_v52 }
 0x24f   : > { %vm2968_vm3 = vc.u32 %v2966_v56, %v2962_v59  ;;  %v6719_v10 = vrot.slane %v2000_v21, 1  ;;  %5064 = vst [vmem:[%s5333_s28] sm:$0xff] %v5063_v6   ;;  %v2512_v62 = vadd.f32 %v2511_v50, %v2422_v25  ;;  %vm2776_vm4 = vcmp.lt.s32.totalorder %v6419_v54, 288 }
 0x250   : > { %v2947_v2 = vsub.s32 %v6524_v11, %v2946_v14  ;;  %v2969_v39 = vsel %vm2968_vm3, 1, %v7798_v23  ;;  %v2186_v48 = vrot.slane %v6511_v18, 2  ;;  %v4123_v35 = vadd.f32 %v4092_v16, %v4091_v36 }
 0x251   : > { %v1701_v27 = vadd.f32 %v1700_v55, %v5950_v46  ;;  %v2963_v26 = vshrl.u32 %v6687_v61, 16  ;;  %v2971_v5 = vadd.s32 %v2969_v39, %v2967_v29  ;;  %v2601_v37 = vadd.f32 %v2600_v44, %v2512_v62 }
 0x252   : > { %vm6728_vm8 = vcmp.lt.s32.totalorder %v3864_v42, 16  ;;  %v2948_v21 = vsub.s32 0, %v2947_v2  ;;  %v2059_v52 = vrot.slane %v6675_v47, 1  ;;  %v6739_v46 = vsel %vm496_vm1, %v1998_v32, %v6719_v10 }
 0x253   : > { %v2972_v11 = vadd.s32 %v2971_v5, %v2961_v13  ;;  %vm2979_vm9 = vcmp.lt.s32.totalorder %v6691_v57, 0  ;;  %v2980_v61 = vsub.s32 0, %v6691_v57  ;;  %v2677_v55 = vadd.f32 %v2601_v37, %v1701_v27  ;;  %v2424_v14 = vpop.f32.mrf.mxu2  ;;  %v2513_v29 = vpop.f32.mrf.mxu3  ;;  %vm6784_vm13 = vmand %vm2776_vm4, %vm6728_vm8 }
 0x254   : > { %v1703_v44 = vadd.f32 %v1702_v45, %v5966_v9  ;;  %v2949_v36 = vsel %vm2921_vm5, %v2948_v21, %v2947_v2  ;;  %v7859_v19 = vrot.slane %v6398_v41, 2  ;;  %v2188_v9 = vrot.slane %v6739_v46, 2  ;;  %v1705_v50 = vpop.f32.mrf.mxu1  ;;  %v2605_v62 = vpop.f32.mrf.mxu0 }
 0x255   : > { %vm3737_vm10 = vcmp.ne.s32.totalorder %v2949_v36, 0  ;;  %vm3769_vm14 = vcmp.lt.s32.totalorder %v2949_v36, 0  ;;  %v3833_v42 = vadd.s32 18, %v2949_v36  ;;  %v2973_v60 = vadd.s32 %v2972_v11, %v2963_v26 }
 0x256   : > { %v6751_v1 = vsel %vm2116_vm2, %v7859_v19, %v2186_v48  ;;  %v4023_v13 = vsel %vm3927_vm7, %v2677_v55, 0.0  ;;  %vm6753_vm11 = vmand %vm3769_vm14, %vm3737_vm10  ;;  %v7862_v56 = vrot.slane %v6511_v18, 1  ;;  %v6768_v32 = vsel %vm2979_vm9, %v2980_v61, %v6691_v57  ;;  %v7865_v19 = vld [vmem:[#allocation11_spill] sm:$0xff] }
 0x257   : > { %v4054_v28 = vadd.f32 %v4053_v3, %v4023_v13  ;;  %v4093_v6 = vmul.f32 %v4023_v13, %v2677_v55  ;;  %v2974_v16 = vshrl.u32 %v2973_v60, 4  ;;  %vm3008_vm5 = vcmp.lt.s32.totalorder %v6707_v43, 0  ;;  %2644 = vmatmul.bf16.gmra.mxu0 %v6647_v8 }
 0x258   : > { %v6763_v41 = vsel %vm648_vm0, %v7862_v56, %v2059_v52  ;;  %v2514_v25 = vadd.f32 %v2513_v29, %v2424_v14  ;;  %vm2777_vm12 = vcmp.lt.s32.totalorder %v6501_v53, 288  ;;  %v3865_v45 = vsel %vm6753_vm11, %v3833_v42, %v2949_v36  ;;  %2466 = vmatmul.bf16.gmra.mxu2 %v6629_v15  ;;  %2555 = vmatmul.bf16.gmra.mxu3 %v6640_v20 }
 0x259   : > { %v2982_v2 = vand.u32 65535, %v6768_v32  ;;  %v2983_v39 = vshrl.u32 %v6768_v32, 16  ;;  %v4124_v27 = vadd.f32 %v4123_v35, %v4093_v6  ;;  %v2975_v3 = vmul.u32 18, %v2974_v16  ;;  %1744 = vmatmul.bf16.gmra.mxu1 %v7865_v19  ;;  %v6842_v35 = vld [vmem:[%s5373_s25 + $0x80] sm:$0xff] }
 0x25a   : > { %v2190_v26 = vrot.slane %v6763_v41, 2  ;;  %v3009_v5 = vsub.s32 0, %v6707_v43  ;;  %v2603_v37 = vadd.f32 %v2602_v17, %v2514_v25  ;;  %vm6790_vm15 = vcmp.lt.s32.totalorder %v3865_v45, 16 }
 0x25b   : > { %v2985_v21 = vmul.u32 14564, %v2982_v2  ;;  %v2986_v11 = vmul.u32 58254, %v2982_v2  ;;  %v6778_v61 = vmul.u32 14564, %v2983_v39  ;;  %v2976_v17 = vsub.s32 %v6659_v34, %v2975_v3  ;;  %v2427_v16 = vpop.f32.mrf.mxu2  ;;  %v2516_v20 = vpop.f32.mrf.mxu3  ;;  %vm3929_vm14 = vmand %vm2777_vm12, %vm6790_vm15 }
 0x25c   : > { %v7868_v59 = vrot.slane %v6585_v40, 2  ;;  %v6805_v42 = vsel %vm3008_vm5, %v3009_v5, %v6707_v43  ;;  %v2678_v60 = vadd.f32 %v2603_v37, %v1703_v44  ;;  %v1706_v8 = vadd.f32 %v1705_v50, %v5979_v12  ;;  %v1707_v2 = vpop.f32.mrf.mxu1 }
 0x25d   : > { %v2988_v34 = vmul.u32 58254, %v2983_v39  ;;  %v2989_v13 = vshll.u32 %v2986_v11, 16  ;;  %v2977_v30 = vsub.s32 0, %v2976_v17  ;;  %v2991_v40 = vshll.u32 %v6778_v61, 16  ;;  %v2607_v39 = vpop.f32.mrf.mxu0 }
 0x25e   : > { %v6800_v54 = vsel %vm2116_vm2, %v7868_v59, %v2188_v9  ;;  %v3011_v56 = vand.u32 65535, %v6805_v42  ;;  %v2004_v6 = vshrl.u32 %v6675_v47, 16  ;;  %v4024_v14 = vsel %vm6784_vm13, %v2678_v60, 0.0 }
 0x25f   : > { %v5068_v44 = vpack.c.bf16 %v2678_v60, %v2677_v55  ;;  %vm2993_vm3 = vc.u32 %v2985_v21, %v2989_v13  ;;  %v2995_v12 = vadd.s32 %v2989_v13, %v2985_v21  ;;  %v4055_v29 = vadd.f32 %v4054_v28, %v4024_v14 }
 0x260   : > { %v4094_v15 = vmul.f32 %v4024_v14, %v2678_v60  ;;  %v2978_v25 = vsel %vm2950_vm6, %v2977_v30, %v2976_v17  ;;  %v2994_v50 = vsel %vm2993_vm3, 1, %v7798_v23  ;;  %v2517_v45 = vadd.f32 %v2516_v20, %v2427_v16 }
 0x261   : > { %5144 = vst [vmem:[%s5333_s28 + $0x8] sm:$0xff] %v5068_v44   ;;  %vm2778_vm4 = vcmp.lt.s32.totalorder %v6610_v51, 288  ;;  %vm3738_vm8 = vcmp.ne.s32.totalorder %v2978_v25, 0  ;;  %vm3770_vm7 = vcmp.lt.s32.totalorder %v2978_v25, 0  ;;  %v3834_v55 = vadd.s32 18, %v2978_v25 }
 0x262   : > { %v4125_v3 = vadd.f32 %v4124_v27, %v4094_v15  ;;  %vm6820_vm10 = vmand %vm3770_vm7, %vm3738_vm8  ;;  %v2990_v5 = vshrl.u32 %v2986_v11, 16  ;;  %v2996_v37 = vadd.s32 %v2994_v50, %v2988_v34  ;;  %vm2997_vm6 = vc.u32 %v2995_v12, %v2991_v40 }
 0x263   : > { %v2606_v21 = vadd.f32 %v2605_v62, %v2517_v45  ;;  %v3866_v36 = vsel %vm6820_vm10, %v3834_v55, %v2978_v25  ;;  %v2998_v19 = vsel %vm2997_vm6, 1, %v7798_v23  ;;  %v3012_v17 = vshrl.u32 %v6805_v42, 16  ;;  %v2429_v16 = vpop.f32.mrf.mxu2  ;;  %v2518_v20 = vpop.f32.mrf.mxu3 }
 0x264   : > { %v2992_v27 = vshrl.u32 %v6778_v61, 16  ;;  %v3000_v59 = vadd.s32 %v2998_v19, %v2996_v37  ;;  %v3014_v11 = vmul.u32 14564, %v3011_v56  ;;  %v3015_v60 = vmul.u32 58254, %v3011_v56  ;;  %v1710_v45 = vpop.f32.mrf.mxu1 }
 0x265   : > { %v2679_v34 = vadd.f32 %v2606_v21, %v1706_v8  ;;  %v1708_v62 = vadd.f32 %v1707_v2, %v5989_v31  ;;  %v7871_v13 = vrot.slane %v6592_v49, 2  ;;  %v6839_v40 = vmul.u32 14564, %v3012_v17  ;;  %v2610_v2 = vpop.f32.mrf.mxu0 }
 0x266   : > { %vm6844_vm11 = vcmp.lt.s32.totalorder %v3866_v36, 16  ;;  %v3001_v61 = vadd.s32 %v3000_v59, %v2990_v5  ;;  %v3017_v14 = vmul.u32 58254, %v3012_v17  ;;  %v3018_v56 = vshll.u32 %v3015_v60, 16 }
 0x267   : > { %v2191_v30 = vsel %vm2116_vm2, %v7871_v13, %v2190_v26  ;;  %v4025_v8 = vsel %vm3929_vm14, %v2679_v34, 0.0  ;;  %v3020_v31 = vshll.u32 %v6839_v40, 16  ;;  %v2192_v44 = vrot.slane %v6675_v47, 2  ;;  %vm6860_vm15 = vmand %vm2778_vm4, %vm6844_vm11 }
 0x268   : > { %v2006_v49 = vor.u32 %v2004_v6, %v6719_v10  ;;  %v4056_v12 = vadd.f32 %v4055_v29, %v4025_v8  ;;  %v4095_v15 = vmul.f32 %v4025_v8, %v2679_v34  ;;  %v3002_v25 = vadd.s32 %v3001_v61, %v2992_v27  ;;  %v7876_v27 = vld [vmem:[#allocation14_spill] sm:$0xff]  ;;  %2649 = vmatmul.bf16.gmra.mxu0 %v2191_v30 }
 0x269   : > { %vm3022_vm12 = vc.u32 %v3014_v11, %v3018_v56  ;;  %v2519_v50 = vadd.f32 %v2518_v20, %v2429_v16  ;;  %v3024_v28 = vadd.s32 %v3018_v56, %v3014_v11  ;;  %v2008_v5 = vshll.u32 %v6842_v35, 16  ;;  %1749 = vmatmul.bf16.gmra.mxu1 %v7876_v27  ;;  %2471 = vmatmul.bf16.gmra.mxu2 %v6751_v1 }
 0x26a   : > { %v3023_v55 = vsel %vm3022_vm12, 1, %v7798_v23  ;;  %v4126_v37 = vadd.f32 %v4125_v3, %v4095_v15  ;;  %v3003_v21 = vshrl.u32 %v3002_v25, 4  ;;  %v3019_v36 = vshrl.u32 %v3015_v60, 16  ;;  %2560 = vmatmul.bf16.gmra.mxu3 %v6800_v54 }
 0x26b   : > { %v3025_v19 = vadd.s32 %v3023_v55, %v3017_v14  ;;  %v2608_v17 = vadd.f32 %v2607_v39, %v2519_v50  ;;  %vm3026_vm13 = vc.u32 %v3024_v28, %v3020_v31  ;;  %v6853_v10 = vrot.slane %v2008_v5, 1  ;;  %v2432_v14 = vpop.f32.mrf.mxu2  ;;  %v2521_v56 = vpop.f32.mrf.mxu3  ;;  %v6905_v5 = vld [vmem:[%s5373_s25 + $0x88] sm:$0xff] }
 0x26c   : > { %v2061_v6 = vrot.slane %v6842_v35, 1  ;;  %vm2779_vm3 = vcmp.lt.s32.totalorder %v6691_v57, 288  ;;  %v3004_v3 = vmul.u32 18, %v3003_v21  ;;  %v3027_v39 = vsel %vm3026_vm13, 1, %v7798_v23  ;;  %v1712_v15 = vpop.f32.mrf.mxu1 }
 0x26d   : > { %v2716_v59 = vadd.s32 64, %v6213_v4  ;;  %v2680_v11 = vadd.f32 %v2608_v17, %v1708_v62  ;;  %v3021_v51 = vshrl.u32 %v6839_v40, 16  ;;  %v3029_v60 = vadd.s32 %v3027_v39, %v3025_v19  ;;  %v2612_v16 = vpop.f32.mrf.mxu0 }
 0x26e   : > { %v6873_v13 = vsel %vm496_vm1, %v2006_v49, %v6853_v10  ;;  %v3005_v30 = vsub.s32 %v6768_v32, %v3004_v3  ;;  %v6881_v62 = vsel %vm2116_vm2, %v2186_v48, %v2192_v44  ;;  %v6888_v1 = vsel %vm648_vm0, %v2059_v52, %v2061_v6 }
 0x26f   : > { %v6891_v54 = vadd.s32 %v6219_v58, %v2716_v59  ;;  %v4026_v32 = vsel %vm6860_vm15, %v2680_v11, 0.0  ;;  %v5073_v40 = vpack.c.bf16 %v2680_v11, %v2679_v34  ;;  %v3030_v53 = vadd.s32 %v3029_v60, %v3019_v36 }
 0x270   : > { %v2717_v18 = vadd.s32 72, %v6213_v4  ;;  %v4057_v61 = vadd.f32 %v4056_v12, %v4026_v32  ;;  %v4096_v48 = vmul.f32 %v4026_v32, %v2680_v11  ;;  %v3006_v8 = vsub.s32 0, %v3005_v30 }
 0x271   : > { %v2194_v31 = vrot.slane %v6873_v13, 2  ;;  %5145 = vst [vmem:[%s5333_s28 + $0x10] sm:$0xff] %v5073_v40   ;;  %v1711_v52 = vadd.f32 %v1710_v45, %v5996_v33  ;;  %v2522_v49 = vadd.f32 %v2521_v56, %v2432_v14  ;;  %v3031_v20 = vadd.s32 %v3030_v53, %v3021_v51 }
 0x272   : > { %v2196_v34 = vrot.slane %v6888_v1, 2  ;;  %v4127_v25 = vadd.f32 %v4126_v37, %v4096_v48  ;;  %v3007_v12 = vsel %vm2979_vm9, %v3006_v8, %v3005_v30  ;;  %vm3037_vm4 = vcmp.lt.s32.totalorder %v6891_v54, 0 }
 0x273   : > { %v2718_v50 = vadd.s32 80, %v6213_v4  ;;  %v2611_v55 = vadd.f32 %v2610_v2, %v2522_v49  ;;  %vm3739_vm8 = vcmp.ne.s32.totalorder %v3007_v12, 0  ;;  %vm3771_vm7 = vcmp.lt.s32.totalorder %v3007_v12, 0  ;;  %v2434_v39 = vpop.f32.mrf.mxu2  ;;  %v2523_v59 = vpop.f32.mrf.mxu3 }
 0x274   : > { %v3835_v28 = vadd.s32 18, %v3007_v12  ;;  %vm3803_vm10 = vmand %vm3771_vm7, %vm3739_vm8  ;;  %v3032_v33 = vshrl.u32 %v3031_v20, 4  ;;  %v2195_v45 = vsel %vm2116_vm2, %v2188_v9, %v2194_v31  ;;  %v3038_v37 = vsub.s32 0, %v6891_v54  ;;  %v1715_v32 = vpop.f32.mrf.mxu1 }
 0x275   : > { %v6914_v21 = vadd.s32 %v6219_v58, %v2717_v18  ;;  %v2681_v36 = vadd.f32 %v2611_v55, %v1711_v52  ;;  %v2197_v19 = vsel %vm2116_vm2, %v2190_v26, %v2196_v34  ;;  %v2012_v17 = vshrl.u32 %v6842_v35, 16  ;;  %v2615_v52 = vpop.f32.mrf.mxu0 }
 0x276   : > { %v3867_v2 = vsel %vm3803_vm10, %v3835_v28, %v3007_v12  ;;  %v1713_v46 = vadd.f32 %v1712_v15, %v6011_v0  ;;  %vm2780_vm6 = vcmp.lt.s32.totalorder %v6707_v43, 288  ;;  %v3033_v9 = vmul.u32 18, %v3032_v33 }
 0x277   : > { %vm3899_vm9 = vcmp.lt.s32.totalorder %v3867_v2, 16  ;;  %v6927_v29 = vsel %vm3037_vm4, %v3038_v37, %v6891_v54  ;;  %v2016_v27 = vshll.u32 %v6905_v5, 16  ;;  %v6935_v3 = vadd.s32 %v6219_v58, %v2718_v50 }
 0x278   : > { %vm3931_vm14 = vmand %vm2779_vm3, %vm3899_vm9  ;;  %v3040_v41 = vand.u32 65535, %v6927_v29  ;;  %v3041_v26 = vshrl.u32 %v6927_v29, 16  ;;  %v3034_v11 = vsub.s32 %v6805_v42, %v3033_v9  ;;  %vm3066_vm11 = vcmp.lt.s32.totalorder %v6914_v21, 0  ;;  %2654 = vmatmul.bf16.gmra.mxu0 %v2197_v19 }
 0x279   : > { %v4027_v0 = vsel %vm3931_vm14, %v2681_v36, 0.0  ;;  %v3067_v51 = vsub.s32 0, %v6914_v21  ;;  %v2524_v30 = vadd.f32 %v2523_v59, %v2434_v39  ;;  %v6941_v40 = vor.u32 %v2012_v17, %v6853_v10  ;;  %1754 = vmatmul.bf16.gmra.mxu1 %v5711_v38  ;;  %2476 = vmatmul.bf16.gmra.mxu2 %v6881_v62 }
 0x27a   : > { %v4058_v57 = vadd.f32 %v4057_v61, %v4027_v0  ;;  %v4097_v60 = vmul.f32 %v4027_v0, %v2681_v36  ;;  %v3035_v53 = vsub.s32 0, %v3034_v11  ;;  %v3043_v18 = vmul.u32 14564, %v3040_v41  ;;  %2565 = vmatmul.bf16.gmra.mxu3 %v2195_v45 }
 0x27b   : > { %v3044_v48 = vmul.u32 58254, %v3040_v41  ;;  %v3045_v14 = vmul.u32 14564, %v3041_v26  ;;  %v2613_v8 = vadd.f32 %v2612_v16, %v2524_v30  ;;  %v6943_v49 = vrot.slane %v2016_v27, 1  ;;  %v2437_v2 = vpop.f32.mrf.mxu2  ;;  %v2526_v62 = vpop.f32.mrf.mxu3 }
 0x27c   : > { %v4128_v56 = vadd.f32 %v4127_v25, %v4097_v60  ;;  %v2063_v42 = vrot.slane %v6905_v5, 1  ;;  %v3036_v61 = vsel %vm3008_vm5, %v3035_v53, %v3034_v11  ;;  %v3046_v15 = vmul.u32 58254, %v3041_v26 }
 0x27d   : > { %v3047_v10 = vshll.u32 %v3044_v48, 16  ;;  %v3049_v20 = vshll.u32 %v3045_v14, 16  ;;  %v2682_v12 = vadd.f32 %v2613_v8, %v1713_v46  ;;  %vm3740_vm12 = vcmp.ne.s32.totalorder %v3036_v61, 0  ;;  %v2617_v8 = vpop.f32.mrf.mxu0 }
 0x27e   : > { %vm3772_vm13 = vcmp.lt.s32.totalorder %v3036_v61, 0  ;;  %v3836_v50 = vadd.s32 18, %v3036_v61  ;;  %v3048_v16 = vshrl.u32 %v3044_v48, 16  ;;  %v6953_v38 = vsel %vm3066_vm11, %v3067_v51, %v6914_v21 }
 0x27f   : > { %vm3804_vm15 = vmand %vm3772_vm13, %vm3740_vm12  ;;  %vm3051_vm3 = vc.u32 %v3043_v18, %v3047_v10  ;;  %v3053_v25 = vadd.s32 %v3047_v10, %v3043_v18  ;;  %v5078_v28 = vpack.c.bf16 %v2682_v12, %v2681_v36  ;;  %v3069_v37 = vand.u32 65535, %v6953_v38  ;;  %v1717_v36 = vpop.f32.mrf.mxu1 }
 0x280   : > { %v3868_v55 = vsel %vm3804_vm15, %v3836_v50, %v3036_v61  ;;  %v3052_v33 = vsel %vm3051_vm3, 1, %v7798_v23  ;;  %v3070_v19 = vshrl.u32 %v6953_v38, 16  ;;  %v2527_v17 = vadd.f32 %v2526_v62, %v2437_v2 }
 0x281   : > { %vm3900_vm5 = vcmp.lt.s32.totalorder %v3868_v55, 16  ;;  %v3054_v45 = vadd.s32 %v3052_v33, %v3046_v15  ;;  %vm3055_vm8 = vc.u32 %v3053_v25, %v3049_v20  ;;  %5146 = vst [vmem:[%s5333_s28 + $0x18] sm:$0xff] %v5078_v28   ;;  %v3050_v46 = vshrl.u32 %v3045_v14, 16 }
 0x282   : > { %vm3932_vm7 = vmand %vm2780_vm6, %vm3900_vm5  ;;  %v3056_v9 = vsel %vm3055_vm8, 1, %v7798_v23  ;;  %v3073_v41 = vmul.u32 58254, %v3069_v37  ;;  %v3072_v0 = vmul.u32 14564, %v3069_v37  ;;  %v3074_v39 = vmul.u32 14564, %v3070_v19 }
 0x283   : > { %v4028_v26 = vsel %vm3932_vm7, %v2682_v12, 0.0  ;;  %v3058_v27 = vadd.s32 %v3056_v9, %v3054_v45  ;;  %v1716_v51 = vadd.f32 %v1715_v32, %v6025_v24  ;;  %v2616_v60 = vadd.f32 %v2615_v52, %v2527_v17  ;;  %v2528_v50 = vpop.f32.mrf.mxu3 }
 0x284   : > { %v6962_v59 = vadd.f32 %v4058_v57, %v4028_v26  ;;  %v4098_v11 = vmul.f32 %v4028_v26, %v2682_v12  ;;  %v3075_v43 = vmul.u32 58254, %v3070_v19  ;;  %v3076_v53 = vshll.u32 %v3073_v41, 16  ;;  %v2439_v12 = vpop.f32.mrf.mxu2 }
 0x285   : > { %v3059_v30 = vadd.s32 %v3058_v27, %v3048_v16  ;;  %v3078_v18 = vshll.u32 %v3074_v39, 16  ;;  %v1718_v14 = vadd.f32 %v1717_v36, %v6037_v22  ;;  %v3077_v61 = vshrl.u32 %v3073_v41, 16  ;;  %v2620_v26 = vpop.f32.mrf.mxu0 }
 0x286   : > { %v6965_v48 = vadd.f32 %v4128_v56, %v4098_v11  ;;  %v2198_v15 = vrot.slane %v6842_v35, 2  ;;  %vm3080_vm10 = vc.u32 %v3072_v0, %v3076_v53  ;;  %v3082_v57 = vadd.s32 %v3076_v53, %v3072_v0 }
 0x287   : > { %v3060_v10 = vadd.s32 %v3059_v30, %v3050_v46  ;;  %v6972_v24 = vsel %vm496_vm1, %v6941_v40, %v6943_v49  ;;  %v6974_v32 = vadd.f32 %v2616_v60, %v1716_v51  ;;  %v3081_v52 = vsel %vm3080_vm10, 1, %v7798_v23  ;;  %v1720_v33 = vpop.f32.mrf.mxu1 }
 0x288   : > { %v2200_v56 = vrot.slane %v6972_v24, 2  ;;  %v6983_v22 = vsel %vm648_vm0, %v2061_v6, %v2063_v42  ;;  %v3083_v16 = vadd.s32 %v3081_v52, %v3075_v43  ;;  %vm3084_vm9 = vc.u32 %v3082_v57, %v3078_v18 }
 0x289   : > { %v3061_v20 = vshrl.u32 %v3060_v10, 4  ;;  %v2202_v40 = vrot.slane %v6983_v22, 2  ;;  %v2529_v25 = vadd.f32 %v2528_v50, %v2439_v12  ;;  %v3079_v55 = vshrl.u32 %v3074_v39, 16  ;;  %1759 = vmatmul.bf16.gmra.mxu1 %v5515_v7 }
 0x28a   : > { %v3085_v28 = vsel %vm3084_vm9, 1, %v7798_v23  ;;  %v2199_v6 = vsel %vm2116_vm2, %v2192_v44, %v2198_v15  ;;  %v2201_v62 = vsel %vm2116_vm2, %v2194_v31, %v2200_v56  ;;  %vm3095_vm6 = vcmp.lt.s32.totalorder %v6935_v3, 0  ;;  %v1808_v31 = vld [vmem:[%s5373_s25 + $0x90] sm:$0x7] }
 0x28b   : > { %v3062_v37 = vmul.u32 18, %v3061_v20  ;;  %v3087_v2 = vadd.s32 %v3085_v28, %v3083_v16  ;;  %v2203_v45 = vsel %vm2116_vm2, %v2196_v34, %v2202_v40  ;;  %v2618_v19 = vadd.f32 %v2617_v8, %v2529_v25  ;;  %2481 = vmatmul.bf16.gmra.mxu2 %v2199_v6  ;;  %2570 = vmatmul.bf16.gmra.mxu3 %v2201_v62  ;;  %v2531_v30 = vpop.f32.mrf.mxu3 }
 0x28c   : > { %v3096_v47 = vsub.s32 0, %v6935_v3  ;;  %v2719_v44 = vadd.s32 88, %v6213_v4  ;;  %v7007_v13 = vadd.f32 %v1720_v33, %v6045_v63  ;;  %2659 = vmatmul.bf16.gmra.mxu0 %v2203_v45  ;;  %vm2781_vm14 = vcmp.lt.s32.totalorder %v6891_v54, 288  ;;  %v2442_v60 = vpop.f32.mrf.mxu2 }
 0x28d   : > { %v3063_v17 = vsub.s32 %v6927_v29, %v3062_v37  ;;  %v3088_v46 = vadd.s32 %v3087_v2, %v3077_v61  ;;  %v7012_v1 = vadd.f32 %v2618_v19, %v1718_v14  ;;  %v1894_v27 = vunpack.c.l.b16 %v1808_v31 }
 0x28e   : > { %v7017_v34 = vsel %vm3095_vm6, %v3096_v47, %v6935_v3  ;;  %v7020_v29 = vadd.s32 %v6219_v58, %v2719_v44  ;;  %v2020_v0 = vshrl.u32 %v6905_v5, 16  ;;  %v7028_v39 = vadd.s32 96, %v6213_v4 }
 0x28f   : > { %v3064_v63 = vsub.s32 0, %v3063_v17  ;;  %v3089_v9 = vadd.s32 %v3088_v46, %v3079_v55  ;;  %v3098_v7 = vand.u32 65535, %v7017_v34  ;;  %v3099_v36 = vshrl.u32 %v7017_v34, 16  ;;  %v1722_v6 = vpop.f32.mrf.mxu1 }
 0x290   : > { %v5083_v41 = vpack.c.bf16 %v7012_v1, %v6974_v32  ;;  %v2532_v14 = vadd.f32 %v2531_v30, %v2442_v60  ;;  %vm2782_vm3 = vcmp.lt.s32.totalorder %v6914_v21, 288  ;;  %v3125_v57 = vsub.s32 0, %v7020_v29 }
 0x291   : > { %v3065_v11 = vsel %vm3037_vm4, %v3064_v63, %v3063_v17  ;;  %v3090_v51 = vshrl.u32 %v3089_v9, 4  ;;  %v3101_v43 = vmul.u32 14564, %v3098_v7  ;;  %v3102_v53 = vmul.u32 58254, %v3098_v7  ;;  %v2622_v7 = vpop.f32.mrf.mxu0 }
 0x292   : > { %vm3741_vm12 = vcmp.ne.s32.totalorder %v3065_v11, 0  ;;  %vm3773_vm13 = vcmp.lt.s32.totalorder %v3065_v11, 0  ;;  %v3837_v18 = vadd.s32 18, %v3065_v11  ;;  %5147 = vst [vmem:[%s5333_s28 + $0x20] sm:$0xff] %v5083_v41   ;;  %v3103_v61 = vmul.u32 14564, %v3099_v36 }
 0x293   : > { %vm3805_vm15 = vmand %vm3773_vm13, %vm3741_vm12  ;;  %v3091_v8 = vmul.u32 18, %v3090_v51  ;;  %v3105_v10 = vshll.u32 %v3102_v53, 16  ;;  %v3104_v20 = vmul.u32 58254, %v3099_v36  ;;  %vm3124_vm4 = vcmp.lt.s32.totalorder %v7020_v29, 0  ;;  %v2533_v46 = vpop.f32.mrf.mxu3 }
 0x294   : > { %v3869_v52 = vsel %vm3805_vm15, %v3837_v18, %v3065_v11  ;;  %v7036_v12 = vpack.c.b16 %v1894_v27, %v1894_v27  ;;  %v2621_v16 = vadd.f32 %v2620_v26, %v2532_v14  ;;  %v3107_v25 = vshll.u32 %v3103_v61, 16  ;;  %v2444_v17 = vpop.f32.mrf.mxu2  ;;  %v7877_v11 = vld [vmem:[#allocation26_spill] sm:$0xff]  ;;  %v7878_v14 = vld [vmem:[#allocation12_spill] sm:$0xff] }
 0x295   : > { %vm3901_vm5 = vcmp.lt.s32.totalorder %v3869_v52, 16  ;;  %v3092_v50 = vsub.s32 %v6953_v38, %v3091_v8  ;;  %v3106_v55 = vshrl.u32 %v3102_v53, 16  ;;  %v3108_v28 = vshrl.u32 %v3103_v61, 16 }
 0x296   : > { %vm3933_vm8 = vmand %vm2781_vm14, %vm3901_vm5  ;;  %vm3109_vm7 = vc.u32 %v3101_v43, %v3105_v10  ;;  %v3111_v33 = vadd.s32 %v3105_v10, %v3101_v43  ;;  %v7046_v45 = vsel %vm3124_vm4, %v3125_v57, %v7020_v29  ;;  %v2534_v36 = vadd.f32 %v2533_v46, %v2444_v17 }
 0x297   : > { %v4029_v37 = vsel %vm3933_vm8, %v6974_v32, 0.0  ;;  %v3093_v2 = vsub.s32 0, %v3092_v50  ;;  %v3110_v62 = vsel %vm3109_vm7, 1, %v7798_v23  ;;  %v3127_v31 = vand.u32 65535, %v7046_v45 }
 0x298   : > { %v4060_v38 = vadd.f32 %v6962_v59, %v4029_v37  ;;  %v4099_v54 = vmul.f32 %v4029_v37, %v6974_v32  ;;  %v3112_v19 = vadd.s32 %v3110_v62, %v3104_v20  ;;  %vm3113_vm10 = vc.u32 %v3111_v33, %v3107_v25 }
 0x299   : > { %v3094_v47 = vsel %vm3066_vm11, %v3093_v2, %v3092_v50  ;;  %v3114_v44 = vsel %vm3113_vm10, 1, %v7798_v23  ;;  %v3128_v63 = vshrl.u32 %v7046_v45, 16  ;;  %v3130_v41 = vmul.u32 14564, %v3127_v31  ;;  %1764 = vmatmul.bf16.gmra.mxu1 %v7878_v14  ;;  %v2625_v17 = vpop.f32.mrf.mxu0 }
 0x29a   : > { %v4130_v9 = vadd.f32 %v6965_v48, %v4099_v54  ;;  %vm3742_vm9 = vcmp.ne.s32.totalorder %v3094_v47, 0  ;;  %vm3774_vm14 = vcmp.lt.s32.totalorder %v3094_v47, 0  ;;  %v3838_v59 = vadd.s32 18, %v3094_v47 }
 0x29b   : > { %vm3806_vm12 = vmand %vm3774_vm14, %vm3742_vm9  ;;  %v3116_v32 = vadd.s32 %v3114_v44, %v3112_v19  ;;  %v3131_v26 = vmul.u32 58254, %v3127_v31  ;;  %v1723_v51 = vadd.f32 %v1722_v6, %v7877_v11  ;;  %v3132_v60 = vmul.u32 14564, %v3128_v63  ;;  %v2536_v2 = vpop.f32.mrf.mxu3 }
 0x29c   : > { %v3870_v27 = vsel %vm3806_vm12, %v3838_v59, %v3094_v47  ;;  %v3133_v30 = vmul.u32 58254, %v3128_v63  ;;  %v2623_v53 = vadd.f32 %v2622_v7, %v2534_v36  ;;  %v7061_v48 = vadd.f32 %v2621_v16, %v7007_v13  ;;  %v1725_v13 = vpop.f32.mrf.mxu1  ;;  %v2447_v37 = vpop.f32.mrf.mxu2 }
 0x29d   : > { %vm3902_vm11 = vcmp.lt.s32.totalorder %v3870_v27, 16  ;;  %v3117_v43 = vadd.s32 %v3116_v32, %v3106_v55  ;;  %v3134_v18 = vshll.u32 %v3131_v26, 16  ;;  %v3135_v8 = vshrl.u32 %v3131_v26, 16  ;;  %v7879_v32 = vld [vmem:[#allocation27_spill] sm:$0xff] }
 0x29e   : > { %vm3934_vm13 = vmand %vm2782_vm3, %vm3902_vm11  ;;  %v3136_v61 = vshll.u32 %v3132_v60, 16  ;;  %v2204_v10 = vrot.slane %v6905_v5, 2  ;;  %v7065_v20 = vadd.f32 %v2623_v53, %v1723_v51  ;;  %v2065_v35 = vrot.slane %v7036_v12, 1  ;;  %v1807_v51 = vld [vmem:[%s5373_s25 + $0x90] sm:$0x3] }
 0x29f   : > { %v4030_v57 = vsel %vm3934_vm13, %v7012_v1, 0.0  ;;  %v3118_v52 = vadd.s32 %v3117_v43, %v3108_v28  ;;  %vm3138_vm15 = vc.u32 %v3130_v41, %v3134_v18  ;;  %v3140_v55 = vadd.s32 %v3134_v18, %v3130_v41 }
 0x2a0   : > { %v7067_v50 = vadd.f32 %v4060_v38, %v4030_v57  ;;  %v4100_v25 = vmul.f32 %v4030_v57, %v7012_v1  ;;  %v3139_v21 = vsel %vm3138_vm15, 1, %v7798_v23  ;;  %v5088_v6 = vpack.c.bf16 %v7065_v20, %v7061_v48 }
 0x2a1   : > { %v3119_v16 = vshrl.u32 %v3118_v52, 4  ;;  %v3141_v33 = vadd.s32 %v3139_v21, %v3133_v30  ;;  %v2205_v28 = vsel %vm2116_vm2, %v2198_v15, %v2204_v10  ;;  %vm3142_vm3 = vc.u32 %v3140_v55, %v3136_v61  ;;  %v7880_v55 = vld [vmem:[#allocation28_spill] sm:$0xff] }
 0x2a2   : > { %v7078_v62 = vadd.f32 %v4130_v9, %v4100_v25  ;;  %2486 = vmatmul.bf16.gmra.mxu2 %v2205_v28  ;;  %v2022_v1 = vor.u32 %v2020_v0, %v6943_v49  ;;  %v2024_v38 = vshll.u32 %v7036_v12, 16  ;;  %v3143_v19 = vsel %vm3142_vm3, 1, %v7798_v23  ;;  %5148 = vst [vmem:[%s5333_s28 + $0x28] sm:$0xff] %v5088_v6  }
 0x2a3   : > { %v3120_v54 = vmul.u32 18, %v3119_v16  ;;  %v2537_v47 = vadd.f32 %v2536_v2, %v2447_v37  ;;  %v3137_v15 = vshrl.u32 %v3132_v60, 16  ;;  %v3145_v44 = vadd.s32 %v3143_v19, %v3141_v33 }
 0x2a4   : > { %v7087_v46 = vrot.slane %v2024_v38, 1  ;;  %v7091_v31 = vadd.s32 %v6219_v58, %v7028_v39  ;;  %v7099_v0 = vsel %vm648_vm0, %v2063_v42, %v2065_v35  ;;  %v2721_v9 = vadd.s32 104, %v6213_v4  ;;  %v1727_v18 = vpop.f32.mrf.mxu1  ;;  %v2449_v24 = vpop.f32.mrf.mxu2 }
 0x2a5   : > { %v3121_v49 = vsub.s32 %v7017_v34, %v3120_v54  ;;  %v2626_v63 = vadd.f32 %v2625_v17, %v2537_v47  ;;  %vm2783_vm5 = vcmp.lt.s32.totalorder %v6935_v3, 288  ;;  %v3146_v59 = vadd.s32 %v3145_v44, %v3135_v8 }
 0x2a6   : > { %v7105_v39 = vsel %vm496_vm1, %v2022_v1, %v7087_v46  ;;  %v2208_v34 = vrot.slane %v7099_v0, 2  ;;  %v1726_v36 = vadd.f32 %v1725_v13, %v7879_v32  ;;  %v7111_v42 = vadd.s32 112, %v6213_v4  ;;  %v2627_v1 = vpop.f32.mrf.mxu0 }
 0x2a7   : > { %v3122_v7 = vsub.s32 0, %v3121_v49  ;;  %v2206_v41 = vrot.slane %v7105_v39, 2  ;;  %v3147_v26 = vadd.s32 %v3146_v59, %v3137_v15  ;;  %vm3153_vm1 = vcmp.lt.s32.totalorder %v7091_v31, 0 }
 0x2a8   : > { %v2209_v27 = vsel %vm2116_vm2, %v2202_v40, %v2208_v34  ;;  %v3154_v11 = vsub.s32 0, %v7091_v31  ;;  %v7128_v43 = vadd.f32 %v2626_v63, %v1726_v36  ;;  %v7131_v22 = vadd.s32 %v6219_v58, %v2721_v9 }
 0x2a9   : > { %v3123_v60 = vsel %vm3095_vm6, %v3122_v7, %v3121_v49  ;;  %v2207_v30 = vsel %vm2116_vm2, %v2200_v56, %v2206_v41  ;;  %2664 = vmatmul.bf16.gmra.mxu0 %v2209_v27  ;;  %v3148_v53 = vshrl.u32 %v3147_v26, 4  ;;  %v2538_v56 = vpop.f32.mrf.mxu3  ;;  %v1875_v61 = vunpack.c.l.b16 %v1807_v51 }
 0x2aa   : > { %vm3743_vm8 = vcmp.ne.s32.totalorder %v3123_v60, 0  ;;  %vm3775_vm7 = vcmp.lt.s32.totalorder %v3123_v60, 0  ;;  %v3839_v40 = vadd.s32 18, %v3123_v60  ;;  %2575 = vmatmul.bf16.gmra.mxu3 %v2207_v30  ;;  %v7136_v14 = vsel %vm3153_vm1, %v3154_v11, %v7091_v31 }
 0x2ab   : > { %vm3807_vm10 = vmand %vm3775_vm7, %vm3743_vm8  ;;  %vm3182_vm6 = vcmp.lt.s32.totalorder %v7131_v22, 0  ;;  %v3183_v8 = vsub.s32 0, %v7131_v22  ;;  %vm2784_vm9 = vcmp.lt.s32.totalorder %v7020_v29, 288  ;;  %v3149_v52 = vmul.u32 18, %v3148_v53 }
 0x2ac   : > { %v3871_v57 = vsel %vm3807_vm10, %v3839_v40, %v3123_v60  ;;  %v3156_v25 = vand.u32 65535, %v7136_v14  ;;  %v3157_v21 = vshrl.u32 %v7136_v14, 16  ;;  %v1728_v13 = vadd.f32 %v1727_v18, %v7880_v55  ;;  %v1730_v18 = vpop.f32.mrf.mxu1 }
 0x2ad   : > { %vm3903_vm14 = vcmp.lt.s32.totalorder %v3871_v57, 16  ;;  %v2539_v16 = vadd.f32 %v2538_v56, %v2449_v24  ;;  %v7147_v33 = vsel %vm3182_vm6, %v3183_v8, %v7131_v22  ;;  %v3150_v6 = vsub.s32 %v7046_v45, %v3149_v52 }
 0x2ae   : > { %vm3935_vm12 = vmand %vm2783_vm5, %vm3903_vm14  ;;  %v3159_v28 = vmul.u32 14564, %v3156_v25  ;;  %v3160_v37 = vmul.u32 58254, %v3156_v25  ;;  %v3161_v2 = vmul.u32 14564, %v3157_v21  ;;  %v3162_v54 = vmul.u32 58254, %v3157_v21 }
 0x2af   : > { %v4031_v38 = vsel %vm3935_vm12, %v7061_v48, 0.0  ;;  %v2628_v19 = vadd.f32 %v2627_v1, %v2539_v16  ;;  %v1892_v47 = vpack.c.b16 %v1875_v61, %v1875_v61  ;;  %v3151_v17 = vsub.s32 0, %v3150_v6  ;;  %v7881_v61 = vld [vmem:[#allocation25_spill] sm:$0xff] }
 0x2b0   : > { %v4062_v15 = vadd.f32 %v7067_v50, %v4031_v38  ;;  %v4101_v44 = vmul.f32 %v4031_v38, %v7061_v48  ;;  %v3163_v49 = vshll.u32 %v3160_v37, 16  ;;  %v3164_v63 = vshrl.u32 %v3160_v37, 16 }
 0x2b1   : > { %v3165_v3 = vshll.u32 %v3161_v2, 16  ;;  %v7155_v9 = vadd.f32 %v2628_v19, %v1728_v13  ;;  %v3185_v45 = vand.u32 65535, %v7147_v33  ;;  %v3152_v7 = vsel %vm3124_vm4, %v3151_v17, %v3150_v6  ;;  %v2541_v19 = vpop.f32.mrf.mxu3 }
 0x2b2   : > { %v4132_v59 = vadd.f32 %v7078_v62, %v4101_v44  ;;  %vm3167_vm11 = vc.u32 %v3159_v28, %v3163_v49  ;;  %v3169_v32 = vadd.s32 %v3163_v49, %v3159_v28  ;;  %vm3744_vm13 = vcmp.ne.s32.totalorder %v3152_v7, 0  ;;  %v2630_v28 = vpop.f32.mrf.mxu0 }
 0x2b3   : > { %vm3776_vm15 = vcmp.lt.s32.totalorder %v3152_v7, 0  ;;  %v3840_v50 = vadd.s32 18, %v3152_v7  ;;  %v3168_v48 = vsel %vm3167_vm11, 1, %v7798_v23  ;;  %v3186_v26 = vshrl.u32 %v7147_v33, 16 }
 0x2b4   : > { %vm3808_vm3 = vmand %vm3776_vm15, %vm3744_vm13  ;;  %v3170_v36 = vadd.s32 %v3168_v48, %v3162_v54  ;;  %vm3171_vm5 = vc.u32 %v3169_v32, %v3165_v3  ;;  %v3188_v27 = vmul.u32 14564, %v3185_v45  ;;  %v3189_v51 = vmul.u32 58254, %v3185_v45  ;;  %v2452_v54 = vpop.f32.mrf.mxu2 }
 0x2b5   : > { %v3872_v11 = vsel %vm3808_vm3, %v3840_v50, %v3152_v7  ;;  %v3172_v62 = vsel %vm3171_vm5, 1, %v7798_v23  ;;  %v5093_v60 = vpack.c.bf16 %v7155_v9, %v7128_v43  ;;  %v3166_v30 = vshrl.u32 %v3161_v2, 16  ;;  %v7882_v2 = vld [vmem:[#allocation9_spill] sm:$0xff] }
 0x2b6   : > { %vm3904_vm4 = vcmp.lt.s32.totalorder %v3872_v11, 16  ;;  %v3174_v40 = vadd.s32 %v3172_v62, %v3170_v36  ;;  %v3190_v53 = vmul.u32 14564, %v3186_v26  ;;  %v3191_v24 = vmul.u32 58254, %v3186_v26  ;;  %v1732_v36 = vpop.f32.mrf.mxu1  ;;  %v7883_v11 = vld [vmem:[#allocation29_spill] sm:$0xff] }
 0x2b7   : > { %vm3936_vm8 = vmand %vm2784_vm9, %vm3904_vm4  ;;  %v3192_v56 = vshll.u32 %v3189_v51, 16  ;;  %v3193_v8 = vshrl.u32 %v3189_v51, 16  ;;  %5149 = vst [vmem:[%s5333_s28 + $0x30] sm:$0xff] %v5093_v60   ;;  %v680_v57 = vrot.slane %v7881_v61, 1  ;;  %v2210_v38 = vrot.slane %v1892_v47, 2 }
 0x2b8   : > { %v4032_v52 = vsel %vm3936_vm8, %v7065_v20, 0.0  ;;  %v3175_v25 = vadd.s32 %v3174_v40, %v3164_v63  ;;  %v3194_v21 = vshll.u32 %v3190_v53, 16  ;;  %v3195_v55 = vshrl.u32 %v3190_v53, 16 }
 0x2b9   : > { %v7171_v13 = vadd.f32 %v4062_v15, %v4032_v52  ;;  %v4102_v16 = vmul.f32 %v4032_v52, %v7065_v20  ;;  %vm3196_vm7 = vc.u32 %v3188_v27, %v3192_v56  ;;  %v3198_v6 = vadd.s32 %v3192_v56, %v3188_v27  ;;  %v2543_v56 = vpop.f32.mrf.mxu3 }
 0x2ba   : > { %v3176_v29 = vadd.s32 %v3175_v25, %v3166_v30  ;;  %v3197_v37 = vsel %vm3196_vm7, 1, %v7798_v23  ;;  %v681_v1 = vsel %vm648_vm0, %v7882_v2, %v680_v57  ;;  %v2028_v15 = vshrl.u32 %v7036_v12, 16  ;;  %v2632_v40 = vpop.f32.mrf.mxu0 }
 0x2bb   : > { %v7177_v44 = vadd.f32 %v4132_v59, %v4102_v16  ;;  %v3199_v17 = vadd.s32 %v3197_v37, %v3191_v24  ;;  %vm3200_vm10 = vc.u32 %v3198_v6, %v3194_v21  ;;  %1769 = vmatmul.bf16.gmra.mxu1 %v681_v1  ;;  %v2211_v63 = vsel %vm2116_vm2, %v2204_v10, %v2210_v38 }
 0x2bc   : > { %v3177_v20 = vshrl.u32 %v3176_v29, 4  ;;  %v3201_v49 = vsel %vm3200_vm10, 1, %v7798_v23  ;;  %v2214_v3 = vrot.slane %v2065_v35, 2  ;;  %2491 = vmatmul.bf16.gmra.mxu2 %v2211_v63  ;;  %v2030_v45 = vor.u32 %v2028_v15, %v7087_v46 }
 0x2bd   : > { %v3203_v47 = vadd.s32 %v3201_v49, %v3199_v17  ;;  %v2542_v59 = vadd.f32 %v2541_v19, %v2452_v54  ;;  %v7189_v7 = vadd.s32 %v6219_v58, %v7111_v42  ;;  %v2723_v5 = vadd.s32 120, %v6213_v4 }
 0x2be   : > { %v3178_v32 = vmul.u32 18, %v3177_v20  ;;  %v2215_v50 = vsel %vm2116_vm2, %v2208_v34, %v2214_v3  ;;  %v2212_v48 = vrot.slane %v2030_v45, 2  ;;  %v2724_v12 = vadd.s32 128, %v6213_v4  ;;  %v1735_v49 = vpop.f32.mrf.mxu1 }
 0x2bf   : > { %v3204_v10 = vadd.s32 %v3203_v47, %v3193_v8  ;;  %2669 = vmatmul.bf16.gmra.mxu0 %v2215_v50  ;;  %v2631_v46 = vadd.f32 %v2630_v28, %v2542_v59  ;;  %vm3211_vm0 = vcmp.lt.s32.totalorder %v7189_v7, 0  ;;  %v3212_v42 = vsub.s32 0, %v7189_v7 }
 0x2c0   : > { %v3179_v35 = vsub.s32 %v7136_v14, %v3178_v32  ;;  %v2213_v0 = vsel %vm2116_vm2, %v2206_v41, %v2212_v48  ;;  %v7203_v34 = vadd.s32 %v6219_v58, %v2723_v5  ;;  %vm2785_vm9 = vcmp.lt.s32.totalorder %v7091_v31, 288  ;;  %v7884_v41 = vld [vmem:[#allocation30_spill] sm:$0xff] }
 0x2c1   : > { %v3205_v26 = vadd.s32 %v3204_v10, %v3195_v55  ;;  %v1731_v62 = vadd.f32 %v1730_v18, %v7883_v11  ;;  %2580 = vmatmul.bf16.gmra.mxu3 %v2213_v0  ;;  %v7210_v14 = vsel %vm3211_vm0, %v3212_v42, %v7189_v7  ;;  %v1733_v30 = vadd.f32 %v1732_v36, %v7884_v41  ;;  %v2454_v18 = vpop.f32.mrf.mxu2  ;;  %v2546_v50 = vpop.f32.mrf.mxu3 }
 0x2c2   : > { %v3180_v27 = vsub.s32 0, %v3179_v35  ;;  %v3214_v60 = vand.u32 65535, %v7210_v14  ;;  %v3215_v39 = vshrl.u32 %v7210_v14, 16  ;;  %v3241_v8 = vsub.s32 0, %v7203_v34 }
 0x2c3   : > { %v3206_v51 = vshrl.u32 %v3205_v26, 4  ;;  %v7217_v24 = vadd.f32 %v2631_v46, %v1731_v62  ;;  %v7221_v61 = vadd.s32 %v6219_v58, %v2724_v12  ;;  %vm2786_vm12 = vcmp.lt.s32.totalorder %v7131_v22, 288 }
 0x2c4   : > { %v3181_v53 = vsel %vm3153_vm1, %v3180_v27, %v3179_v35  ;;  %v3217_v25 = vmul.u32 14564, %v3214_v60  ;;  %v3218_v21 = vmul.u32 58254, %v3214_v60  ;;  %v3219_v55 = vmul.u32 14564, %v3215_v39 }
 0x2c5   : > { %vm3745_vm2 = vcmp.ne.s32.totalorder %v3181_v53, 0  ;;  %vm3777_vm14 = vcmp.lt.s32.totalorder %v3181_v53, 0  ;;  %v3841_v57 = vadd.s32 18, %v3181_v53  ;;  %v3207_v52 = vmul.u32 18, %v3206_v51 }
 0x2c6   : > { %vm3809_vm11 = vmand %vm3777_vm14, %vm3745_vm2  ;;  %vm3240_vm1 = vcmp.lt.s32.totalorder %v7203_v34, 0  ;;  %v2544_v28 = vadd.f32 %v2543_v56, %v2454_v18  ;;  %v7227_v29 = vadd.s32 136, %v6213_v4  ;;  %v3220_v37 = vmul.u32 58254, %v3215_v39 }
 0x2c7   : > { %v3873_v16 = vsel %vm3809_vm11, %v3841_v57, %v3181_v53  ;;  %v3208_v6 = vsub.s32 %v7147_v33, %v3207_v52  ;;  %v3221_v2 = vshll.u32 %v3218_v21, 16  ;;  %v3222_v1 = vshrl.u32 %v3218_v21, 16  ;;  %v1737_v52 = vpop.f32.mrf.mxu1 }
 0x2c8   : > { %vm3905_vm13 = vcmp.lt.s32.totalorder %v3873_v16, 16  ;;  %v3223_v54 = vshll.u32 %v3219_v55, 16  ;;  %v2633_v19 = vadd.f32 %v2632_v40, %v2544_v28  ;;  %v7234_v17 = vsel %vm3240_vm1, %v3241_v8, %v7203_v34 }
 0x2c9   : > { %vm3937_vm15 = vmand %vm2785_vm9, %vm3905_vm13  ;;  %v3209_v38 = vsub.s32 0, %v3208_v6  ;;  %vm3225_vm3 = vc.u32 %v3217_v25, %v3221_v2  ;;  %v3227_v15 = vadd.s32 %v3221_v2, %v3217_v25  ;;  %v3243_v20 = vand.u32 65535, %v7234_v17  ;;  %v2457_v32 = vpop.f32.mrf.mxu2 }
 0x2ca   : > { %v4033_v33 = vsel %vm3937_vm15, %v7128_v43, 0.0  ;;  %v3226_v47 = vsel %vm3225_vm3, 1, %v7798_v23  ;;  %v7244_v10 = vadd.f32 %v2633_v19, %v1733_v30  ;;  %v3224_v42 = vshrl.u32 %v3219_v55, 16 }
 0x2cb   : > { %v4064_v63 = vadd.f32 %v7171_v13, %v4033_v33  ;;  %v4103_v31 = vmul.f32 %v4033_v33, %v7128_v43  ;;  %v3210_v3 = vsel %vm3182_vm6, %v3209_v38, %v3208_v6  ;;  %v3228_v59 = vadd.s32 %v3226_v47, %v3220_v37  ;;  %v2635_v43 = vpop.f32.mrf.mxu0  ;;  %v2548_v6 = vpop.f32.mrf.mxu3 }
 0x2cc   : > { %vm3746_vm5 = vcmp.ne.s32.totalorder %v3210_v3, 0  ;;  %vm3778_vm4 = vcmp.lt.s32.totalorder %v3210_v3, 0  ;;  %v3842_v45 = vadd.s32 18, %v3210_v3  ;;  %vm3229_vm7 = vc.u32 %v3227_v15, %v3223_v54  ;;  %v7885_v54 = vld [vmem:[#allocation31_spill] sm:$0xff] }
 0x2cd   : > { %v4134_v5 = vadd.f32 %v7177_v44, %v4103_v31  ;;  %vm3810_vm8 = vmand %vm3778_vm4, %vm3746_vm5  ;;  %v3244_v13 = vshrl.u32 %v7234_v17, 16  ;;  %v3230_v12 = vsel %vm3229_vm7, 1, %v7798_v23  ;;  %v3246_v35 = vmul.u32 14564, %v3243_v20 }
 0x2ce   : > { %v3874_v48 = vsel %vm3810_vm8, %v3842_v45, %v3210_v3  ;;  %v3247_v46 = vmul.u32 58254, %v3243_v20  ;;  %v3232_v36 = vadd.s32 %v3230_v12, %v3228_v59  ;;  %v5098_v27 = vpack.c.bf16 %v7244_v10, %v7217_v24  ;;  %v7886_v3 = vld [vmem:[#allocation32_spill] sm:$0xff] }
 0x2cf   : > { %vm3906_vm6 = vcmp.lt.s32.totalorder %v3874_v48, 16  ;;  %v3248_v26 = vmul.u32 14564, %v3244_v13  ;;  %v3249_v44 = vmul.u32 58254, %v3244_v13  ;;  %v3270_v11 = vsub.s32 0, %v7221_v61 }
 0x2d0   : > { %vm3938_vm10 = vmand %vm2786_vm12, %vm3906_vm6  ;;  %v3250_v0 = vshll.u32 %v3247_v46, 16  ;;  %v3233_v51 = vadd.s32 %v3232_v36, %v3222_v1  ;;  %vm3269_vm9 = vcmp.lt.s32.totalorder %v7221_v61, 0  ;;  %5150 = vst [vmem:[%s5333_s28 + $0x38] sm:$0xff] %v5098_v27   ;;  %v3251_v40 = vshrl.u32 %v3247_v46, 16 }
 0x2d1   : > { %v4034_v62 = vsel %vm3938_vm10, %v7155_v9, 0.0  ;;  %v3252_v60 = vshll.u32 %v3248_v26, 16  ;;  %v2547_v18 = vadd.f32 %v2546_v50, %v2457_v32  ;;  %v7265_v57 = vsel %vm3269_vm9, %v3270_v11, %v7221_v61  ;;  %v2459_v16 = vpop.f32.mrf.mxu2 }
 0x2d2   : > { %v7255_v39 = vadd.f32 %v4064_v63, %v4034_v62  ;;  %v4104_v41 = vmul.f32 %v4034_v62, %v7155_v9  ;;  %vm3254_vm2 = vc.u32 %v3246_v35, %v3250_v0  ;;  %v3256_v22 = vadd.s32 %v3250_v0, %v3246_v35 }
 0x2d3   : > { %v3234_v30 = vadd.s32 %v3233_v51, %v3224_v42  ;;  %v3255_v53 = vsel %vm3254_vm2, 1, %v7798_v23  ;;  %v3253_v9 = vshrl.u32 %v3248_v26, 16  ;;  %v3272_v55 = vand.u32 65535, %v7265_v57  ;;  %v2637_v20 = vpop.f32.mrf.mxu0 }
 0x2d4   : > { %v7260_v56 = vadd.f32 %v4134_v5, %v4104_v41  ;;  %v3257_v8 = vadd.s32 %v3255_v53, %v3249_v44  ;;  %vm3258_vm14 = vc.u32 %v3256_v22, %v3252_v60  ;;  %v2636_v37 = vadd.f32 %v2635_v43, %v2547_v18  ;;  %v2551_v18 = vpop.f32.mrf.mxu3 }
 0x2d5   : > { %v3235_v25 = vshrl.u32 %v3234_v30, 4  ;;  %v3259_v21 = vsel %vm3258_vm14, 1, %v7798_v23  ;;  %v3273_v2 = vshrl.u32 %v7265_v57, 16  ;;  %v2549_v1 = vadd.f32 %v2548_v6, %v2459_v16 }
 0x2d6   : > { %v3261_v28 = vadd.s32 %v3259_v21, %v3257_v8  ;;  %vm2787_vm12 = vcmp.lt.s32.totalorder %v7189_v7, 288  ;;  %v1736_v19 = vadd.f32 %v1735_v49, %v7885_v54  ;;  %v3275_v33 = vmul.u32 14564, %v3272_v55 }
 0x2d7   : > { %v3236_v38 = vmul.u32 18, %v3235_v25  ;;  %v3276_v15 = vmul.u32 58254, %v3272_v55  ;;  %v3277_v31 = vmul.u32 14564, %v3273_v2  ;;  %v1738_v47 = vadd.f32 %v1737_v52, %v7886_v3  ;;  %v1740_v55 = vpop.f32.mrf.mxu1 }
 0x2d8   : > { %v3262_v63 = vadd.s32 %v3261_v28, %v3251_v40  ;;  %v2638_v45 = vadd.f32 %v2637_v20, %v2549_v1  ;;  %v3278_v32 = vmul.u32 58254, %v3273_v2  ;;  %v7276_v5 = vadd.s32 %v6219_v58, %v7227_v29 }
 0x2d9   : > { %v3237_v59 = vsub.s32 %v7210_v14, %v3236_v38  ;;  %v3279_v50 = vshll.u32 %v3276_v15, 16  ;;  %v7278_v43 = vadd.f32 %v2636_v37, %v1736_v19  ;;  %v3280_v49 = vshrl.u32 %v3276_v15, 16  ;;  %v2462_v53 = vpop.f32.mrf.mxu2 }
 0x2da   : > { %v3263_v13 = vadd.s32 %v3262_v63, %v3253_v9  ;;  %v3281_v48 = vshll.u32 %v3277_v31, 16  ;;  %v7280_v46 = vadd.f32 %v2638_v45, %v1738_v47  ;;  %vm3298_vm13 = vcmp.lt.s32.totalorder %v7276_v5, 0 }
 0x2db   : > { %v3238_v12 = vsub.s32 0, %v3237_v59  ;;  %vm3283_vm11 = vc.u32 %v3275_v33, %v3279_v50  ;;  %v3285_v35 = vadd.s32 %v3279_v50, %v3275_v33  ;;  %v3299_v14 = vsub.s32 0, %v7276_v5  ;;  %v2640_v63 = vpop.f32.mrf.mxu0 }
 0x2dc   : > { %v3264_v42 = vshrl.u32 %v3263_v13, 4  ;;  %v3284_v36 = vsel %vm3283_vm11, 1, %v7798_v23  ;;  %v3282_v26 = vshrl.u32 %v3277_v31, 16  ;;  %v5103_v51 = vpack.c.bf16 %v7280_v46, %v7278_v43 }
 0x2dd   : > { %v3239_v29 = vsel %vm3211_vm0, %v3238_v12, %v3237_v59  ;;  %v3286_v44 = vadd.s32 %v3284_v36, %v3278_v32  ;;  %vm3287_vm15 = vc.u32 %v3285_v35, %v3281_v48  ;;  %v7291_v62 = vsel %vm3298_vm13, %v3299_v14, %v7276_v5 }
 0x2de   : > { %vm3747_vm3 = vcmp.ne.s32.totalorder %v3239_v29, 0  ;;  %vm3779_vm5 = vcmp.lt.s32.totalorder %v3239_v29, 0  ;;  %v3843_v0 = vadd.s32 18, %v3239_v29  ;;  %v3265_v27 = vmul.u32 18, %v3264_v42  ;;  %5151 = vst [vmem:[%s5333_s28 + $0x40] sm:$0xff] %v5103_v51   ;;  %v7887_v42 = vld [vmem:[#allocation33_spill] sm:$0xff] }
 0x2df   : > { %vm3811_vm4 = vmand %vm3779_vm5, %vm3747_vm3  ;;  %v3288_v11 = vsel %vm3287_vm15, 1, %v7798_v23  ;;  %v2726_v60 = vadd.s32 144, %v6213_v4  ;;  %v3301_v40 = vand.u32 65535, %v7291_v62  ;;  %v3302_v8 = vshrl.u32 %v7291_v62, 16 }
 0x2e0   : > { %v3875_v41 = vsel %vm3811_vm4, %v3843_v0, %v3239_v29  ;;  %v3266_v22 = vsub.s32 %v7234_v17, %v3265_v27  ;;  %v3290_v30 = vadd.s32 %v3288_v11, %v3286_v44  ;;  %v2552_v52 = vadd.f32 %v2551_v18, %v2462_v53  ;;  %v1742_v29 = vpop.f32.mrf.mxu1  ;;  %v2553_v11 = vpop.f32.mrf.mxu3 }
 0x2e1   : > { %vm3907_vm0 = vcmp.lt.s32.totalorder %v3875_v41, 16  ;;  %v3305_v21 = vmul.u32 58254, %v3301_v40  ;;  %v7303_v16 = vadd.s32 %v6219_v58, %v2726_v60  ;;  %v3304_v6 = vmul.u32 14564, %v3301_v40 }
 0x2e2   : > { %vm3939_vm8 = vmand %vm2787_vm12, %vm3907_vm0  ;;  %v3267_v25 = vsub.s32 0, %v3266_v22  ;;  %v3291_v9 = vadd.s32 %v3290_v30, %v3280_v49  ;;  %v3306_v28 = vmul.u32 14564, %v3302_v8  ;;  %v3307_v37 = vmul.u32 58254, %v3302_v8 }
 0x2e3   : > { %v4035_v17 = vsel %vm3939_vm8, %v7217_v24, 0.0  ;;  %v3308_v19 = vshll.u32 %v3305_v21, 16  ;;  %vm2788_vm10 = vcmp.lt.s32.totalorder %v7203_v34, 288  ;;  %vm2789_vm11 = vcmp.lt.s32.totalorder %v7221_v61, 288 }
 0x2e4   : > { %v4066_v2 = vadd.f32 %v7255_v39, %v4035_v17  ;;  %v4105_v1 = vmul.f32 %v4035_v17, %v7217_v24  ;;  %v3268_v7 = vsel %vm3240_vm1, %v3267_v25, %v3266_v22  ;;  %v3292_v38 = vadd.s32 %v3291_v9, %v3282_v26  ;;  %v2642_v9 = vpop.f32.mrf.mxu0 }
 0x2e5   : > { %vm3748_vm7 = vcmp.ne.s32.totalorder %v3268_v7, 0  ;;  %vm3780_vm6 = vcmp.lt.s32.totalorder %v3268_v7, 0  ;;  %v3844_v54 = vadd.s32 18, %v3268_v7  ;;  %v3310_v20 = vshll.u32 %v3306_v28, 16 }
 0x2e6   : > { %v4136_v33 = vadd.f32 %v7260_v56, %v4105_v1  ;;  %vm3812_vm2 = vmand %vm3780_vm6, %vm3748_vm7  ;;  %v3293_v15 = vshrl.u32 %v3292_v38, 4  ;;  %vm3312_vm14 = vc.u32 %v3304_v6, %v3308_v19  ;;  %v3314_v39 = vadd.s32 %v3308_v19, %v3304_v6 }
 0x2e7   : > { %v3876_v31 = vsel %vm3812_vm2, %v3844_v54, %v3268_v7  ;;  %v3313_v3 = vsel %vm3312_vm14, 1, %v7798_v23  ;;  %v2641_v47 = vadd.f32 %v2640_v63, %v2552_v52  ;;  %v3309_v45 = vshrl.u32 %v3305_v21, 16  ;;  %v7888_v52 = vld [vmem:[#allocation34_spill] sm:$0xff] }
 0x2e8   : > { %vm3908_vm12 = vcmp.lt.s32.totalorder %v3876_v31, 16  ;;  %v3294_v24 = vmul.u32 18, %v3293_v15  ;;  %v3315_v59 = vadd.s32 %v3313_v3, %v3307_v37  ;;  %vm3316_vm15 = vc.u32 %v3314_v39, %v3310_v20  ;;  %v1745_v3 = vpop.f32.mrf.mxu1 }
 0x2e9   : > { %vm3940_vm1 = vmand %vm2788_vm10, %vm3908_vm12  ;;  %vm3327_vm3 = vcmp.lt.s32.totalorder %v7303_v16, 0  ;;  %v3317_v32 = vsel %vm3316_vm15, 1, %v7798_v23  ;;  %v3328_v50 = vsub.s32 0, %v7303_v16  ;;  %v3311_v48 = vshrl.u32 %v3306_v28, 16 }
 0x2ea   : > { %v4036_v34 = vsel %vm3940_vm1, %v7244_v10, 0.0  ;;  %v3295_v56 = vsub.s32 %v7265_v57, %v3294_v24  ;;  %v3319_v12 = vadd.s32 %v3317_v32, %v3315_v59  ;;  %v1741_v36 = vadd.f32 %v1740_v55, %v7887_v42 }
 0x2eb   : > { %v4067_v13 = vadd.f32 %v4066_v2, %v4036_v34  ;;  %v4106_v49 = vmul.f32 %v4036_v34, %v7244_v10  ;;  %v7324_v14 = vsel %vm3327_vm3, %v3328_v50, %v7303_v16  ;;  %v2727_v57 = vadd.s32 152, %v6213_v4  ;;  %v2464_v10 = vpop.f32.mrf.mxu2  ;;  %v2556_v34 = vpop.f32.mrf.mxu3 }
 0x2ec   : > { %v3296_v35 = vsub.s32 0, %v3295_v56  ;;  %v3320_v44 = vadd.s32 %v3319_v12, %v3309_v45  ;;  %v3330_v0 = vand.u32 65535, %v7324_v14  ;;  %v3331_v27 = vshrl.u32 %v7324_v14, 16 }
 0x2ed   : > { %v4137_v26 = vadd.f32 %v4136_v33, %v4106_v49  ;;  %v7331_v60 = vadd.f32 %v2641_v47, %v1741_v36  ;;  %v2554_v41 = vadd.f32 %v2553_v11, %v2464_v10  ;;  %v7334_v22 = vadd.s32 %v6219_v58, %v2727_v57  ;;  %v7889_v11 = vld [vmem:[#allocation35_spill] sm:$0xff] }
 0x2ee   : > { %v3297_v51 = vsel %vm3269_vm9, %v3296_v35, %v3295_v56  ;;  %v3321_v40 = vadd.s32 %v3320_v44, %v3311_v48  ;;  %v3333_v53 = vmul.u32 14564, %v3330_v0  ;;  %v3334_v18 = vmul.u32 58254, %v3330_v0 }
 0x2ef   : > { %vm3749_vm5 = vcmp.ne.s32.totalorder %v3297_v51, 0  ;;  %vm3781_vm4 = vcmp.lt.s32.totalorder %v3297_v51, 0  ;;  %v3845_v30 = vadd.s32 18, %v3297_v51  ;;  %v3335_v8 = vmul.u32 14564, %v3331_v27 }
 0x2f0   : > { %vm3813_vm0 = vmand %vm3781_vm4, %vm3749_vm5  ;;  %v1743_v25 = vadd.f32 %v1742_v29, %v7888_v52  ;;  %v3322_v55 = vshrl.u32 %v3321_v40, 4  ;;  %v2643_v17 = vadd.f32 %v2642_v9, %v2554_v41  ;;  %v2728_v6 = vadd.s32 160, %v6213_v4  ;;  %v2645_v29 = vpop.f32.mrf.mxu0 }
 0x2f1   : > { %v3877_v21 = vsel %vm3813_vm0, %v3845_v30, %v3297_v51  ;;  %v3336_v28 = vmul.u32 58254, %v3331_v27  ;;  %v3337_v37 = vshll.u32 %v3334_v18, 16  ;;  %v3339_v2 = vshll.u32 %v3335_v8, 16 }
 0x2f2   : > { %vm3909_vm9 = vcmp.lt.s32.totalorder %v3877_v21, 16  ;;  %v3323_v1 = vmul.u32 18, %v3322_v55  ;;  %v3338_v7 = vshrl.u32 %v3334_v18, 16  ;;  %v7340_v38 = vadd.f32 %v2643_v17, %v1743_v25  ;;  %v1747_v17 = vpop.f32.mrf.mxu1 }
 0x2f3   : > { %vm3941_vm8 = vmand %vm2789_vm11, %vm3909_vm9  ;;  %vm3356_vm7 = vcmp.lt.s32.totalorder %v7334_v22, 0  ;;  %vm3341_vm6 = vc.u32 %v3333_v53, %v3337_v37  ;;  %v3343_v19 = vadd.s32 %v3337_v37, %v3333_v53  ;;  %v3357_v33 = vsub.s32 0, %v7334_v22  ;;  %v2467_v59 = vpop.f32.mrf.mxu2 }
 0x2f4   : > { %v4037_v54 = vsel %vm3941_vm8, %v7278_v43, 0.0  ;;  %v3324_v63 = vsub.s32 %v7291_v62, %v3323_v1  ;;  %v3342_v61 = vsel %vm3341_vm6, 1, %v7798_v23  ;;  %v5108_v24 = vpack.c.bf16 %v7340_v38, %v7331_v60 }
 0x2f5   : > { %v4068_v15 = vadd.f32 %v4067_v13, %v4037_v54  ;;  %v4107_v20 = vmul.f32 %v4037_v54, %v7278_v43  ;;  %v3344_v31 = vadd.s32 %v3342_v61, %v3336_v28  ;;  %vm3345_vm10 = vc.u32 %v3343_v19, %v3339_v2  ;;  %v2558_v2 = vpop.f32.mrf.mxu3 }
 0x2f6   : > { %v7351_v39 = vsel %vm3356_vm7, %v3357_v33, %v7334_v22  ;;  %v3325_v45 = vsub.s32 0, %v3324_v63  ;;  %v3346_v43 = vsel %vm3345_vm10, 1, %v7798_v23  ;;  %v3340_v56 = vshrl.u32 %v3335_v8, 16  ;;  %5152 = vst [vmem:[%s5333_s28 + $0x48] sm:$0xff] %v5108_v24  }
 0x2f7   : > { %v4138_v47 = vadd.f32 %v4137_v26, %v4107_v20  ;;  %v3359_v62 = vand.u32 65535, %v7351_v39  ;;  %v3348_v32 = vadd.s32 %v3346_v43, %v3344_v31  ;;  %v3360_v50 = vshrl.u32 %v7351_v39, 16 }
 0x2f8   : > { %v7360_v13 = vadd.s32 %v6219_v58, %v2728_v6  ;;  %v3326_v49 = vsel %vm3298_vm13, %v3325_v45, %v3324_v63  ;;  %v2557_v35 = vadd.f32 %v2556_v34, %v2467_v59  ;;  %vm2790_vm12 = vcmp.lt.s32.totalorder %v7276_v5, 288  ;;  %v7890_v63 = vld [vmem:[#allocation36_spill] sm:$0xff] }
 0x2f9   : > { %v3362_v48 = vmul.u32 14564, %v3359_v62  ;;  %v3363_v12 = vmul.u32 58254, %v3359_v62  ;;  %vm3750_vm2 = vcmp.ne.s32.totalorder %v3326_v49, 0  ;;  %vm3782_vm14 = vcmp.lt.s32.totalorder %v3326_v49, 0  ;;  %v2647_v62 = vpop.f32.mrf.mxu0 }
 0x2fa   : > { %v3846_v42 = vadd.s32 18, %v3326_v49  ;;  %v3349_v36 = vadd.s32 %v3348_v32, %v3338_v7  ;;  %vm3814_vm11 = vmand %vm3782_vm14, %vm3750_vm2  ;;  %v3364_v57 = vmul.u32 14564, %v3360_v50  ;;  %v3365_v26 = vmul.u32 58254, %v3360_v50 }
 0x2fb   : > { %v3366_v44 = vshll.u32 %v3363_v12, 16  ;;  %v3367_v10 = vshrl.u32 %v3363_v12, 16  ;;  %v1746_v51 = vadd.f32 %v1745_v3, %v7889_v11  ;;  %v2646_v30 = vadd.f32 %v2645_v29, %v2557_v35  ;;  %v2469_v37 = vpop.f32.mrf.mxu2 }
 0x2fc   : > { %v3878_v0 = vsel %vm3814_vm11, %v3846_v42, %v3326_v49  ;;  %v3350_v27 = vadd.s32 %v3349_v36, %v3340_v56  ;;  %v3368_v41 = vshll.u32 %v3364_v57, 16  ;;  %vm3385_vm5 = vcmp.lt.s32.totalorder %v7360_v13, 0 }
 0x2fd   : > { %vm3910_vm13 = vcmp.lt.s32.totalorder %v3878_v0, 16  ;;  %vm3370_vm1 = vc.u32 %v3362_v48, %v3366_v44  ;;  %v3372_v18 = vadd.s32 %v3366_v44, %v3362_v48  ;;  %v3369_v8 = vshrl.u32 %v3364_v57, 16 }
 0x2fe   : > { %vm3942_vm15 = vmand %vm2790_vm12, %vm3910_vm13  ;;  %v3351_v40 = vshrl.u32 %v3350_v27, 4  ;;  %v3371_v53 = vsel %vm3370_vm1, 1, %v7798_v23  ;;  %v3386_v25 = vsub.s32 0, %v7360_v13  ;;  %vm2791_vm4 = vcmp.lt.s32.totalorder %v7303_v16, 288 }
 0x2ff   : > { %v4038_v5 = vsel %vm3942_vm15, %v7280_v46, 0.0  ;;  %v3373_v52 = vadd.s32 %v3371_v53, %v3365_v26  ;;  %vm3374_vm0 = vc.u32 %v3372_v18, %v3368_v41  ;;  %v2729_v1 = vadd.s32 168, %v6213_v4 }
 0x300   : > { %v4069_v9 = vadd.f32 %v4068_v15, %v4038_v5  ;;  %v4108_v21 = vmul.f32 %v4038_v5, %v7280_v46  ;;  %v3352_v55 = vmul.u32 18, %v3351_v40  ;;  %v3375_v6 = vsel %vm3374_vm0, 1, %v7798_v23 }
 0x301   : > { %v7376_v28 = vsel %vm3385_vm5, %v3386_v25, %v7360_v13  ;;  %v2730_v7 = vadd.s32 176, %v6213_v4  ;;  %v3377_v19 = vadd.s32 %v3375_v6, %v3373_v52  ;;  %v7382_v15 = vadd.f32 %v2646_v30, %v1746_v51 }
 0x302   : > { %v4139_v54 = vadd.f32 %v4138_v47, %v4108_v21  ;;  %v3353_v46 = vsub.s32 %v7324_v14, %v3352_v55  ;;  %v3388_v33 = vand.u32 65535, %v7376_v28  ;;  %v3389_v20 = vshrl.u32 %v7376_v28, 16 }
 0x303   : > { %v1748_v61 = vadd.f32 %v1747_v17, %v7890_v63  ;;  %v2559_v31 = vadd.f32 %v2558_v2, %v2469_v37  ;;  %v3378_v3 = vadd.s32 %v3377_v19, %v3367_v10  ;;  %v7387_v47 = vadd.s32 %v6219_v58, %v2729_v1  ;;  %v2472_v5 = vpop.f32.mrf.mxu2 }
 0x304   : > { %v3354_v24 = vsub.s32 0, %v3353_v46  ;;  %v3391_v45 = vmul.u32 14564, %v3388_v33  ;;  %v3392_v43 = vmul.u32 58254, %v3388_v33  ;;  %v3393_v59 = vmul.u32 14564, %v3389_v20  ;;  %v1750_v33 = vpop.f32.mrf.mxu1 }
 0x305   : > { %v2648_v34 = vadd.f32 %v2647_v62, %v2559_v31  ;;  %v7390_v14 = vadd.s32 %v6219_v58, %v2730_v7  ;;  %v3379_v32 = vadd.s32 %v3378_v3, %v3369_v8  ;;  %v3394_v50 = vmul.u32 58254, %v3389_v20  ;;  %v2561_v8 = vpop.f32.mrf.mxu3 }
 0x306   : > { %v3355_v56 = vsel %vm3327_vm3, %v3354_v24, %v3353_v46  ;;  %v3395_v49 = vshll.u32 %v3392_v43, 16  ;;  %v3397_v12 = vshll.u32 %v3393_v59, 16  ;;  %v3396_v42 = vshrl.u32 %v3392_v43, 16 }
 0x307   : > { %vm3751_vm9 = vcmp.ne.s32.totalorder %v3355_v56, 0  ;;  %vm3783_vm8 = vcmp.lt.s32.totalorder %v3355_v56, 0  ;;  %v3847_v48 = vadd.s32 18, %v3355_v56  ;;  %v3380_v35 = vshrl.u32 %v3379_v32, 4 }
 0x308   : > { %vm3815_vm6 = vmand %vm3783_vm8, %vm3751_vm9  ;;  %vm3399_vm10 = vc.u32 %v3391_v45, %v3395_v49  ;;  %v3401_v36 = vadd.s32 %v3395_v49, %v3391_v45  ;;  %v7395_v26 = vadd.f32 %v2648_v34, %v1748_v61  ;;  %vm3414_vm2 = vcmp.lt.s32.totalorder %v7387_v47, 0 }
 0x309   : > { %v3879_v29 = vsel %vm3815_vm6, %v3847_v48, %v3355_v56  ;;  %v3400_v57 = vsel %vm3399_vm10, 1, %v7798_v23  ;;  %v3381_v44 = vmul.u32 18, %v3380_v35  ;;  %v3398_v27 = vshrl.u32 %v3393_v59, 16 }
 0x30a   : > { %vm3911_vm3 = vcmp.lt.s32.totalorder %v3879_v29, 16  ;;  %v3402_v0 = vadd.s32 %v3400_v57, %v3394_v50  ;;  %vm3403_vm14 = vc.u32 %v3401_v36, %v3397_v12  ;;  %v3415_v11 = vsub.s32 0, %v7387_v47 }
 0x30b   : > { %vm3943_vm12 = vmand %vm2791_vm4, %vm3911_vm3  ;;  %v3404_v10 = vsel %vm3403_vm14, 1, %v7798_v23  ;;  %v3382_v41 = vsub.s32 %v7351_v39, %v3381_v44  ;;  %v5113_v40 = vpack.c.bf16 %v7395_v26, %v7382_v15  ;;  %v3444_v52 = vsub.s32 0, %v7390_v14  ;;  %v2474_v49 = vpop.f32.mrf.mxu2 }
 0x30c   : > { %v4039_v51 = vsel %vm3943_vm12, %v7331_v60, 0.0  ;;  %v3406_v30 = vadd.s32 %v3404_v10, %v3402_v0  ;;  %v7410_v16 = vsel %vm3414_vm2, %v3415_v11, %v7387_v47  ;;  %vm2792_vm11 = vcmp.lt.s32.totalorder %v7334_v22, 288 }
 0x30d   : > { %v4070_v53 = vadd.f32 %v4069_v9, %v4039_v51  ;;  %v4109_v18 = vmul.f32 %v4039_v51, %v7331_v60  ;;  %v3383_v25 = vsub.s32 0, %v3382_v41  ;;  %v3417_v39 = vand.u32 65535, %v7410_v16  ;;  %5153 = vst [vmem:[%s5333_s28 + $0x50] sm:$0xff] %v5113_v40   ;;  %v2563_v48 = vpop.f32.mrf.mxu3 }
 0x30e   : > { %v3407_v21 = vadd.s32 %v3406_v30, %v3396_v42  ;;  %v3418_v55 = vshrl.u32 %v7410_v16, 16  ;;  %vm3443_vm13 = vcmp.lt.s32.totalorder %v7390_v14, 0  ;;  %v2562_v24 = vadd.f32 %v2561_v8, %v2472_v5 }
 0x30f   : > { %v4140_v17 = vadd.f32 %v4139_v54, %v4109_v18  ;;  %v3384_v60 = vsel %vm3356_vm7, %v3383_v25, %v3382_v41  ;;  %v3420_v6 = vmul.u32 14564, %v3417_v39  ;;  %v3421_v37 = vmul.u32 58254, %v3417_v39  ;;  %v2650_v54 = vpop.f32.mrf.mxu0 }
 0x310   : > { %v3408_v9 = vadd.s32 %v3407_v21, %v3398_v27  ;;  %vm3752_vm1 = vcmp.ne.s32.totalorder %v3384_v60, 0  ;;  %vm3784_vm15 = vcmp.lt.s32.totalorder %v3384_v60, 0  ;;  %v3848_v2 = vadd.s32 18, %v3384_v60  ;;  %v7891_v27 = vld [vmem:[#allocation18_spill] sm:$0xff] }
 0x311   : > { %v3422_v1 = vmul.u32 14564, %v3418_v55  ;;  %vm3816_vm4 = vmand %vm3784_vm15, %vm3752_vm1  ;;  %v3423_v46 = vmul.u32 58254, %v3418_v55  ;;  %v3424_v19 = vshll.u32 %v3421_v37, 16  ;;  %v7423_v20 = vsel %vm3443_vm13, %v3444_v52, %v7390_v14  ;;  %v1752_v52 = vpop.f32.mrf.mxu1 }
 0x312   : > { %v3409_v7 = vshrl.u32 %v3408_v9, 4  ;;  %v3880_v63 = vsel %vm3816_vm4, %v3848_v2, %v3384_v60  ;;  %v3425_v61 = vshrl.u32 %v3421_v37, 16  ;;  %vm2793_vm0 = vcmp.lt.s32.totalorder %v7360_v13, 288  ;;  %v7892_v37 = vld [vmem:[#allocation10_spill] sm:$0xff] }
 0x313   : > { %v3426_v31 = vshll.u32 %v3422_v1, 16  ;;  %vm3912_vm7 = vcmp.lt.s32.totalorder %v3880_v63, 16  ;;  %vm3428_vm9 = vc.u32 %v3420_v6, %v3424_v19  ;;  %v3430_v45 = vadd.s32 %v3424_v19, %v3420_v6 }
 0x314   : > { %v3410_v3 = vmul.u32 18, %v3409_v7  ;;  %vm3944_vm8 = vmand %vm2792_vm11, %vm3912_vm7  ;;  %v3427_v43 = vshrl.u32 %v3422_v1, 16  ;;  %v3429_v62 = vsel %vm3428_vm9, 1, %v7798_v23  ;;  %v3446_v59 = vand.u32 65535, %v7423_v20 }
 0x315   : > { %v3447_v34 = vshrl.u32 %v7423_v20, 16  ;;  %v4040_v56 = vsel %vm3944_vm8, %v7340_v38, 0.0  ;;  %v3431_v50 = vadd.s32 %v3429_v62, %v3423_v46  ;;  %vm3432_vm6 = vc.u32 %v3430_v45, %v3426_v31 }
 0x316   : > { %v3411_v32 = vsub.s32 %v7376_v28, %v3410_v3  ;;  %v4071_v12 = vadd.f32 %v4070_v53, %v4040_v56  ;;  %v4110_v35 = vmul.f32 %v4040_v56, %v7340_v38  ;;  %v3433_v22 = vsel %vm3432_vm6, 1, %v7798_v23 }
 0x317   : > { %v3449_v42 = vmul.u32 14564, %v3446_v59  ;;  %v3435_v29 = vadd.s32 %v3433_v22, %v3431_v50  ;;  %v3450_v57 = vmul.u32 58254, %v3446_v59  ;;  %v3451_v44 = vmul.u32 14564, %v3447_v34  ;;  %v2652_v25 = vpop.f32.mrf.mxu0 }
 0x318   : > { %v3412_v36 = vsub.s32 0, %v3411_v32  ;;  %v4141_v0 = vadd.f32 %v4140_v17, %v4110_v35  ;;  %v1751_v10 = vadd.f32 %v1750_v33, %v7891_v27  ;;  %v2651_v11 = vadd.f32 %v2650_v54, %v2562_v24 }
 0x319   : > { %v2564_v51 = vadd.f32 %v2563_v48, %v2474_v49  ;;  %v3436_v41 = vadd.s32 %v3435_v29, %v3425_v61  ;;  %v3452_v30 = vmul.u32 58254, %v3447_v34  ;;  %v3453_v40 = vshll.u32 %v3450_v57, 16  ;;  %v2477_v48 = vpop.f32.mrf.mxu2 }
 0x31a   : > { %v3413_v28 = vsel %vm3385_vm5, %v3412_v36, %v3411_v32  ;;  %v3455_v53 = vshll.u32 %v3451_v44, 16  ;;  %v3454_v5 = vshrl.u32 %v3450_v57, 16  ;;  %v2731_v17 = vadd.s32 184, %v6213_v4 }
 0x31b   : > { %vm3753_vm10 = vcmp.ne.s32.totalorder %v3413_v28, 0  ;;  %vm3785_vm3 = vcmp.lt.s32.totalorder %v3413_v28, 0  ;;  %v3849_v38 = vadd.s32 18, %v3413_v28  ;;  %v3437_v18 = vadd.s32 %v3436_v41, %v3427_v43 }
 0x31c   : > { %vm3817_vm14 = vmand %vm3785_vm3, %vm3753_vm10  ;;  %vm3457_vm12 = vc.u32 %v3449_v42, %v3453_v40  ;;  %v3459_v8 = vadd.s32 %v3453_v40, %v3449_v42  ;;  %v2653_v55 = vadd.f32 %v2652_v25, %v2564_v51  ;;  %v1753_v2 = vadd.f32 %v1752_v52, %v7892_v37 }
 0x31d   : > { %v3881_v21 = vsel %vm3817_vm14, %v3849_v38, %v3413_v28  ;;  %v3458_v39 = vsel %vm3457_vm12, 1, %v7798_v23  ;;  %v3438_v60 = vshrl.u32 %v3437_v18, 4  ;;  %v7445_v1 = vadd.s32 %v6219_v58, %v2731_v17  ;;  %v1755_v38 = vpop.f32.mrf.mxu1 }
 0x31e   : > { %vm3913_vm5 = vcmp.lt.s32.totalorder %v3881_v21, 16  ;;  %v3460_v9 = vadd.s32 %v3458_v39, %v3452_v30  ;;  %vm3461_vm11 = vc.u32 %v3459_v8, %v3455_v53  ;;  %v2732_v7 = vadd.s32 192, %v6213_v4 }
 0x31f   : > { %vm3945_vm1 = vmand %vm2793_vm0, %vm3913_vm5  ;;  %v3462_v6 = vsel %vm3461_vm11, 1, %v7798_v23  ;;  %v3439_v19 = vmul.u32 18, %v3438_v60  ;;  %v3456_v33 = vshrl.u32 %v3451_v44, 16  ;;  %v7450_v31 = vadd.f32 %v2653_v55, %v1753_v2  ;;  %v2655_v53 = vpop.f32.mrf.mxu0 }
 0x320   : > { %v4041_v46 = vsel %vm3945_vm1, %v7382_v15, 0.0  ;;  %v3464_v54 = vadd.s32 %v3462_v6, %v3460_v9  ;;  %vm3472_vm15 = vcmp.lt.s32.totalorder %v7445_v1, 0  ;;  %v3473_v3 = vsub.s32 0, %v7445_v1 }
 0x321   : > { %v4072_v63 = vadd.f32 %v4071_v12, %v4041_v46  ;;  %v4111_v61 = vmul.f32 %v4041_v46, %v7382_v15  ;;  %v3440_v13 = vsub.s32 %v7410_v16, %v3439_v19  ;;  %v7455_v43 = vadd.f32 %v2651_v11, %v1751_v10  ;;  %v2566_v12 = vpop.f32.mrf.mxu3  ;;  %v2479_v9 = vpop.f32.mrf.mxu2 }
 0x322   : > { %v3465_v24 = vadd.s32 %v3464_v54, %v3454_v5  ;;  %v7458_v62 = vadd.s32 %v6219_v58, %v2732_v7  ;;  %v7463_v15 = vsel %vm3472_vm15, %v3473_v3, %v7445_v1  ;;  %vm2794_vm7 = vcmp.lt.s32.totalorder %v7387_v47, 288 }
 0x323   : > { %v4142_v45 = vadd.f32 %v4141_v0, %v4111_v61  ;;  %v3441_v59 = vsub.s32 0, %v3440_v13  ;;  %v3475_v56 = vand.u32 65535, %v7463_v15  ;;  %v3476_v16 = vshrl.u32 %v7463_v15, 16  ;;  %v7894_v61 = vld [vmem:[#allocation16_spill] sm:$0xff] }
 0x324   : > { %v3466_v34 = vadd.s32 %v3465_v24, %v3456_v33  ;;  %v5118_v32 = vpack.c.bf16 %v7450_v31, %v7455_v43  ;;  %vm3501_vm4 = vcmp.lt.s32.totalorder %v7458_v62, 0  ;;  %v3502_v35 = vsub.s32 0, %v7458_v62 }
 0x325   : > { %v3442_v50 = vsel %vm3414_vm2, %v3441_v59, %v3440_v13  ;;  %v3478_v36 = vmul.u32 14564, %v3475_v56  ;;  %v3479_v29 = vmul.u32 58254, %v3475_v56  ;;  %v3480_v57 = vmul.u32 14564, %v3476_v16 }
 0x326   : > { %v3467_v49 = vshrl.u32 %v3466_v34, 4  ;;  %vm3754_vm0 = vcmp.ne.s32.totalorder %v3442_v50, 0  ;;  %vm3786_vm9 = vcmp.lt.s32.totalorder %v3442_v50, 0  ;;  %v3850_v22 = vadd.s32 18, %v3442_v50  ;;  %5154 = vst [vmem:[%s5333_s28 + $0x58] sm:$0xff] %v5118_v32  }
 0x327   : > { %vm3818_vm8 = vmand %vm3786_vm9, %vm3754_vm0  ;;  %v7478_v0 = vsel %vm3501_vm4, %v3502_v35, %v7458_v62  ;;  %v3481_v10 = vmul.u32 58254, %v3476_v16  ;;  %v3482_v11 = vshll.u32 %v3479_v29, 16  ;;  %vm2795_vm10 = vcmp.lt.s32.totalorder %v7390_v14, 288  ;;  %v1757_v35 = vpop.f32.mrf.mxu1 }
 0x328   : > { %v3468_v42 = vmul.u32 18, %v3467_v49  ;;  %v3882_v44 = vsel %vm3818_vm8, %v3850_v22, %v3442_v50  ;;  %v3484_v51 = vshll.u32 %v3480_v57, 16  ;;  %v3504_v28 = vand.u32 65535, %v7478_v0  ;;  %v2657_v22 = vpop.f32.mrf.mxu0 }
 0x329   : > { %vm3914_vm2 = vcmp.lt.s32.totalorder %v3882_v44, 16  ;;  %vm3486_vm3 = vc.u32 %v3478_v36, %v3482_v11  ;;  %v3488_v40 = vadd.s32 %v3482_v11, %v3478_v36  ;;  %v3483_v5 = vshrl.u32 %v3479_v29, 16  ;;  %v2568_v6 = vpop.f32.mrf.mxu3 }
 0x32a   : > { %v3469_v27 = vsub.s32 %v7423_v20, %v3468_v42  ;;  %vm3946_vm6 = vmand %vm2794_vm7, %vm3914_vm2  ;;  %v3487_v8 = vsel %vm3486_vm3, 1, %v7798_v23  ;;  %v3505_v25 = vshrl.u32 %v7478_v0, 16  ;;  %v3507_v17 = vmul.u32 14564, %v3504_v28 }
 0x32b   : > { %v4042_v41 = vsel %vm3946_vm6, %v7395_v26, 0.0  ;;  %v3489_v52 = vadd.s32 %v3487_v8, %v3481_v10  ;;  %vm3490_vm14 = vc.u32 %v3488_v40, %v3484_v51  ;;  %v3508_v60 = vmul.u32 58254, %v3504_v28 }
 0x32c   : > { %v3470_v30 = vsub.s32 0, %v3469_v27  ;;  %v4073_v18 = vadd.f32 %v4072_v63, %v4042_v41  ;;  %v4112_v20 = vmul.f32 %v4042_v41, %v7395_v26  ;;  %v3491_v55 = vsel %vm3490_vm14, 1, %v7798_v23  ;;  %v7893_v63 = vld [vmem:[#allocation37_spill] sm:$0xff] }
 0x32d   : > { %v3509_v26 = vmul.u32 14564, %v3505_v25  ;;  %v3485_v2 = vshrl.u32 %v3480_v57, 16  ;;  %v3493_v7 = vadd.s32 %v3491_v55, %v3489_v52  ;;  %v3510_v46 = vmul.u32 58254, %v3505_v25  ;;  %v7895_v41 = vld [vmem:[#allocation13_spill] sm:$0xff] }
 0x32e   : > { %v3471_v47 = vsel %vm3443_vm13, %v3470_v30, %v3469_v27  ;;  %v4143_v21 = vadd.f32 %v4142_v45, %v4112_v20  ;;  %v3511_v19 = vshll.u32 %v3508_v60, 16  ;;  %v1669_v13 = vadd.f32 %v7894_v61, %v7893_v63 }
 0x32f   : > { %vm3755_vm12 = vcmp.ne.s32.totalorder %v3471_v47, 0  ;;  %vm3787_vm5 = vcmp.lt.s32.totalorder %v3471_v47, 0  ;;  %v3851_v39 = vadd.s32 18, %v3471_v47  ;;  %v3513_v33 = vshll.u32 %v3509_v26, 16 }
 0x330   : > { %vm3819_vm11 = vmand %vm3787_vm5, %vm3755_vm12  ;;  %v3494_v54 = vadd.s32 %v3493_v7, %v3483_v5  ;;  %v2569_v24 = vadd.f32 %v2568_v6, %v2479_v9  ;;  %v2733_v3 = vadd.s32 200, %v6213_v4  ;;  %v2567_v59 = vadd.f32 %v2566_v12, %v2477_v48 }
 0x331   : > { %v3883_v37 = vsel %vm3819_vm11, %v3851_v39, %v3471_v47  ;;  %vm3515_vm7 = vc.u32 %v3507_v17, %v3511_v19  ;;  %v3517_v34 = vadd.s32 %v3511_v19, %v3507_v17  ;;  %v3512_v50 = vshrl.u32 %v3508_v60, 16 }
 0x332   : > { %vm3915_vm13 = vcmp.lt.s32.totalorder %v3883_v37, 16  ;;  %v3495_v32 = vadd.s32 %v3494_v54, %v3485_v2  ;;  %v3516_v14 = vsel %vm3515_vm7, 1, %v7798_v23  ;;  %v7503_v42 = vadd.s32 %v6219_v58, %v2733_v3  ;;  %v2482_v54 = vpop.f32.mrf.mxu2 }
 0x333   : > { %vm3947_vm1 = vmand %vm2795_vm10, %vm3915_vm13  ;;  %v3518_v49 = vadd.s32 %v3516_v14, %v3510_v46  ;;  %vm3519_vm0 = vc.u32 %v3517_v34, %v3513_v33  ;;  %v2658_v29 = vadd.f32 %v2657_v22, %v2569_v24  ;;  %v3514_v57 = vshrl.u32 %v3509_v26, 16  ;;  %v1760_v34 = vpop.f32.mrf.mxu1 }
 0x334   : > { %v4043_v45 = vsel %vm3947_vm1, %v7455_v43, 0.0  ;;  %v3496_v48 = vshrl.u32 %v3495_v32, 4  ;;  %v3520_v12 = vsel %vm3519_vm0, 1, %v7798_v23  ;;  %vm3530_vm9 = vcmp.lt.s32.totalorder %v7503_v42, 0 }
 0x335   : > { %v7498_v56 = vadd.f32 %v4073_v18, %v4043_v45  ;;  %v4113_v16 = vmul.f32 %v4043_v45, %v7455_v43  ;;  %v3522_v44 = vadd.s32 %v3520_v12, %v3518_v49  ;;  %v2656_v27 = vadd.f32 %v2655_v53, %v2567_v59 }
 0x336   : > { %v3497_v43 = vmul.u32 18, %v3496_v48  ;;  %v1758_v10 = vadd.f32 %v1757_v35, %v1669_v13  ;;  %v3531_v11 = vsub.s32 0, %v7503_v42  ;;  %v1756_v30 = vadd.f32 %v1755_v38, %v7895_v41 }
 0x337   : > { %v7505_v36 = vadd.f32 %v4143_v21, %v4113_v16  ;;  %v3523_v51 = vadd.s32 %v3522_v44, %v3512_v50  ;;  %vm2796_vm6 = vcmp.lt.s32.totalorder %v7445_v1, 288  ;;  %v2734_v2 = vadd.s32 208, %v6213_v4  ;;  %v2571_v1 = vpop.f32.mrf.mxu3  ;;  %v2660_v16 = vpop.f32.mrf.mxu0 }
 0x338   : > { %v3498_v28 = vsub.s32 %v7463_v15, %v3497_v43  ;;  %v7512_v40 = vadd.f32 %v2658_v29, %v1758_v10  ;;  %v7517_v18 = vsel %vm3530_vm9, %v3531_v11, %v7503_v42  ;;  %v2699_v47 = vadd.f32 %v2656_v27, %v1756_v30 }
 0x339   : > { %v3524_v20 = vadd.s32 %v3523_v51, %v3514_v57  ;;  %v3533_v5 = vand.u32 65535, %v7517_v18  ;;  %v3534_v53 = vshrl.u32 %v7517_v18, 16  ;;  %v7530_v63 = vadd.s32 %v6219_v58, %v2734_v2 }
 0x33a   : > { %v3499_v8 = vsub.s32 0, %v3498_v28  ;;  %v5123_v39 = vpack.c.bf16 %v7512_v40, %v2699_v47  ;;  %vm2797_vm13 = vcmp.lt.s32.totalorder %v7458_v62, 288  ;;  %v2735_v44 = vadd.s32 216, %v6213_v4  ;;  %v2484_v51 = vpop.f32.mrf.mxu2 }
 0x33b   : > { %v3525_v52 = vshrl.u32 %v3524_v20, 4  ;;  %v3537_v25 = vmul.u32 58254, %v3533_v5  ;;  %v3538_v15 = vmul.u32 14564, %v3534_v53  ;;  %v3536_v21 = vmul.u32 14564, %v3533_v5  ;;  %v7896_v5 = vld [vmem:[#allocation38_spill] sm:$0xff] }
 0x33c   : > { %v3500_v38 = vsel %vm3472_vm15, %v3499_v8, %v3498_v28  ;;  %v3539_v60 = vmul.u32 58254, %v3534_v53  ;;  %5155 = vst [vmem:[%s5333_s28 + $0x60] sm:$0xff] %v5123_v39   ;;  %vm3559_vm7 = vcmp.lt.s32.totalorder %v7530_v63, 0  ;;  %v3560_v49 = vsub.s32 0, %v7530_v63  ;;  %v7897_v53 = vld [vmem:[#allocation17_spill] sm:$0xff]  ;;  %v7898_v39 = vld [vmem:[#allocation39_spill] sm:$0xff] }
 0x33d   : > { %vm3756_vm8 = vcmp.ne.s32.totalorder %v3500_v38, 0  ;;  %vm3788_vm2 = vcmp.lt.s32.totalorder %v3500_v38, 0  ;;  %v3852_v55 = vadd.s32 18, %v3500_v38  ;;  %v3526_v17 = vmul.u32 18, %v3525_v52 }
 0x33e   : > { %vm3820_vm10 = vmand %vm3788_vm2, %vm3756_vm8  ;;  %v3540_v26 = vshll.u32 %v3537_v25, 16  ;;  %v3542_v9 = vshll.u32 %v3538_v15, 16  ;;  %v3541_v19 = vshrl.u32 %v3537_v25, 16  ;;  %v3543_v13 = vshrl.u32 %v3538_v15, 16 }
 0x33f   : > { %v3884_v6 = vsel %vm3820_vm10, %v3852_v55, %v3500_v38  ;;  %v3527_v37 = vsub.s32 %v7478_v0, %v3526_v17  ;;  %v7545_v22 = vsel %vm3559_vm7, %v3560_v49, %v7530_v63  ;;  %v2572_v43 = vadd.f32 %v2571_v1, %v2482_v54  ;;  %v2573_v28 = vpop.f32.mrf.mxu3  ;;  %v1762_v38 = vpop.f32.mrf.mxu1  ;;  %v7899_v55 = vld [vmem:[#allocation7_spill] sm:$0xff] }
 0x340   : > { %vm3916_vm15 = vcmp.lt.s32.totalorder %v3884_v6, 16  ;;  %vm3544_vm3 = vc.u32 %v3536_v21, %v3540_v26  ;;  %v3546_v7 = vadd.s32 %v3540_v26, %v3536_v21  ;;  %v3563_v62 = vshrl.u32 %v7545_v22, 16 }
 0x341   : > { %vm3948_vm14 = vmand %vm2796_vm6, %vm3916_vm15  ;;  %v3528_v46 = vsub.s32 0, %v3527_v37  ;;  %v3545_v33 = vsel %vm3544_vm3, 1, %v7798_v23  ;;  %v2574_v20 = vadd.f32 %v2573_v28, %v2484_v51  ;;  %v1672_v8 = vadd.f32 %v7897_v53, %v7896_v5 }
 0x342   : > { %v4044_v61 = vsel %vm3948_vm14, %v7450_v31, 0.0  ;;  %v3547_v24 = vadd.s32 %v3545_v33, %v3539_v60  ;;  %vm3548_vm12 = vc.u32 %v3546_v7, %v3542_v9  ;;  %v3567_v11 = vmul.u32 14564, %v3563_v62 }
 0x343   : > { %v4075_v0 = vadd.f32 %v7498_v56, %v4044_v61  ;;  %v4114_v3 = vmul.f32 %v4044_v61, %v7450_v31  ;;  %v3529_v45 = vsel %vm3501_vm4, %v3528_v46, %v3527_v37  ;;  %v3549_v59 = vsel %vm3548_vm12, 1, %v7798_v23 }
 0x344   : > { %vm3757_vm5 = vcmp.ne.s32.totalorder %v3529_v45, 0  ;;  %vm3789_vm11 = vcmp.lt.s32.totalorder %v3529_v45, 0  ;;  %v3853_v32 = vadd.s32 18, %v3529_v45  ;;  %v3551_v14 = vadd.s32 %v3549_v59, %v3547_v24 }
 0x345   : > { %v4145_v50 = vadd.f32 %v7505_v36, %v4114_v3  ;;  %vm3821_vm1 = vmand %vm3789_vm11, %vm3757_vm5  ;;  %v3562_v36 = vand.u32 65535, %v7545_v22  ;;  %v3568_v52 = vmul.u32 58254, %v3563_v62  ;;  %v3571_v15 = vshll.u32 %v3567_v11, 16 }
 0x346   : > { %v3885_v56 = vsel %vm3821_vm1, %v3853_v32, %v3529_v45  ;;  %v3552_v31 = vadd.s32 %v3551_v14, %v3541_v19  ;;  %v1674_v17 = vadd.f32 %v7899_v55, %v7898_v39  ;;  %v7558_v26 = vadd.s32 %v6219_v58, %v2735_v44  ;;  %v7902_v55 = vld [vmem:[#allocation41_spill] sm:$0xff] }
 0x347   : > { %vm3917_vm4 = vcmp.lt.s32.totalorder %v3885_v56, 16  ;;  %v3565_v27 = vmul.u32 14564, %v3562_v36  ;;  %v3566_v10 = vmul.u32 58254, %v3562_v36  ;;  %v1761_v9 = vadd.f32 %v1760_v34, %v1672_v8 }
 0x348   : > { %vm3949_vm0 = vmand %vm2797_vm13, %vm3917_vm4  ;;  %v3553_v35 = vadd.s32 %v3552_v31, %v3543_v13  ;;  %v2661_v6 = vadd.f32 %v2660_v16, %v2572_v43  ;;  %v1763_v19 = vadd.f32 %v1762_v38, %v1674_v17  ;;  %vm3588_vm6 = vcmp.lt.s32.totalorder %v7558_v26, 0  ;;  %v2487_v43 = vpop.f32.mrf.mxu2  ;;  %v7900_v38 = vld [vmem:[#allocation40_spill] sm:$0xff] }
 0x349   : > { %v4045_v48 = vsel %vm3949_vm0, %v2699_v47, 0.0  ;;  %v3569_v25 = vshll.u32 %v3566_v10, 16  ;;  %v3570_v7 = vshrl.u32 %v3566_v10, 16  ;;  %v3572_v1 = vshrl.u32 %v3567_v11, 16  ;;  %v7903_v17 = vld [vmem:[#allocation20_spill] sm:$0xff] }
 0x34a   : > { %v7549_v12 = vadd.f32 %v4075_v0, %v4045_v48  ;;  %v4115_v29 = vmul.f32 %v4045_v48, %v2699_v47  ;;  %v3554_v57 = vshrl.u32 %v3553_v35, 4  ;;  %v2662_v47 = vpop.f32.mrf.mxu0  ;;  %vm2798_vm3 = vcmp.lt.s32.totalorder %v7503_v42, 288  ;;  %v1765_v48 = vpop.f32.mrf.mxu1 }
 0x34b   : > { %v2663_v60 = vadd.f32 %v2662_v47, %v2574_v20  ;;  %vm3573_vm8 = vc.u32 %v3565_v27, %v3569_v25  ;;  %v3575_v37 = vadd.s32 %v3569_v25, %v3565_v27  ;;  %v7569_v3 = vadd.f32 %v2661_v6, %v1761_v9  ;;  %v2576_v27 = vpop.f32.mrf.mxu3  ;;  %v7901_v47 = vld [vmem:[#allocation19_spill] sm:$0xff] }
 0x34c   : > { %v4146_v41 = vadd.f32 %v4145_v50, %v4115_v29  ;;  %v3555_v30 = vmul.u32 18, %v3554_v57  ;;  %v3574_v46 = vsel %vm3573_vm8, 1, %v7798_v23  ;;  %v2736_v36 = vadd.s32 224, %v6213_v4 }
 0x34d   : > { %v3576_v33 = vadd.s32 %v3574_v46, %v3568_v52  ;;  %vm3577_vm2 = vc.u32 %v3575_v37, %v3571_v15  ;;  %v7566_v13 = vadd.f32 %v2663_v60, %v1763_v19  ;;  %vm2799_vm1 = vcmp.lt.s32.totalorder %v7530_v63, 288 }
 0x34e   : > { %v3556_v21 = vsub.s32 %v7517_v18, %v3555_v30  ;;  %v3589_v18 = vsub.s32 0, %v7558_v26  ;;  %v3578_v61 = vsel %vm3577_vm2, 1, %v7798_v23  ;;  %v7591_v5 = vadd.s32 %v6219_v58, %v2736_v36 }
 0x34f   : > { %v3580_v0 = vadd.s32 %v3578_v61, %v3576_v33  ;;  %v5128_v14 = vpack.c.bf16 %v7566_v13, %v7569_v3  ;;  %v2577_v39 = vadd.f32 %v2576_v27, %v2487_v43  ;;  %v1679_v60 = vadd.f32 %v7903_v17, %v7902_v55 }
 0x350   : > { %v3557_v2 = vsub.s32 0, %v3556_v21  ;;  %v7574_v45 = vsel %vm3588_vm6, %v3589_v18, %v7558_v26  ;;  %vm3617_vm13 = vcmp.lt.s32.totalorder %v7591_v5, 0  ;;  %v2737_v19 = vadd.s32 232, %v6213_v4  ;;  %v2489_v61 = vpop.f32.mrf.mxu2 }
 0x351   : > { %v3581_v34 = vadd.s32 %v3580_v0, %v3570_v7  ;;  %v3591_v16 = vand.u32 65535, %v7574_v45  ;;  %v3592_v32 = vshrl.u32 %v7574_v45, 16  ;;  %5156 = vst [vmem:[%s5333_s28 + $0x68] sm:$0xff] %v5128_v14  }
 0x352   : > { %v3558_v54 = vsel %vm3530_vm9, %v3557_v2, %v3556_v21  ;;  %v2665_v30 = vpop.f32.mrf.mxu0  ;;  %v1677_v21 = vadd.f32 %v7901_v47, %v7900_v38  ;;  %v1767_v46 = vpop.f32.mrf.mxu1 }
 0x353   : > { %vm3758_vm10 = vcmp.ne.s32.totalorder %v3558_v54, 0  ;;  %vm3790_vm15 = vcmp.lt.s32.totalorder %v3558_v54, 0  ;;  %v3854_v24 = vadd.s32 18, %v3558_v54  ;;  %v3582_v42 = vadd.s32 %v3581_v34, %v3572_v1 }
 0x354   : > { %vm3822_vm14 = vmand %vm3790_vm15, %vm3758_vm10  ;;  %v3594_v50 = vmul.u32 14564, %v3591_v16  ;;  %v3595_v56 = vmul.u32 58254, %v3591_v16  ;;  %v3596_v31 = vmul.u32 14564, %v3592_v32  ;;  %v3597_v35 = vmul.u32 58254, %v3592_v32 }
 0x355   : > { %v3886_v59 = vsel %vm3822_vm14, %v3854_v24, %v3558_v54  ;;  %v3583_v57 = vshrl.u32 %v3582_v42, 4  ;;  %v2578_v24 = vpop.f32.mrf.mxu3  ;;  %v2666_v34 = vadd.f32 %v2665_v30, %v2577_v39  ;;  %vm2800_vm14 = vcmp.lt.s32.totalorder %v7558_v26, 288 }
 0x356   : > { %vm3918_vm9 = vcmp.lt.s32.totalorder %v3886_v59, 16  ;;  %v3598_v44 = vshll.u32 %v3595_v56, 16  ;;  %v3600_v10 = vshll.u32 %v3596_v31, 16  ;;  %v3599_v53 = vshrl.u32 %v3595_v56, 16 }
 0x357   : > { %vm3950_vm12 = vmand %vm2798_vm3, %vm3918_vm9  ;;  %v3584_v51 = vmul.u32 18, %v3583_v57  ;;  %v3601_v25 = vshrl.u32 %v3596_v31, 16  ;;  %v1766_v59 = vadd.f32 %v1765_v48, %v1677_v21  ;;  %v2579_v16 = vadd.f32 %v2578_v24, %v2489_v61 }
 0x358   : > { %v4046_v49 = vsel %vm3950_vm12, %v7512_v40, 0.0  ;;  %vm3602_vm5 = vc.u32 %v3594_v50, %v3598_v44  ;;  %v3604_v28 = vadd.s32 %v3598_v44, %v3594_v50  ;;  %v1768_v31 = vadd.f32 %v1767_v46, %v1679_v60 }
 0x359   : > { %v7584_v62 = vadd.f32 %v7549_v12, %v4046_v49  ;;  %v4116_v29 = vmul.f32 %v4046_v49, %v7512_v40  ;;  %v3603_v20 = vsel %vm3602_vm5, 1, %v7798_v23  ;;  %v3585_v12 = vsub.s32 %v7545_v22, %v3584_v51 }
 0x35a   : > { %v3605_v40 = vadd.s32 %v3603_v20, %v3597_v35  ;;  %vm3606_vm11 = vc.u32 %v3604_v28, %v3600_v10  ;;  %v2667_v50 = vpop.f32.mrf.mxu0  ;;  %v7615_v35 = vadd.s32 %v6219_v58, %v2737_v19 }
 0x35b   : > { %v7587_v11 = vadd.f32 %v4146_v41, %v4116_v29  ;;  %v3607_v8 = vsel %vm3606_vm11, 1, %v7798_v23  ;;  %v3618_v41 = vsub.s32 0, %v7591_v5  ;;  %v3586_v52 = vsub.s32 0, %v3585_v12 }
 0x35c   : > { %v3609_v15 = vadd.s32 %v3607_v8, %v3605_v40  ;;  %v2668_v49 = vadd.f32 %v2667_v50, %v2579_v16  ;;  %vm3646_vm3 = vcmp.lt.s32.totalorder %v7615_v35, 0  ;;  %v3647_v20 = vsub.s32 0, %v7615_v35 }
 0x35d   : > { %v7603_v22 = vsel %vm3617_vm13, %v3618_v41, %v7591_v5  ;;  %v3587_v9 = vsel %vm3559_vm7, %v3586_v52, %v3585_v12 }
 0x35e   : > { %v3610_v6 = vadd.s32 %v3609_v15, %v3599_v53  ;;  %v3620_v37 = vand.u32 65535, %v7603_v22  ;;  %v3621_v2 = vshrl.u32 %v7603_v22, 16  ;;  %vm3759_vm4 = vcmp.ne.s32.totalorder %v3587_v9, 0 }
 0x35f   : > { %vm3791_vm0 = vcmp.lt.s32.totalorder %v3587_v9, 0  ;;  %v3855_v7 = vadd.s32 18, %v3587_v9  ;;  %v7622_v51 = vadd.f32 %v2668_v49, %v1768_v31  ;;  %v7629_v53 = vadd.f32 %v2666_v34, %v1766_v59 }
 0x360   : > { %vm3823_vm8 = vmand %vm3791_vm0, %vm3759_vm4  ;;  %v3611_v33 = vadd.s32 %v3610_v6, %v3601_v25  ;;  %v3623_v18 = vmul.u32 14564, %v3620_v37  ;;  %v3624_v54 = vmul.u32 58254, %v3620_v37  ;;  %v3625_v1 = vmul.u32 14564, %v3621_v2 }
 0x361   : > { %v3887_v0 = vsel %vm3823_vm8, %v3855_v7, %v3587_v9  ;;  %v3626_v14 = vmul.u32 58254, %v3621_v2  ;;  %v5133_v25 = vpack.c.bf16 %v7622_v51, %v7629_v53  ;;  %v2738_v6 = vadd.s32 240, %v6213_v4 }
 0x362   : > { %vm3919_vm7 = vcmp.lt.s32.totalorder %v3887_v0, 16  ;;  %v3612_v32 = vshrl.u32 %v3611_v33, 4  ;;  %v3627_v42 = vshll.u32 %v3624_v54, 16  ;;  %v3629_v56 = vshll.u32 %v3625_v1, 16 }
 0x363   : > { %vm3951_vm2 = vmand %vm2799_vm1, %vm3919_vm7  ;;  %v3628_v43 = vshrl.u32 %v3624_v54, 16  ;;  %v3630_v12 = vshrl.u32 %v3625_v1, 16  ;;  %5157 = vst [vmem:[%s5333_s28 + $0x70] sm:$0xff] %v5133_v25   ;;  %v7651_v26 = vadd.s32 %v6219_v58, %v2738_v6 }
 0x364   : > { %v4047_v36 = vsel %vm3951_vm2, %v7569_v3, 0.0  ;;  %v3613_v29 = vmul.u32 18, %v3612_v32  ;;  %vm3631_vm10 = vc.u32 %v3623_v18, %v3627_v42  ;;  %v3633_v48 = vadd.s32 %v3627_v42, %v3623_v18 }
 0x365   : > { %v4078_v57 = vadd.f32 %v7584_v62, %v4047_v36  ;;  %v4117_v44 = vmul.f32 %v4047_v36, %v7569_v3  ;;  %v3632_v27 = vsel %vm3631_vm10, 1, %v7798_v23  ;;  %vm3675_vm0 = vcmp.lt.s32.totalorder %v7651_v26, 0  ;;  %v2492_v36 = vpop.f32.mrf.mxu2 }
 0x366   : > { %v3614_v63 = vsub.s32 %v7574_v45, %v3613_v29  ;;  %v3634_v10 = vadd.s32 %v3632_v27, %v3626_v14  ;;  %vm3635_vm15 = vc.u32 %v3633_v48, %v3629_v56  ;;  %v7634_v45 = vsel %vm3646_vm3, %v3647_v20, %v7615_v35  ;;  %v2581_v29 = vpop.f32.mrf.mxu3 }
 0x367   : > { %v4148_v28 = vadd.f32 %v7587_v11, %v4117_v44  ;;  %v3636_v30 = vsel %vm3635_vm15, 1, %v7798_v23  ;;  %v3649_v8 = vand.u32 65535, %v7634_v45  ;;  %v3650_v41 = vshrl.u32 %v7634_v45, 16 }
 0x368   : > { %v3615_v62 = vsub.s32 0, %v3614_v63  ;;  %v3638_v3 = vadd.s32 %v3636_v30, %v3634_v10  ;;  %vm2801_vm2 = vcmp.lt.s32.totalorder %v7591_v5, 288 }
 0x369   : > { %v3652_v38 = vmul.u32 14564, %v3649_v8  ;;  %v3653_v47 = vmul.u32 58254, %v3649_v8  ;;  %v3654_v21 = vmul.u32 14564, %v3650_v41  ;;  %v3655_v17 = vmul.u32 58254, %v3650_v41  ;;  %v1770_v8 = vpop.f32.mrf.mxu1  ;;  %v2670_v41 = vpop.f32.mrf.mxu0 }
 0x36a   : > { %v3616_v11 = vsel %vm3588_vm6, %v3615_v62, %v3614_v63  ;;  %v3639_v40 = vadd.s32 %v3638_v3, %v3628_v43  ;;  %v2739_v43 = vadd.s32 248, %v6213_v4 }
 0x36b   : > { %vm3760_vm9 = vcmp.ne.s32.totalorder %v3616_v11, 0  ;;  %vm3792_vm12 = vcmp.lt.s32.totalorder %v3616_v11, 0  ;;  %v3856_v52 = vadd.s32 18, %v3616_v11  ;;  %v3656_v60 = vshll.u32 %v3653_v47, 16 }
 0x36c   : > { %vm3824_vm5 = vmand %vm3792_vm12, %vm3760_vm9  ;;  %v3640_v15 = vadd.s32 %v3639_v40, %v3630_v12  ;;  %v3658_v9 = vshll.u32 %v3654_v21, 16  ;;  %v3657_v33 = vshrl.u32 %v3653_v47, 16  ;;  %v3659_v59 = vshrl.u32 %v3654_v21, 16 }
 0x36d   : > { %v3888_v39 = vsel %vm3824_vm5, %v3856_v52, %v3616_v11  ;;  %vm3660_vm1 = vc.u32 %v3652_v38, %v3656_v60  ;;  %v3662_v7 = vadd.s32 %v3656_v60, %v3652_v38  ;;  %v7672_v40 = vadd.s32 %v6219_v58, %v2739_v43 }
 0x36e   : > { %vm3920_vm11 = vcmp.lt.s32.totalorder %v3888_v39, 16  ;;  %v3641_v55 = vshrl.u32 %v3640_v15, 4  ;;  %v3661_v18 = vsel %vm3660_vm1, 1, %v7798_v23 }
 0x36f   : > { %vm3952_vm6 = vmand %vm2800_vm14, %vm3920_vm11  ;;  %v3663_v1 = vadd.s32 %v3661_v18, %v3655_v17  ;;  %vm3664_vm4 = vc.u32 %v3662_v7, %v3658_v9  ;;  %vm3704_vm12 = vcmp.lt.s32.totalorder %v7672_v40, 0  ;;  %v2583_v17 = vpop.f32.mrf.mxu3 }
 0x370   : > { %v4048_v37 = vsel %vm3952_vm6, %v7566_v13, 0.0  ;;  %v3642_v2 = vmul.u32 18, %v3641_v55  ;;  %v3665_v24 = vsel %vm3664_vm4, 1, %v7798_v23  ;;  %vm2802_vm6 = vcmp.lt.s32.totalorder %v7615_v35, 288  ;;  %v2494_v55 = vpop.f32.mrf.mxu2 }
 0x371   : > { %v4079_v46 = vadd.f32 %v4078_v57, %v4048_v37  ;;  %v4118_v19 = vmul.f32 %v4048_v37, %v7566_v13  ;;  %v3667_v34 = vadd.s32 %v3665_v24, %v3663_v1  ;;  %v3676_v13 = vsub.s32 0, %v7651_v26 }
 0x372   : > { %v3643_v54 = vsub.s32 %v7603_v22, %v3642_v2  ;;  %v2582_v24 = vadd.f32 %v2581_v29, %v2492_v36  ;;  %v7907_v36 = vld [vmem:[#allocation21_spill] sm:$0xff] }
 0x373   : > { %v4149_v61 = vadd.f32 %v4148_v28, %v4118_v19  ;;  %v3668_v32 = vadd.s32 %v3667_v34, %v3657_v33  ;;  %v7661_v14 = vsel %vm3675_vm0, %v3676_v13, %v7651_v26  ;;  %v1772_v34 = vpop.f32.mrf.mxu1  ;;  %v2672_v13 = vpop.f32.mrf.mxu0 }
 0x374   : > { %v3644_v0 = vsub.s32 0, %v3643_v54  ;;  %v3678_v50 = vand.u32 65535, %v7661_v14  ;;  %v3679_v56 = vshrl.u32 %v7661_v14, 16 }
 0x375   : > { %v3669_v42 = vadd.s32 %v3668_v32, %v3659_v59 }
 0x376   : > { %v3645_v16 = vsel %vm3617_vm13, %v3644_v0, %v3643_v54  ;;  %v3681_v48 = vmul.u32 14564, %v3678_v50  ;;  %v3682_v57 = vmul.u32 58254, %v3678_v50  ;;  %v3683_v44 = vmul.u32 14564, %v3679_v56 }
 0x377   : > { %vm3761_vm8 = vcmp.ne.s32.totalorder %v3645_v16, 0  ;;  %vm3793_vm7 = vcmp.lt.s32.totalorder %v3645_v16, 0  ;;  %v3857_v22 = vadd.s32 18, %v3645_v16  ;;  %v3670_v49 = vshrl.u32 %v3669_v42, 4  ;;  %v7905_v42 = vld [vmem:[#allocation22_spill] sm:$0xff] }
 0x378   : > { %vm3825_vm10 = vmand %vm3793_vm7, %vm3761_vm8  ;;  %v3684_v63 = vmul.u32 58254, %v3679_v56  ;;  %v3685_v10 = vshll.u32 %v3682_v57, 16  ;;  %v3687_v20 = vshll.u32 %v3683_v44, 16  ;;  %v3686_v52 = vshrl.u32 %v3682_v57, 16 }
 0x379   : > { %v3889_v31 = vsel %vm3825_vm10, %v3857_v22, %v3645_v16  ;;  %v3671_v5 = vmul.u32 18, %v3670_v49  ;;  %v3688_v38 = vshrl.u32 %v3683_v44, 16  ;;  %v7904_v22 = vld [vmem:[#allocation23_spill] sm:$0xff]  ;;  %v2671_v44 = vadd.f32 %v2670_v41, %v2582_v24 }
 0x37a   : > { %vm3921_vm15 = vcmp.lt.s32.totalorder %v3889_v31, 16  ;;  %vm3689_vm14 = vc.u32 %v3681_v48, %v3685_v10  ;;  %v3691_v12 = vadd.s32 %v3685_v10, %v3681_v48  ;;  %v1684_v50 = vadd.f32 %v7905_v42, %v7904_v22 }
 0x37b   : > { %vm3953_vm13 = vmand %vm2801_vm2, %vm3921_vm15  ;;  %v3672_v62 = vsub.s32 %v7634_v45, %v3671_v5  ;;  %v3690_v11 = vsel %vm3689_vm14, 1, %v7798_v23  ;;  %vm2803_vm15 = vcmp.lt.s32.totalorder %v7651_v26, 288 }
 0x37c   : > { %v4049_v27 = vsel %vm3953_vm13, %v7629_v53, 0.0  ;;  %v3692_v25 = vadd.s32 %v3690_v11, %v3684_v63  ;;  %vm3693_vm9 = vc.u32 %v3691_v12, %v3687_v20  ;;  %v1773_v43 = vadd.f32 %v1772_v34, %v1684_v50 }
 0x37d   : > { %v4080_v28 = vadd.f32 %v4079_v46, %v4049_v27  ;;  %v4119_v30 = vmul.f32 %v4049_v27, %v7629_v53  ;;  %v3673_v4 = vsub.s32 0, %v3672_v62  ;;  %v3694_v15 = vsel %vm3693_vm9, 1, %v7798_v23 }
 0x37e   : > { %v3705_v53 = vsub.s32 0, %v7672_v40  ;;  %v3696_v47 = vadd.s32 %v3694_v15, %v3692_v25  ;;  %v2584_v46 = vadd.f32 %v2583_v17, %v2494_v55 }
 0x37f   : > { %v4150_v3 = vadd.f32 %v4149_v61, %v4119_v30  ;;  %v3674_v45 = vsel %vm3646_vm3, %v3673_v4, %v3672_v62 }
 0x380   : > { %vm3762_vm5 = vcmp.ne.s32.totalorder %v3674_v45, 0  ;;  %vm3794_vm11 = vcmp.lt.s32.totalorder %v3674_v45, 0  ;;  %v3858_v58 = vadd.s32 18, %v3674_v45  ;;  %v7682_v21 = vsel %vm3704_vm12, %v3705_v53, %v7672_v40 }
 0x381   : > { %vm3826_vm1 = vmand %vm3794_vm11, %vm3762_vm5  ;;  %v3697_v39 = vadd.s32 %v3696_v47, %v3686_v52  ;;  %v3707_v60 = vand.u32 65535, %v7682_v21  ;;  %v3708_v9 = vshrl.u32 %v7682_v21, 16  ;;  %v2673_v56 = vadd.f32 %v2672_v13, %v2584_v46 }
 0x382   : > { %v3890_v6 = vsel %vm3826_vm1, %v3858_v58, %v3674_v45  ;;  %vm2804_vm11 = vcmp.lt.s32.totalorder %v7672_v40, 288 }
 0x383   : > { %vm3922_vm3 = vcmp.lt.s32.totalorder %v3890_v6, 16  ;;  %v3698_v37 = vadd.s32 %v3697_v39, %v3688_v38  ;;  %v3710_v2 = vmul.u32 14564, %v3707_v60  ;;  %v3711_v7 = vmul.u32 58254, %v3707_v60 }
 0x384   : > { %vm3954_vm4 = vmand %vm2802_vm6, %vm3922_vm3  ;;  %v3712_v19 = vmul.u32 14564, %v3708_v9  ;;  %v3713_v35 = vmul.u32 58254, %v3708_v9  ;;  %v2706_v30 = vadd.f32 %v2673_v56, %v1773_v43 }
 0x385   : > { %v4050_v33 = vsel %vm3954_vm4, %v7622_v51, 0.0  ;;  %v3699_v18 = vshrl.u32 %v3698_v37, 4  ;;  %v3714_v54 = vshll.u32 %v3711_v7, 16  ;;  %v3715_v48 = vshrl.u32 %v3711_v7, 16 }
 0x386   : > { %v4081_v1 = vadd.f32 %v4080_v28, %v4050_v33  ;;  %v4120_v61 = vmul.f32 %v4050_v33, %v7622_v51  ;;  %v3716_v0 = vshll.u32 %v3712_v19, 16  ;;  %v7906_v51 = vld [vmem:[#allocation42_spill] sm:$0xff]  ;;  %v3717_v63 = vshrl.u32 %v3712_v19, 16 }
 0x387   : > { %v3700_v59 = vmul.u32 18, %v3699_v18  ;;  %vm3718_vm8 = vc.u32 %v3710_v2, %v3714_v54  ;;  %v3720_v16 = vadd.s32 %v3714_v54, %v3710_v2  ;;  %v1682_v29 = vadd.f32 %v7907_v36, %v7906_v51 }
 0x388   : > { %v4151_v32 = vadd.f32 %v4150_v3, %v4120_v61  ;;  %v3719_v31 = vsel %vm3718_vm8, 1, %v7798_v23 }
 0x389   : > { %v3701_v49 = vsub.s32 %v7661_v14, %v3700_v59  ;;  %v3721_v57 = vadd.s32 %v3719_v31, %v3713_v35  ;;  %vm3722_vm7 = vc.u32 %v3720_v16, %v3716_v0  ;;  %v1771_v28 = vadd.f32 %v1770_v8, %v1682_v29 }
 0x38a   : > { %v3723_v27 = vsel %vm3722_vm7, 1, %v7798_v23 }
 0x38b   : > { %v3702_v5 = vsub.s32 0, %v3701_v49  ;;  %v3725_v10 = vadd.s32 %v3723_v27, %v3721_v57  ;;  %v2705_v62 = vadd.f32 %v2671_v44, %v1771_v28 }
 0x38d   : > { %v3703_v20 = vsel %vm3675_vm0, %v3702_v5, %v3701_v49  ;;  %v3726_v14 = vadd.s32 %v3725_v10, %v3715_v48  ;;  %v5138_v23 = vpack.c.bf16 %v2706_v30, %v2705_v62 }
 0x38e   : > { %vm3763_vm2 = vcmp.ne.s32.totalorder %v3703_v20, 0  ;;  %vm3795_vm10 = vcmp.lt.s32.totalorder %v3703_v20, 0  ;;  %v3859_v12 = vadd.s32 18, %v3703_v20 }
 0x38f   : > { %vm3827_vm13 = vmand %vm3795_vm10, %vm3763_vm2  ;;  %v3727_v3 = vadd.s32 %v3726_v14, %v3717_v63  ;;  %5158 = vst [vmem:[%s5333_s28 + $0x78] sm:$0xff] %v5138_v23  }
 0x390   : > { %v3891_v11 = vsel %vm3827_vm13, %v3859_v12, %v3703_v20 }
 0x391   : > { %vm3923_vm14 = vcmp.lt.s32.totalorder %v3891_v11, 16  ;;  %v3728_v4 = vshrl.u32 %v3727_v3, 4 }
 0x392   : > { %vm3955_vm9 = vmand %vm2803_vm15, %vm3923_vm14 }
 0x393   : > { %v4051_v8 = vsel %vm3955_vm9, %v2705_v62, 0.0  ;;  %v3729_v41 = vmul.u32 18, %v3728_v4 }
 0x394   : > { %v4082_v52 = vadd.f32 %v4081_v1, %v4051_v8  ;;  %v4121_v25 = vmul.f32 %v4051_v8, %v2705_v62 }
 0x395   : > { %v3730_v15 = vsub.s32 %v7682_v21, %v3729_v41 }
 0x396   : > { %v4152_v53 = vadd.f32 %v4151_v32, %v4121_v25 }
 0x397   : > { %v3731_v45 = vsub.s32 0, %v3730_v15 }
 0x399   : > { %v3732_v38 = vsel %vm3704_vm12, %v3731_v45, %v3730_v15 }
 0x39a   : > { %vm3764_vm0 = vcmp.ne.s32.totalorder %v3732_v38, 0  ;;  %vm3796_vm5 = vcmp.lt.s32.totalorder %v3732_v38, 0  ;;  %v3860_v26 = vadd.s32 18, %v3732_v38 }
 0x39b   : > { %vm3828_vm6 = vmand %vm3796_vm5, %vm3764_vm0 }
 0x39c   : > { %v3892_v47 = vsel %vm3828_vm6, %v3860_v26, %v3732_v38 }
 0x39d   : > { %vm3924_vm1 = vcmp.lt.s32.totalorder %v3892_v47, 16 }
 0x39e   : > { %vm3956_vm3 = vmand %vm2804_vm11, %vm3924_vm1 }
 0x39f   : > { %v4052_v58 = vsel %vm3956_vm3, %v2706_v30, 0.0 }
 0x3a0   : > { %v4083_v39 = vadd.f32 %v4082_v52, %v4052_v58  ;;  %v4122_v55 = vmul.f32 %v4052_v58, %v2706_v30 }
 0x3a2   : > { %v4084_v21 = vrot.slane %v4083_v39, 4  ;;  %v4153_v17 = vadd.f32 %v4152_v53, %v4122_v55 }
 0x3a4   : > { %v4085_v60 = vadd.f32 %v4084_v21, %v4083_v39  ;;  %v4154_v9 = vrot.slane %v4153_v17, 4 }
 0x3a6   : > { %v4086_v6 = vrot.slane %v4085_v60, 2  ;;  %v4155_v37 = vadd.f32 %v4154_v9, %v4153_v17 }
 0x3a8   : > { %v4087_v2 = vadd.f32 %v4086_v6, %v4085_v60  ;;  %v4156_v7 = vrot.slane %v4155_v37, 2 }
 0x3aa   : > { %v4088_v46 = vrot.slane %v4087_v2, 1  ;;  %v4157_v19 = vadd.f32 %v4156_v7, %v4155_v37 }
 0x3ac   : > { %v4089_v40 = vadd.f32 %v4088_v46, %v4087_v2  ;;  %v4158_v33 = vrot.slane %v4157_v19, 1 }
 0x3ae   : > { %4090 = vst [vmem:[%s5341_s10] sm:$0x1] %v4089_v40  ;;  %v4159_v18 = vadd.f32 %v4158_v33, %v4157_v19 }
 0x3b0   : > { %4160 = vst [vmem:[%s5341_s10 + $0x1] sm:$0x1] %v4159_v18 }
 0x3b1 PF: > { %s14_s16 = sadd.s32 1, %s5268_s16   ;;  %s7908_s12 = smov %s5260_s14 }
 0x3b2   : > { %p11_p12 = scmp.ge.s32.totalorder %s14_s16, 6   ;;  %s7909_s13 = smov %s5264_s15 }
 0x3b3   : > { %s7910_s14 = smov %s7913_s17  ;;  %s7911_s15 = smov %s7917_s18 }
 0x3b4   :  { %13 = sbr.rel (!%p11_p12) target bundleno = 3 (0x3), region = 129 }
 0x3b9   :  { %4289 = vsyncmov [#allocation3] }
 0x3bc   :  { %s4290_s28 = vpop.sfrf %4289 }
 0x3bd   :  { %p4943_p13 = scmp.ne.s32.totalorder %s4290_s28, 0 }
 0x3bf   :  { %4294 = shalt.err (%p4943_p13)  }
 0x3c0   :  { %4296 = vsyncmov [#allocation3 + $0x1] }
 0x3c3   :  { %s4297_s10 = vpop.sfrf %4296 }
 0x3c4   :  { %p4944_p0 = scmp.ne.s32.totalorder %s4297_s10, 0 }
 0x3c6   :  { %4301 = shalt.err (%p4944_p0)  }

</bundles_post_ra>
